<compile_context>
chip_gen: v6e
topology: v6e:2x2x1
jax: 0.10.0
libtpu: 0.0.40
codegen_flags: <defaults>
</compile_context>

<pallas_src>
import functools

import numpy as np
import jax
import jax.numpy as jnp
from jax.experimental import pallas as pl
from jax.experimental.pallas import tpu as pltpu


# --------------------------------------------------------------------------- kernel
def _wrap_pad3_kernel(x_ref, o_ref, *, pads):
    """Wrap-pad the last three axes of a (B, A2, A1, A0) block.

    Every destination region of o_ref is written exactly once, directly from the
    corresponding slice of x_ref (no concatenate temporaries, no o_ref reads, so
    there is no vst->vld->vst dependency chain).  All offsets/lengths are static.
    """
    a2, a1, a0 = x_ref.shape[1:]
    (p2l, p2r), (p1l, p1r), (p0l, p0r) = pads

    def segs(n, p_lo, p_hi):
        # (dst_start, src_start, length) segments along one padded axis.
        s = [(p_lo, 0, n)]                       # interior
        if p_lo:
            s.append((0, n - p_lo, p_lo))        # leading halo = last p_lo of x
        if p_hi:
            s.append((p_lo + n, 0, p_hi))        # trailing halo = first p_hi of x
        return s

    for d2, s2, l2 in segs(a2, p2l, p2r):
        for d1, s1, l1 in segs(a1, p1l, p1r):
            for d0, s0, l0 in segs(a0, p0l, p0r):
                o_ref[:, pl.ds(d2, l2), pl.ds(d1, l1), pl.ds(d0, l0)] = \
                    x_ref[:, pl.ds(s2, l2), pl.ds(s1, l1), pl.ds(s0, l0)]


# --------------------------------------------------------------------------- helpers
def _parse_padding(padding_size):
    """Mirror SphericPad.__init__ parsing (int / scalar, 3-tuple, 6-tuple)."""
    if np.ndim(padding_size) == 0:
        p = int(padding_size)
        return p, p, p, p, p, p                                # pf, pb, pt, pbm, plft, pr
    vals = tuple(int(v) for v in np.asarray(padding_size).reshape(-1))
    if len(vals) == 3:
        return vals[0], vals[0], vals[1], vals[1], vals[2], vals[2]
    if len(vals) == 6:
        # torch order: (pad_back, pad_front, pad_bottom, pad_right, pad_top, pad_left)
        pb, pf, pbm, pr, pt, plft = vals
        return pf, pb, pt, pbm, plft, pr
    raise ValueError(
        "The padding size should be: int or tuple of size 3 or tuple of size 6")


def _round_up(v, m):
    return ((v + m - 1) // m) * m


def _vmem_slab_bytes(shape, dtype):
    """VMEM footprint of one slab, accounting for (sublane, 128-lane) tile padding."""
    itemsize = np.dtype(dtype).itemsize
    packing = max(1, 4 // itemsize)                            # bf16 -> 2, int8 -> 4
    *lead, s2, s1 = shape
    lead_prod = 1
    for d in lead:
        lead_prod *= int(d)
    return lead_prod * _round_up(s2, 8 * packing) * _round_up(s1, 128) * itemsize


def _vmem_capacity_bytes():
    try:
        cap = getattr(pltpu.get_tpu_info(), "vmem_capacity_bytes", None)
        if cap:
            return int(cap)
    except Exception:
        pass
    return 64 * 1024 * 1024                                    # conservative (v7x per-TC)


# --------------------------------------------------------------------------- core pad
def _wrap_pad_core(x4, pads, *, block_bytes_target=None):
    """Wrap-pad the last three axes of x4: (B, A2, A1, A0) with static pads."""
    B, A2, A1, A0 = x4.shape
    (p2l, p2r), (p1l, p1r), (p0l, p0r) = pads
    O2, O1, O0 = A2 + p2l + p2r, A1 + p1l + p1r, A0 + p0l + p0r
    itemsize = np.dtype(x4.dtype).itemsize

    # Honest per-leading-index VMEM slab (in + out); no hidden concat temporaries.
    slab = (_vmem_slab_bytes((A2, A1, A0), x4.dtype)
            + _vmem_slab_bytes((O2, O1, O0), x4.dtype))

    capacity = _vmem_capacity_bytes()
    # ~8 MiB (in+out) per block: large enough to amortize the ~0.35us per-step
    # pipeline overhead, small enough that double-buffering (~2x) fits the scoped
    # VMEM on v5e/v6e/v7x once the limit below is raised.
    target = block_bytes_target if block_bytes_target is not None \
        else min(8 << 20, capacity // 8)

    bnc = max(1, min(B, target // slab))
    grid_len = pl.cdiv(B, bnc)
    # Prefer an even grid of length >= 2: v7x has 2 TensorCores sharding the
    # "parallel" axis; no downside on single-TC v5e/v6e (one extra ~0.35us step).
    if B > 1:
        if grid_len == 1:
            bnc = pl.cdiv(B, 2)
        elif grid_len % 2:
            bnc = max(1, pl.cdiv(B, grid_len + 1))
        grid_len = pl.cdiv(B, bnc)

    # Double-buffered footprint + headroom; raise the scoped-VMEM limit explicitly
    # (v5e default is only 16 MiB), capped well below physical VMEM capacity.
    needed = 2 * bnc * slab + (1 << 20)
    vmem_limit = int(min(max(needed, 32 << 20), (3 * capacity) // 4))
    # TODO(synk): if a single (in+out) slab exceeds ~3/8 of VMEM capacity (hit at half
    # the volume on v7x's 64 MiB), split the A2/depth axis across the grid with
    # halo-aware index_maps instead of falling back to bnc=1.

    bytes_accessed = (B * A2 * A1 * A0 + B * O2 * O1 * O0) * itemsize

    return pl.pallas_call(
        functools.partial(_wrap_pad3_kernel, pads=pads),
        out_shape=jax.ShapeDtypeStruct((B, O2, O1, O0), x4.dtype),
        grid=(grid_len,),
        # pipeline_mode=pl.Buffered(3) is a possible further sweep for this pure-copy
        # kernel; left at the default depth of 2 to stay VMEM-safe on v7x.
        in_specs=[pl.BlockSpec((bnc, A2, A1, A0), lambda i: (i, 0, 0, 0))],
        out_specs=pl.BlockSpec((bnc, O2, O1, O0), lambda i: (i, 0, 0, 0)),
        compiler_params=pltpu.CompilerParams(
            dimension_semantics=("parallel",),
            vmem_limit_bytes=vmem_limit),
        cost_estimate=pl.CostEstimate(
            flops=0, transcendentals=0, bytes_accessed=bytes_accessed),
    )(x4)


# --------------------------------------------------------------------------- wrapper
def spheric_pad(x, padding_size, *, block_bytes_target=None):
    """Circular pad of a (N, C, D, H, W) array, matching SphericPad.forward."""
    pf, pb, pt, pbm, plft, pr = _parse_padding(padding_size)
    if x.ndim != 5:
        raise ValueError("spheric_pad expects a 5-D NCDHW input")
    N, C, D, H, W = x.shape
    for p, d, name in ((pf, D, "pad_front"), (pb, D, "pad_back"),
                       (pt, H, "pad_top"), (pbm, H, "pad_bottom"),
                       (plft, W, "pad_left"), (pr, W, "pad_right")):
        if not (0 <= p <= d):
            raise ValueError(f"{name}={p} must satisfy 0 <= pad <= dim ({d})")
    Do, Ho, Wo = D + pf + pb, H + pt + pbm, W + plft + pr

    if plft == 0 and pr == 0:
        # Lane-dense fast path: no W padding, so wrapping H by (pt, pbm) is exactly a
        # contiguous wrap of the flattened (H*W) lane axis by (pt*W, pbm*W); D wrap is
        # a sublane-axis copy.  Free reshapes (contiguous dim merge/split only).
        x4 = x.reshape(N * C, 1, D, H * W)
        pads = ((0, 0), (pf, pb), (pt * W, pbm * W))
        out = _wrap_pad_core(x4, pads, block_bytes_target=block_bytes_target)
        return out.reshape(N, C, Do, Ho, W)

    if Wo < 128 and W * C >= 128 and C > 1:
        # Lane-dense channels-last path for small W: pad an (N, D, H, W*C) view, where
        # wrapping W is a contiguous (multiple-of-C) wrap of the W*C lane axis and the
        # D/H wraps are leading/sublane-only — every store / DMA row is >=128 lanes.
        # The two transposes are layout plumbing done by XLA outside the kernel.
        x4 = jnp.transpose(x, (0, 2, 3, 4, 1)).reshape(N, D, H, W * C)
        pads = ((pf, pb), (pt, pbm), (plft * C, pr * C))
        out = _wrap_pad_core(x4, pads, block_bytes_target=block_bytes_target)
        return jnp.transpose(out.reshape(N, Do, Ho, Wo, C), (0, 4, 1, 2, 3))

    # General NCDHW path (lane axis = W; stores are lane-masked when W < 128).
    x4 = x.reshape(N * C, D, H, W)
    pads = ((pf, pb), (pt, pbm), (plft, pr))
    out = _wrap_pad_core(x4, pads, block_bytes_target=block_bytes_target)
    return out.reshape(N, C, Do, Ho, Wo)


# --------------------------------------------------------------------------- tests
if __name__ == "__main__":
    key = jax.random.PRNGKey(0)

    # 1) general NCDHW path (W padded, small W), symmetric int padding.
    N, C, D, H, W = 2, 4, 8, 16, 16
    x = jax.random.normal(key, (N, C, D, H, W), dtype=jnp.float32)
    pad = 2
    out = jax.block_until_ready(spheric_pad(x, pad))
    ref = jnp.pad(x, ((0, 0), (0, 0), (pad, pad), (pad, pad), (pad, pad)), mode="wrap")
    assert out.shape == ref.shape and out.dtype == x.dtype
    assert jnp.array_equal(out, ref), "mismatch (int pad, general path)"

    # 2) asymmetric 6-tuple in torch order (back, front, bottom, right, top, left).
    pads6 = (1, 2, 3, 1, 2, 3)
    out6 = jax.block_until_ready(spheric_pad(x, pads6))
    ref6 = jnp.pad(x, ((0, 0), (0, 0), (2, 1), (2, 3), (3, 1)), mode="wrap")
    assert out6.shape == ref6.shape
    assert jnp.array_equal(out6, ref6), "mismatch (6-tuple pad, general path)"

    # 3) no-W-pad lane-dense flatten path (3-tuple = per-axis symmetric pads).
    out3 = jax.block_until_ready(spheric_pad(x, (2, 3, 0)))
    ref3 = jnp.pad(x, ((0, 0), (0, 0), (2, 2), (3, 3), (0, 0)), mode="wrap")
    assert jnp.array_equal(out3, ref3), "mismatch (flatten path)"

    # 4) channels-last lane-dense path (W*C >= 128, Wo < 128).
    x_cl = jax.random.normal(jax.random.PRNGKey(1), (2, 16, 4, 8, 16), jnp.float32)
    outc = jax.block_until_ready(spheric_pad(x_cl, 2))
    refc = jnp.pad(x_cl, ((0, 0), (0, 0), (2, 2), (2, 2), (2, 2)), mode="wrap")
    assert jnp.array_equal(outc, refc), "mismatch (channels-last path)"

    # 5) cdiv batching with a partial last block (B=5 slabs, forced small block budget).
    x_odd = jax.random.normal(jax.random.PRNGKey(2), (1, 5, 8, 16, 16), jnp.float32)
    outo = jax.block_until_ready(spheric_pad(x_odd, 1, block_bytes_target=400 * 1024))
    refo = jnp.pad(x_odd, ((0, 0), (0, 0), (1, 1), (1, 1), (1, 1)), mode="wrap")
    assert jnp.array_equal(outo, refo), "mismatch (partial last block)"

    print("KERNEL_OK")
</pallas_src>

<mosaic_0001>
module attributes {stable_mosaic.version = 11 : i64} {
  func.func @_wrap_pad3_kernel(%arg0: i32, %arg1: memref<4x8x16x16xf32, #tpu.memory_space<vmem>>, %arg2: memref<4x12x20x20xf32, #tpu.memory_space<vmem>>) attributes {dimension_semantics = [#tpu.dimension_semantics<parallel>], iteration_bounds = array<i64: 2>, scalar_prefetch = 0 : i64, scratch_operands = 0 : i64, tpu.core_type = #tpu.core_type<tc>, window_params = [{transform_indices = @transform_0, window_bounds = array<i64: 4, 8, 16, 16>}, {transform_indices = @transform_1, window_bounds = array<i64: 4, 12, 20, 20>}]} {
    %c0 = arith.constant 0 : index
    %c0_0 = arith.constant 0 : index
    %c0_1 = arith.constant 0 : index
    %c0_2 = arith.constant 0 : index
    %0 = vector.load %arg1[%c0, %c0_0, %c0_1, %c0_2] : memref<4x8x16x16xf32, #tpu.memory_space<vmem>>, vector<4x8x16x16xf32>
    %c0_3 = arith.constant 0 : index
    %c2 = arith.constant 2 : index
    %c2_4 = arith.constant 2 : index
    %c2_5 = arith.constant 2 : index
    %1 = vector.load %arg2[%c0_3, %c2, %c2_4, %c2_5] : memref<4x12x20x20xf32, #tpu.memory_space<vmem>>, vector<4x8x16x16xf32>
    tpu.vector_store %arg2[%c0_3, %c2, %c2_4, %c2_5], %0 {strides = array<i32>} : memref<4x12x20x20xf32, #tpu.memory_space<vmem>>, vector<4x8x16x16xf32>,
    %c0_6 = arith.constant 0 : index
    %c0_7 = arith.constant 0 : index
    %c0_8 = arith.constant 0 : index
    %c14 = arith.constant 14 : index
    %2 = vector.load %arg1[%c0_6, %c0_7, %c0_8, %c14] : memref<4x8x16x16xf32, #tpu.memory_space<vmem>>, vector<4x8x16x2xf32>
    %c0_9 = arith.constant 0 : index
    %c2_10 = arith.constant 2 : index
    %c2_11 = arith.constant 2 : index
    %c0_12 = arith.constant 0 : index
    %3 = vector.load %arg2[%c0_9, %c2_10, %c2_11, %c0_12] : memref<4x12x20x20xf32, #tpu.memory_space<vmem>>, vector<4x8x16x2xf32>
    tpu.vector_store %arg2[%c0_9, %c2_10, %c2_11, %c0_12], %2 {strides = array<i32>} : memref<4x12x20x20xf32, #tpu.memory_space<vmem>>, vector<4x8x16x2xf32>,
    %c0_13 = arith.constant 0 : index
    %c0_14 = arith.constant 0 : index
    %c0_15 = arith.constant 0 : index
    %c0_16 = arith.constant 0 : index
    %4 = vector.load %arg1[%c0_13, %c0_14, %c0_15, %c0_16] : memref<4x8x16x16xf32, #tpu.memory_space<vmem>>, vector<4x8x16x2xf32>
    %c0_17 = arith.constant 0 : index
    %c2_18 = arith.constant 2 : index
    %c2_19 = arith.constant 2 : index
    %c18 = arith.constant 18 : index
    %5 = vector.load %arg2[%c0_17, %c2_18, %c2_19, %c18] : memref<4x12x20x20xf32, #tpu.memory_space<vmem>>, vector<4x8x16x2xf32>
    tpu.vector_store %arg2[%c0_17, %c2_18, %c2_19, %c18], %4 {strides = array<i32>} : memref<4x12x20x20xf32, #tpu.memory_space<vmem>>, vector<4x8x16x2xf32>,
    %c0_20 = arith.constant 0 : index
    %c0_21 = arith.constant 0 : index
    %c14_22 = arith.constant 14 : index
    %c0_23 = arith.constant 0 : index
    %6 = vector.load %arg1[%c0_20, %c0_21, %c14_22, %c0_23] : memref<4x8x16x16xf32, #tpu.memory_space<vmem>>, vector<4x8x2x16xf32>
    %c0_24 = arith.constant 0 : index
    %c2_25 = arith.constant 2 : index
    %c0_26 = arith.constant 0 : index
    %c2_27 = arith.constant 2 : index
    %7 = vector.load %arg2[%c0_24, %c2_25, %c0_26, %c2_27] : memref<4x12x20x20xf32, #tpu.memory_space<vmem>>, vector<4x8x2x16xf32>
    tpu.vector_store %arg2[%c0_24, %c2_25, %c0_26, %c2_27], %6 {strides = array<i32>} : memref<4x12x20x20xf32, #tpu.memory_space<vmem>>, vector<4x8x2x16xf32>,
    %c0_28 = arith.constant 0 : index
    %c0_29 = arith.constant 0 : index
    %c14_30 = arith.constant 14 : index
    %c14_31 = arith.constant 14 : index
    %8 = vector.load %arg1[%c0_28, %c0_29, %c14_30, %c14_31] : memref<4x8x16x16xf32, #tpu.memory_space<vmem>>, vector<4x8x2x2xf32>
    %c0_32 = arith.constant 0 : index
    %c2_33 = arith.constant 2 : index
    %c0_34 = arith.constant 0 : index
    %c0_35 = arith.constant 0 : index
    %9 = vector.load %arg2[%c0_32, %c2_33, %c0_34, %c0_35] : memref<4x12x20x20xf32, #tpu.memory_space<vmem>>, vector<4x8x2x2xf32>
    tpu.vector_store %arg2[%c0_32, %c2_33, %c0_34, %c0_35], %8 {strides = array<i32>} : memref<4x12x20x20xf32, #tpu.memory_space<vmem>>, vector<4x8x2x2xf32>,
    %c0_36 = arith.constant 0 : index
    %c0_37 = arith.constant 0 : index
    %c14_38 = arith.constant 14 : index
    %c0_39 = arith.constant 0 : index
    %10 = vector.load %arg1[%c0_36, %c0_37, %c14_38, %c0_39] : memref<4x8x16x16xf32, #tpu.memory_space<vmem>>, vector<4x8x2x2xf32>
    %c0_40 = arith.constant 0 : index
    %c2_41 = arith.constant 2 : index
    %c0_42 = arith.constant 0 : index
    %c18_43 = arith.constant 18 : index
    %11 = vector.load %arg2[%c0_40, %c2_41, %c0_42, %c18_43] : memref<4x12x20x20xf32, #tpu.memory_space<vmem>>, vector<4x8x2x2xf32>
    tpu.vector_store %arg2[%c0_40, %c2_41, %c0_42, %c18_43], %10 {strides = array<i32>} : memref<4x12x20x20xf32, #tpu.memory_space<vmem>>, vector<4x8x2x2xf32>,
    %c0_44 = arith.constant 0 : index
    %c0_45 = arith.constant 0 : index
    %c0_46 = arith.constant 0 : index
    %c0_47 = arith.constant 0 : index
    %12 = vector.load %arg1[%c0_44, %c0_45, %c0_46, %c0_47] : memref<4x8x16x16xf32, #tpu.memory_space<vmem>>, vector<4x8x2x16xf32>
    %c0_48 = arith.constant 0 : index
    %c2_49 = arith.constant 2 : index
    %c18_50 = arith.constant 18 : index
    %c2_51 = arith.constant 2 : index
    %13 = vector.load %arg2[%c0_48, %c2_49, %c18_50, %c2_51] : memref<4x12x20x20xf32, #tpu.memory_space<vmem>>, vector<4x8x2x16xf32>
    tpu.vector_store %arg2[%c0_48, %c2_49, %c18_50, %c2_51], %12 {strides = array<i32>} : memref<4x12x20x20xf32, #tpu.memory_space<vmem>>, vector<4x8x2x16xf32>,
    %c0_52 = arith.constant 0 : index
    %c0_53 = arith.constant 0 : index
    %c0_54 = arith.constant 0 : index
    %c14_55 = arith.constant 14 : index
    %14 = vector.load %arg1[%c0_52, %c0_53, %c0_54, %c14_55] : memref<4x8x16x16xf32, #tpu.memory_space<vmem>>, vector<4x8x2x2xf32>
    %c0_56 = arith.constant 0 : index
    %c2_57 = arith.constant 2 : index
    %c18_58 = arith.constant 18 : index
    %c0_59 = arith.constant 0 : index
    %15 = vector.load %arg2[%c0_56, %c2_57, %c18_58, %c0_59] : memref<4x12x20x20xf32, #tpu.memory_space<vmem>>, vector<4x8x2x2xf32>
    tpu.vector_store %arg2[%c0_56, %c2_57, %c18_58, %c0_59], %14 {strides = array<i32>} : memref<4x12x20x20xf32, #tpu.memory_space<vmem>>, vector<4x8x2x2xf32>,
    %c0_60 = arith.constant 0 : index
    %c0_61 = arith.constant 0 : index
    %c0_62 = arith.constant 0 : index
    %c0_63 = arith.constant 0 : index
    %16 = vector.load %arg1[%c0_60, %c0_61, %c0_62, %c0_63] : memref<4x8x16x16xf32, #tpu.memory_space<vmem>>, vector<4x8x2x2xf32>
    %c0_64 = arith.constant 0 : index
    %c2_65 = arith.constant 2 : index
    %c18_66 = arith.constant 18 : index
    %c18_67 = arith.constant 18 : index
    %17 = vector.load %arg2[%c0_64, %c2_65, %c18_66, %c18_67] : memref<4x12x20x20xf32, #tpu.memory_space<vmem>>, vector<4x8x2x2xf32>
    tpu.vector_store %arg2[%c0_64, %c2_65, %c18_66, %c18_67], %16 {strides = array<i32>} : memref<4x12x20x20xf32, #tpu.memory_space<vmem>>, vector<4x8x2x2xf32>,
    %c0_68 = arith.constant 0 : index
    %c6 = arith.constant 6 : index
    %c0_69 = arith.constant 0 : index
    %c0_70 = arith.constant 0 : index
    %18 = vector.load %arg1[%c0_68, %c6, %c0_69, %c0_70] : memref<4x8x16x16xf32, #tpu.memory_space<vmem>>, vector<4x2x16x16xf32>
    %c0_71 = arith.constant 0 : index
    %c0_72 = arith.constant 0 : index
    %c2_73 = arith.constant 2 : index
    %c2_74 = arith.constant 2 : index
    %19 = vector.load %arg2[%c0_71, %c0_72, %c2_73, %c2_74] : memref<4x12x20x20xf32, #tpu.memory_space<vmem>>, vector<4x2x16x16xf32>
    tpu.vector_store %arg2[%c0_71, %c0_72, %c2_73, %c2_74], %18 {strides = array<i32>} : memref<4x12x20x20xf32, #tpu.memory_space<vmem>>, vector<4x2x16x16xf32>,
    %c0_75 = arith.constant 0 : index
    %c6_76 = arith.constant 6 : index
    %c0_77 = arith.constant 0 : index
    %c14_78 = arith.constant 14 : index
    %20 = vector.load %arg1[%c0_75, %c6_76, %c0_77, %c14_78] : memref<4x8x16x16xf32, #tpu.memory_space<vmem>>, vector<4x2x16x2xf32>
    %c0_79 = arith.constant 0 : index
    %c0_80 = arith.constant 0 : index
    %c2_81 = arith.constant 2 : index
    %c0_82 = arith.constant 0 : index
    %21 = vector.load %arg2[%c0_79, %c0_80, %c2_81, %c0_82] : memref<4x12x20x20xf32, #tpu.memory_space<vmem>>, vector<4x2x16x2xf32>
    tpu.vector_store %arg2[%c0_79, %c0_80, %c2_81, %c0_82], %20 {strides = array<i32>} : memref<4x12x20x20xf32, #tpu.memory_space<vmem>>, vector<4x2x16x2xf32>,
    %c0_83 = arith.constant 0 : index
    %c6_84 = arith.constant 6 : index
    %c0_85 = arith.constant 0 : index
    %c0_86 = arith.constant 0 : index
    %22 = vector.load %arg1[%c0_83, %c6_84, %c0_85, %c0_86] : memref<4x8x16x16xf32, #tpu.memory_space<vmem>>, vector<4x2x16x2xf32>
    %c0_87 = arith.constant 0 : index
    %c0_88 = arith.constant 0 : index
    %c2_89 = arith.constant 2 : index
    %c18_90 = arith.constant 18 : index
    %23 = vector.load %arg2[%c0_87, %c0_88, %c2_89, %c18_90] : memref<4x12x20x20xf32, #tpu.memory_space<vmem>>, vector<4x2x16x2xf32>
    tpu.vector_store %arg2[%c0_87, %c0_88, %c2_89, %c18_90], %22 {strides = array<i32>} : memref<4x12x20x20xf32, #tpu.memory_space<vmem>>, vector<4x2x16x2xf32>,
    %c0_91 = arith.constant 0 : index
    %c6_92 = arith.constant 6 : index
    %c14_93 = arith.constant 14 : index
    %c0_94 = arith.constant 0 : index
    %24 = vector.load %arg1[%c0_91, %c6_92, %c14_93, %c0_94] : memref<4x8x16x16xf32, #tpu.memory_space<vmem>>, vector<4x2x2x16xf32>
    %c0_95 = arith.constant 0 : index
    %c0_96 = arith.constant 0 : index
    %c0_97 = arith.constant 0 : index
    %c2_98 = arith.constant 2 : index
    %25 = vector.load %arg2[%c0_95, %c0_96, %c0_97, %c2_98] : memref<4x12x20x20xf32, #tpu.memory_space<vmem>>, vector<4x2x2x16xf32>
    tpu.vector_store %arg2[%c0_95, %c0_96, %c0_97, %c2_98], %24 {strides = array<i32>} : memref<4x12x20x20xf32, #tpu.memory_space<vmem>>, vector<4x2x2x16xf32>,
    %c0_99 = arith.constant 0 : index
    %c6_100 = arith.constant 6 : index
    %c14_101 = arith.constant 14 : index
    %c14_102 = arith.constant 14 : index
    %26 = vector.load %arg1[%c0_99, %c6_100, %c14_101, %c14_102] : memref<4x8x16x16xf32, #tpu.memory_space<vmem>>, vector<4x2x2x2xf32>
    %c0_103 = arith.constant 0 : index
    %c0_104 = arith.constant 0 : index
    %c0_105 = arith.constant 0 : index
    %c0_106 = arith.constant 0 : index
    %27 = vector.load %arg2[%c0_103, %c0_104, %c0_105, %c0_106] : memref<4x12x20x20xf32, #tpu.memory_space<vmem>>, vector<4x2x2x2xf32>
    tpu.vector_store %arg2[%c0_103, %c0_104, %c0_105, %c0_106], %26 {strides = array<i32>} : memref<4x12x20x20xf32, #tpu.memory_space<vmem>>, vector<4x2x2x2xf32>,
    %c0_107 = arith.constant 0 : index
    %c6_108 = arith.constant 6 : index
    %c14_109 = arith.constant 14 : index
    %c0_110 = arith.constant 0 : index
    %28 = vector.load %arg1[%c0_107, %c6_108, %c14_109, %c0_110] : memref<4x8x16x16xf32, #tpu.memory_space<vmem>>, vector<4x2x2x2xf32>
    %c0_111 = arith.constant 0 : index
    %c0_112 = arith.constant 0 : index
    %c0_113 = arith.constant 0 : index
    %c18_114 = arith.constant 18 : index
    %29 = vector.load %arg2[%c0_111, %c0_112, %c0_113, %c18_114] : memref<4x12x20x20xf32, #tpu.memory_space<vmem>>, vector<4x2x2x2xf32>
    tpu.vector_store %arg2[%c0_111, %c0_112, %c0_113, %c18_114], %28 {strides = array<i32>} : memref<4x12x20x20xf32, #tpu.memory_space<vmem>>, vector<4x2x2x2xf32>,
    %c0_115 = arith.constant 0 : index
    %c6_116 = arith.constant 6 : index
    %c0_117 = arith.constant 0 : index
    %c0_118 = arith.constant 0 : index
    %30 = vector.load %arg1[%c0_115, %c6_116, %c0_117, %c0_118] : memref<4x8x16x16xf32, #tpu.memory_space<vmem>>, vector<4x2x2x16xf32>
    %c0_119 = arith.constant 0 : index
    %c0_120 = arith.constant 0 : index
    %c18_121 = arith.constant 18 : index
    %c2_122 = arith.constant 2 : index
    %31 = vector.load %arg2[%c0_119, %c0_120, %c18_121, %c2_122] : memref<4x12x20x20xf32, #tpu.memory_space<vmem>>, vector<4x2x2x16xf32>
    tpu.vector_store %arg2[%c0_119, %c0_120, %c18_121, %c2_122], %30 {strides = array<i32>} : memref<4x12x20x20xf32, #tpu.memory_space<vmem>>, vector<4x2x2x16xf32>,
    %c0_123 = arith.constant 0 : index
    %c6_124 = arith.constant 6 : index
    %c0_125 = arith.constant 0 : index
    %c14_126 = arith.constant 14 : index
    %32 = vector.load %arg1[%c0_123, %c6_124, %c0_125, %c14_126] : memref<4x8x16x16xf32, #tpu.memory_space<vmem>>, vector<4x2x2x2xf32>
    %c0_127 = arith.constant 0 : index
    %c0_128 = arith.constant 0 : index
    %c18_129 = arith.constant 18 : index
    %c0_130 = arith.constant 0 : index
    %33 = vector.load %arg2[%c0_127, %c0_128, %c18_129, %c0_130] : memref<4x12x20x20xf32, #tpu.memory_space<vmem>>, vector<4x2x2x2xf32>
    tpu.vector_store %arg2[%c0_127, %c0_128, %c18_129, %c0_130], %32 {strides = array<i32>} : memref<4x12x20x20xf32, #tpu.memory_space<vmem>>, vector<4x2x2x2xf32>,
    %c0_131 = arith.constant 0 : index
    %c6_132 = arith.constant 6 : index
    %c0_133 = arith.constant 0 : index
    %c0_134 = arith.constant 0 : index
    %34 = vector.load %arg1[%c0_131, %c6_132, %c0_133, %c0_134] : memref<4x8x16x16xf32, #tpu.memory_space<vmem>>, vector<4x2x2x2xf32>
    %c0_135 = arith.constant 0 : index
    %c0_136 = arith.constant 0 : index
    %c18_137 = arith.constant 18 : index
    %c18_138 = arith.constant 18 : index
    %35 = vector.load %arg2[%c0_135, %c0_136, %c18_137, %c18_138] : memref<4x12x20x20xf32, #tpu.memory_space<vmem>>, vector<4x2x2x2xf32>
    tpu.vector_store %arg2[%c0_135, %c0_136, %c18_137, %c18_138], %34 {strides = array<i32>} : memref<4x12x20x20xf32, #tpu.memory_space<vmem>>, vector<4x2x2x2xf32>,
    %c0_139 = arith.constant 0 : index
    %c0_140 = arith.constant 0 : index
    %c0_141 = arith.constant 0 : index
    %c0_142 = arith.constant 0 : index
    %36 = vector.load %arg1[%c0_139, %c0_140, %c0_141, %c0_142] : memref<4x8x16x16xf32, #tpu.memory_space<vmem>>, vector<4x2x16x16xf32>
    %c0_143 = arith.constant 0 : index
    %c10 = arith.constant 10 : index
    %c2_144 = arith.constant 2 : index
    %c2_145 = arith.constant 2 : index
    %37 = vector.load %arg2[%c0_143, %c10, %c2_144, %c2_145] : memref<4x12x20x20xf32, #tpu.memory_space<vmem>>, vector<4x2x16x16xf32>
    tpu.vector_store %arg2[%c0_143, %c10, %c2_144, %c2_145], %36 {strides = array<i32>} : memref<4x12x20x20xf32, #tpu.memory_space<vmem>>, vector<4x2x16x16xf32>,
    %c0_146 = arith.constant 0 : index
    %c0_147 = arith.constant 0 : index
    %c0_148 = arith.constant 0 : index
    %c14_149 = arith.constant 14 : index
    %38 = vector.load %arg1[%c0_146, %c0_147, %c0_148, %c14_149] : memref<4x8x16x16xf32, #tpu.memory_space<vmem>>, vector<4x2x16x2xf32>
    %c0_150 = arith.constant 0 : index
    %c10_151 = arith.constant 10 : index
    %c2_152 = arith.constant 2 : index
    %c0_153 = arith.constant 0 : index
    %39 = vector.load %arg2[%c0_150, %c10_151, %c2_152, %c0_153] : memref<4x12x20x20xf32, #tpu.memory_space<vmem>>, vector<4x2x16x2xf32>
    tpu.vector_store %arg2[%c0_150, %c10_151, %c2_152, %c0_153], %38 {strides = array<i32>} : memref<4x12x20x20xf32, #tpu.memory_space<vmem>>, vector<4x2x16x2xf32>,
    %c0_154 = arith.constant 0 : index
    %c0_155 = arith.constant 0 : index
    %c0_156 = arith.constant 0 : index
    %c0_157 = arith.constant 0 : index
    %40 = vector.load %arg1[%c0_154, %c0_155, %c0_156, %c0_157] : memref<4x8x16x16xf32, #tpu.memory_space<vmem>>, vector<4x2x16x2xf32>
    %c0_158 = arith.constant 0 : index
    %c10_159 = arith.constant 10 : index
    %c2_160 = arith.constant 2 : index
    %c18_161 = arith.constant 18 : index
    %41 = vector.load %arg2[%c0_158, %c10_159, %c2_160, %c18_161] : memref<4x12x20x20xf32, #tpu.memory_space<vmem>>, vector<4x2x16x2xf32>
    tpu.vector_store %arg2[%c0_158, %c10_159, %c2_160, %c18_161], %40 {strides = array<i32>} : memref<4x12x20x20xf32, #tpu.memory_space<vmem>>, vector<4x2x16x2xf32>,
    %c0_162 = arith.constant 0 : index
    %c0_163 = arith.constant 0 : index
    %c14_164 = arith.constant 14 : index
    %c0_165 = arith.constant 0 : index
    %42 = vector.load %arg1[%c0_162, %c0_163, %c14_164, %c0_165] : memref<4x8x16x16xf32, #tpu.memory_space<vmem>>, vector<4x2x2x16xf32>
    %c0_166 = arith.constant 0 : index
    %c10_167 = arith.constant 10 : index
    %c0_168 = arith.constant 0 : index
    %c2_169 = arith.constant 2 : index
    %43 = vector.load %arg2[%c0_166, %c10_167, %c0_168, %c2_169] : memref<4x12x20x20xf32, #tpu.memory_space<vmem>>, vector<4x2x2x16xf32>
    tpu.vector_store %arg2[%c0_166, %c10_167, %c0_168, %c2_169], %42 {strides = array<i32>} : memref<4x12x20x20xf32, #tpu.memory_space<vmem>>, vector<4x2x2x16xf32>,
    %c0_170 = arith.constant 0 : index
    %c0_171 = arith.constant 0 : index
    %c14_172 = arith.constant 14 : index
    %c14_173 = arith.constant 14 : index
    %44 = vector.load %arg1[%c0_170, %c0_171, %c14_172, %c14_173] : memref<4x8x16x16xf32, #tpu.memory_space<vmem>>, vector<4x2x2x2xf32>
    %c0_174 = arith.constant 0 : index
    %c10_175 = arith.constant 10 : index
    %c0_176 = arith.constant 0 : index
    %c0_177 = arith.constant 0 : index
    %45 = vector.load %arg2[%c0_174, %c10_175, %c0_176, %c0_177] : memref<4x12x20x20xf32, #tpu.memory_space<vmem>>, vector<4x2x2x2xf32>
    tpu.vector_store %arg2[%c0_174, %c10_175, %c0_176, %c0_177], %44 {strides = array<i32>} : memref<4x12x20x20xf32, #tpu.memory_space<vmem>>, vector<4x2x2x2xf32>,
    %c0_178 = arith.constant 0 : index
    %c0_179 = arith.constant 0 : index
    %c14_180 = arith.constant 14 : index
    %c0_181 = arith.constant 0 : index
    %46 = vector.load %arg1[%c0_178, %c0_179, %c14_180, %c0_181] : memref<4x8x16x16xf32, #tpu.memory_space<vmem>>, vector<4x2x2x2xf32>
    %c0_182 = arith.constant 0 : index
    %c10_183 = arith.constant 10 : index
    %c0_184 = arith.constant 0 : index
    %c18_185 = arith.constant 18 : index
    %47 = vector.load %arg2[%c0_182, %c10_183, %c0_184, %c18_185] : memref<4x12x20x20xf32, #tpu.memory_space<vmem>>, vector<4x2x2x2xf32>
    tpu.vector_store %arg2[%c0_182, %c10_183, %c0_184, %c18_185], %46 {strides = array<i32>} : memref<4x12x20x20xf32, #tpu.memory_space<vmem>>, vector<4x2x2x2xf32>,
    %c0_186 = arith.constant 0 : index
    %c0_187 = arith.constant 0 : index
    %c0_188 = arith.constant 0 : index
    %c0_189 = arith.constant 0 : index
    %48 = vector.load %arg1[%c0_186, %c0_187, %c0_188, %c0_189] : memref<4x8x16x16xf32, #tpu.memory_space<vmem>>, vector<4x2x2x16xf32>
    %c0_190 = arith.constant 0 : index
    %c10_191 = arith.constant 10 : index
    %c18_192 = arith.constant 18 : index
    %c2_193 = arith.constant 2 : index
    %49 = vector.load %arg2[%c0_190, %c10_191, %c18_192, %c2_193] : memref<4x12x20x20xf32, #tpu.memory_space<vmem>>, vector<4x2x2x16xf32>
    tpu.vector_store %arg2[%c0_190, %c10_191, %c18_192, %c2_193], %48 {strides = array<i32>} : memref<4x12x20x20xf32, #tpu.memory_space<vmem>>, vector<4x2x2x16xf32>,
    %c0_194 = arith.constant 0 : index
    %c0_195 = arith.constant 0 : index
    %c0_196 = arith.constant 0 : index
    %c14_197 = arith.constant 14 : index
    %50 = vector.load %arg1[%c0_194, %c0_195, %c0_196, %c14_197] : memref<4x8x16x16xf32, #tpu.memory_space<vmem>>, vector<4x2x2x2xf32>
    %c0_198 = arith.constant 0 : index
    %c10_199 = arith.constant 10 : index
    %c18_200 = arith.constant 18 : index
    %c0_201 = arith.constant 0 : index
    %51 = vector.load %arg2[%c0_198, %c10_199, %c18_200, %c0_201] : memref<4x12x20x20xf32, #tpu.memory_space<vmem>>, vector<4x2x2x2xf32>
    tpu.vector_store %arg2[%c0_198, %c10_199, %c18_200, %c0_201], %50 {strides = array<i32>} : memref<4x12x20x20xf32, #tpu.memory_space<vmem>>, vector<4x2x2x2xf32>,
    %c0_202 = arith.constant 0 : index
    %c0_203 = arith.constant 0 : index
    %c0_204 = arith.constant 0 : index
    %c0_205 = arith.constant 0 : index
    %52 = vector.load %arg1[%c0_202, %c0_203, %c0_204, %c0_205] : memref<4x8x16x16xf32, #tpu.memory_space<vmem>>, vector<4x2x2x2xf32>
    %c0_206 = arith.constant 0 : index
    %c10_207 = arith.constant 10 : index
    %c18_208 = arith.constant 18 : index
    %c18_209 = arith.constant 18 : index
    %53 = vector.load %arg2[%c0_206, %c10_207, %c18_208, %c18_209] : memref<4x12x20x20xf32, #tpu.memory_space<vmem>>, vector<4x2x2x2xf32>
    tpu.vector_store %arg2[%c0_206, %c10_207, %c18_208, %c18_209], %52 {strides = array<i32>} : memref<4x12x20x20xf32, #tpu.memory_space<vmem>>, vector<4x2x2x2xf32>,
    return
  }
  func.func @transform_0(%arg0: i32) -> (i32, i32, i32, i32) {
    %c0_i32 = arith.constant 0 : i32
    %c0_i32_0 = arith.constant 0 : i32
    %c0_i32_1 = arith.constant 0 : i32
    %c0_i32_2 = arith.constant 0 : i32
    return %arg0, %c0_i32, %c0_i32_0, %c0_i32_1 : i32, i32, i32, i32
  }
  func.func @transform_1(%arg0: i32) -> (i32, i32, i32, i32) {
    %c0_i32 = arith.constant 0 : i32
    %c0_i32_0 = arith.constant 0 : i32
    %c0_i32_1 = arith.constant 0 : i32
    %c0_i32_2 = arith.constant 0 : i32
    return %arg0, %c0_i32, %c0_i32_0, %c0_i32_1 : i32, i32, i32, i32
  }
}

</mosaic_0001>

<bundles_post_ra>
// kernel: tpu_custom_call.1
= control target key start
LH: loop header
LB: loop body
LE: loop exit
PB: predicated region body
PF: predicated region fallthrough
CT: control target
= control target key end

     0   :  { %6 = vsyncpa [#allocation3], 0  ;;  %s7089_s0 = inlined_call_operand.hbm [shape: f32[8,8,16,16], index: 0, kind: input, shape index: {}]   ;;  %s7090_s1 = inlined_call_operand.vmem [shape: f32[8,12,20,20], index: 1, kind: output, shape index: {}]  }
   0x1   :  { %8 = vsyncpa [#allocation3 + $0x1], 0  ;;  %s4393_s6 = smov 0   ;;  %s4395_s7 = smov 0  }
   0x2   :  { %s4397_s8 = smov 0   ;;  %s4399_s9 = smov 0  }
   0x3 LB: > { %s3676_s10 = sadd.s32 4294967295, %s4375_s9   ;;  %s4413_s11 = sadd.s32 1, %s4375_s9   ;;  %s4375_s9 = sphi %s4399_s9, %s7111_s9   ;;  %s4371_s8 = sphi %s4397_s8, %s7110_s8   ;;  %s4367_s7 = sphi %s4395_s7, %s7109_s7   ;;  %s4363_s6 = sphi %s4393_s6, %s7108_s6  }
   0x4   : > { %s18_s12 = ssub.s32 %s4375_s9, %s4413_s11  ;;  %s21_s13 = sadd.s32 1, %s4371_s8 }
   0x5   : > { %p19_p0 = scmp.eq.s32.totalorder %s18_s12, 0  ;;  %p28_p1 = scmp.ne.s32.totalorder %s4371_s8, %s4367_s7 }
   0x6   : > { %p29_p2 = scmp.eq.s32.totalorder %s4375_s9, 0  ;;  %p34_p3 = scmp.ne.s32.totalorder %s4367_s7, %s4363_s6 }
   0x7   : > { %s4423_s14 = scalar_select %p19_p0, %s4371_s8, %s21_s13  }
   0x8   : > { %p30_p4 = por %p29_p2, %p28_p1  ;;  %p35_p5 = scmp.eq.s32.totalorder %s3676_s10, 0 }
   0x9   : > { %p4275_p6 = scmp.lt.s32.totalorder %s4375_s9, 2  ;;  %s84_s16 = sand.u32 1, %s4371_s8  }
   0xa   : > { %p4428_p7 = por %p35_p5, %p34_p3  ;;  %s3680_s17 = sshll.u32 %s84_s16, 9 }
   0xb   : > { %s4267_s18 = sshll.u32 %s4375_s9, 13  ;;  %s88_s22 = scalar_lea.vmem [#allocation2], %s3680_s17 }
   0xc   : > { %s7096_s15 = scalar_select %p4428_p7, 1, 0 }
   0xd   : > { %s4437_s21 = scalar_lea.hbm %s7089_s0, %s4267_s18  ;;  %s96_s23 = sshll.u32 %s88_s22, 4  ;;  %s4439_s23 = int_to_ptr.vmem [resolvable:$true] %s96_s23 }
   0xe   : > { %p4441_p8 = pnand %p4275_p6, %p30_p4  ;;  %s4446_s25 = scalar_lea.sflag [#allocation3], %s84_s16 }
   0xf   : > { %s4313_s26 = scalar_lea.hbm %s4437_s21, 8192  ;;  %s4318_s29 = scalar_lea.hbm %s7089_s0, 16384 }
  0x10   : > { %p4314_p10 = scmp.ne.s32.totalorder %s4437_s21, %s4313_s26  ;;  %p4315_p11 = pneg %p4441_p8 }
  0x11   : > { %p4319_p0 = scmp.lt.s32.totalorder %s4437_s21, %s7089_s0  ;;  %p4320_p1 = scmp.lt.s32.totalorder %s4318_s29, %s4313_s26 }
  0x12   : > { %p4316_p12 = pnand %p4315_p11, %p4314_p10 }
  0x13   : > { %p4321_p2 = por %p4320_p1, %p4319_p0 }
  0x14   : > { %p4317_p13 = pneg %p4316_p12 }
  0x16   : > { %p4322_p3 = pnand %p4321_p2, %p4317_p13 }
  0x18   : > { %4325 = shalt.err (!%p4322_p3)
}
  0x19   : > { %s4326_s3 = scalar_lea.vmem %s4439_s23, 8192  ;;  %s4377_s4 = smov [#allocation2]  }
  0x1a   : > { %p4327_p4 = scmp.ne.s32.totalorder %s4439_s23, %s4326_s3  ;;  %s4331_s5 = sshll.u32 %s4377_s4, 4  ;;  %s4332_s5 = int_to_ptr.vmem [resolvable:$false] %s4331_s5 }
  0x1b   : > { %s4333_s6 = scalar_lea.vmem %s4332_s5, 16384  ;;  %p4334_p10 = scmp.lt.s32.totalorder %s4439_s23, %s4332_s5 }
  0x1c   : > { %p4329_p5 = pnand %p4327_p4, %p4315_p11  ;;  %p4335_p12 = scmp.lt.s32.totalorder %s4333_s6, %s4326_s3 }
  0x1e   : > { %p4330_p6 = pneg %p4329_p5  ;;  %p4336_p9 = por %p4335_p12, %p4334_p10 }
  0x20   : > { %p4337_p7 = pnand %p4336_p9, %p4330_p6 }
  0x22   : > { %4340 = shalt.err (!%p4337_p7)
}
  0x23   : > { %s4378_s12 = smov 128   ;;  %s4379_s13 = smov 8  }
  0x24   : > { %4274 = dma.hbm_to_vmem [thread:$0]  (!%p4441_p8), %s4437_s21, 8192, %s4439_s23, %s4446_s25, %s4378_s12, %s4378_s12, %s4379_s13  }
  0x25   : > { %p104_p11 = scmp.lt.s32.totalorder %s4375_s9, 3  ;;  %p7098_p13 = scmp.ge.s32.totalorder %s4375_s9, 1 }
  0x27   : > { %p105_p0 = pnand %p7098_p13, %p104_p11 }
  0x29   : > { %108 = sbr.rel (%p105_p0) target bundleno = 1315 (0x523), region = 24 }
  0x2e   : > { %s110_s16 = sand.u32 1, %s4367_s7   ;;  %p7099_p7 = scmp.ne.s32.totalorder %s7096_s15, 0 }
  0x2f   : > { %s3685_s17 = sshll.u32 %s110_s16, 9  ;;  %s111_s18 = scalar_lea.sflag [#allocation3], %s110_s16 }
  0x30   : > { %s4471_s19 = scalar_lea.vmem [#allocation2], %s3685_s17 }
  0x31   : > { %4358 = dma.done.wait (%p7099_p7), %s111_s18, 8192  }
  0x32   : > { %4360 = vsyncadd (%p7099_p7), %s111_s18, 4294959104  ;;  %v4478_v0 = vld [vmem:[%s4471_s19 + $0x10] sm:$0xff]  ;;  %v4481_v1 = vld [vmem:[%s4471_s19] sm:$0xff]  ;;  %s4380_s20 = smov 2   ;;  %s3686_s15 = sshll.u32 %s3676_s10, 2  ;;  %vm463_vm0 = vcmask 146448  }
  0x33   : > { %274 = vrot.lane.b32.xlu1 %v4478_v0, %s4380_s20  ;;  %270 = vrot.lane.b32.xlu0 %v4481_v1, %s4380_s20  ;;  %v4488_v2 = vld [vmem:[%s4471_s19 + $0x18] sm:$0xff]  ;;  %v4491_v3 = vld [vmem:[%s4471_s19 + $0x8] sm:$0xff]  ;;  %p136_p8 = scmp.lt.s32.totalorder %s3686_s15, 7  ;;  %s4381_s23 = smov 114   ;;  %vm848_vm1 = vcmask 15360   ;;  %vm1233_vm2 = vcmask 162960  }
  0x34   : > { %v4498_v4 = vld [vmem:[%s4471_s19 + $0x28] sm:$0xff]  ;;  %v4501_v5 = vld [vmem:[%s4471_s19 + $0x20] sm:$0xff]  ;;  %v4508_v6 = vld [vmem:[%s4471_s19 + $0x38] sm:$0xff]  ;;  %s4382_s24 = smov 18   ;;  %vm1458_vm3 = vcmask 140304   ;;  %vm1651_vm4 = vcmask 9216  }
  0x35   : > { %v4511_v7 = vld [vmem:[%s4471_s19 + $0x30] sm:$0xff]  ;;  %v4518_v8 = vld [vmem:[%s4471_s19 + $0x48] sm:$0xff]  ;;  %v4521_v9 = vld [vmem:[%s4471_s19 + $0x40] sm:$0xff]  ;;  %s7113_s15 = smov (!%p136_p8, %s3686_s15), 7  ;;  %vm1844_vm5 = vcmask 156816  }
  0x36   : > { %v4528_v10 = vld [vmem:[%s4471_s19 + $0x58] sm:$0xff]  ;;  %v4531_v11 = vld [vmem:[%s4471_s19 + $0x50] sm:$0xff]  ;;  %v4538_v12 = vld [vmem:[%s4471_s19 + $0x68] sm:$0xff]  ;;  %s4268_s9 = smul.u32 288, %s7113_s15 }
  0x37   : > { %276 = vrot.lane.b32.xlu1 %v4488_v2, %s4380_s20  ;;  %272 = vrot.lane.b32.xlu0 %v4491_v3, %s4380_s20  ;;  %v4541_v13 = vld [vmem:[%s4471_s19 + $0x60] sm:$0xff]  ;;  %v4548_v14 = vld [vmem:[%s4471_s19 + $0x78] sm:$0xff] }
  0x38   : > { %v4551_v15 = vld [vmem:[%s4471_s19 + $0x70] sm:$0xff]  ;;  %v4558_v16 = vld [vmem:[%s4471_s19 + $0x88] sm:$0xff]  ;;  %v4561_v17 = vld [vmem:[%s4471_s19 + $0x80] sm:$0xff]  ;;  %s4772_s22 = scalar_lea.vmem %s7090_s1, %s4268_s9 }
  0x39   : > { %v4568_v18 = vld [vmem:[%s4471_s19 + $0x98] sm:$0xff]  ;;  %v4571_v19 = vld [vmem:[%s4471_s19 + $0x90] sm:$0xff]  ;;  %v4578_v20 = vld [vmem:[%s4471_s19 + $0xa8] sm:$0xff] }
  0x3a   : > { %v4581_v21 = vld [vmem:[%s4471_s19 + $0xa0] sm:$0xff]  ;;  %v4588_v22 = vld [vmem:[%s4471_s19 + $0xb8] sm:$0xff]  ;;  %v4591_v23 = vld [vmem:[%s4471_s19 + $0xb0] sm:$0xff] }
  0x3b   : > { %280 = vrot.lane.b32.xlu1 %v4498_v4, %s4380_s20  ;;  %278 = vrot.lane.b32.xlu0 %v4501_v5, %s4380_s20  ;;  %v4598_v24 = vld [vmem:[%s4471_s19 + $0xc8] sm:$0xff]  ;;  %v4601_v25 = vld [vmem:[%s4471_s19 + $0xc0] sm:$0xff] }
  0x3c   : > { %v4608_v26 = vld [vmem:[%s4471_s19 + $0xd8] sm:$0xff]  ;;  %v4611_v27 = vld [vmem:[%s4471_s19 + $0xd0] sm:$0xff]  ;;  %v4618_v28 = vld [vmem:[%s4471_s19 + $0xe8] sm:$0xff] }
  0x3d   : > { %v4621_v29 = vld [vmem:[%s4471_s19 + $0xe0] sm:$0xff]  ;;  %v4628_v30 = vld [vmem:[%s4471_s19 + $0xf8] sm:$0xff]  ;;  %v4631_v31 = vld [vmem:[%s4471_s19 + $0xf0] sm:$0xff] }
  0x3e   : > { %v4638_v32 = vld [vmem:[%s4471_s19 + $0x108] sm:$0xff]  ;;  %v4641_v33 = vld [vmem:[%s4471_s19 + $0x100] sm:$0xff]  ;;  %v4648_v34 = vld [vmem:[%s4471_s19 + $0x118] sm:$0xff] }
  0x3f   : > { %284 = vrot.lane.b32.xlu1 %v4508_v6, %s4380_s20  ;;  %282 = vrot.lane.b32.xlu0 %v4511_v7, %s4380_s20  ;;  %v4651_v35 = vld [vmem:[%s4471_s19 + $0x110] sm:$0xff]  ;;  %v4658_v36 = vld [vmem:[%s4471_s19 + $0x128] sm:$0xff] }
  0x40   : > { %v4661_v37 = vld [vmem:[%s4471_s19 + $0x120] sm:$0xff]  ;;  %v4668_v38 = vld [vmem:[%s4471_s19 + $0x138] sm:$0xff]  ;;  %v4671_v39 = vld [vmem:[%s4471_s19 + $0x130] sm:$0xff] }
  0x41   : > { %v4678_v40 = vld [vmem:[%s4471_s19 + $0x148] sm:$0xff]  ;;  %v4681_v41 = vld [vmem:[%s4471_s19 + $0x140] sm:$0xff]  ;;  %v4688_v42 = vld [vmem:[%s4471_s19 + $0x158] sm:$0xff] }
  0x42   : > { %v4691_v43 = vld [vmem:[%s4471_s19 + $0x150] sm:$0xff]  ;;  %v4698_v44 = vld [vmem:[%s4471_s19 + $0x168] sm:$0xff]  ;;  %v4701_v45 = vld [vmem:[%s4471_s19 + $0x160] sm:$0xff] }
  0x43   : > { %288 = vrot.lane.b32.xlu1 %v4518_v8, %s4380_s20  ;;  %286 = vrot.lane.b32.xlu0 %v4521_v9, %s4380_s20  ;;  %v4708_v46 = vld [vmem:[%s4471_s19 + $0x178] sm:$0xff]  ;;  %v4711_v47 = vld [vmem:[%s4471_s19 + $0x170] sm:$0xff] }
  0x44   : > { %v4718_v48 = vld [vmem:[%s4471_s19 + $0x188] sm:$0xff]  ;;  %v4721_v49 = vld [vmem:[%s4471_s19 + $0x180] sm:$0xff]  ;;  %v4728_v50 = vld [vmem:[%s4471_s19 + $0x198] sm:$0xff] }
  0x45   : > { %v4731_v51 = vld [vmem:[%s4471_s19 + $0x190] sm:$0xff]  ;;  %v4740_v52 = vld [vmem:[%s4471_s19 + $0x1a8] sm:$0xff]  ;;  %v4743_v53 = vld [vmem:[%s4471_s19 + $0x1a0] sm:$0xff] }
  0x46   : > { %v4750_v54 = vld [vmem:[%s4471_s19 + $0x1b8] sm:$0xff]  ;;  %v4753_v55 = vld [vmem:[%s4471_s19 + $0x1b0] sm:$0xff]  ;;  %v4760_v56 = vld [vmem:[%s4471_s19 + $0x1c8] sm:$0xff] }
  0x47   : > { %292 = vrot.lane.b32.xlu1 %v4528_v10, %s4380_s20  ;;  %290 = vrot.lane.b32.xlu0 %v4531_v11, %s4380_s20  ;;  %7100 = vst [vmem:[#allocation5_spill] sm:$0xff] %v4760_v56  ;;  %v4763_v57 = vld [vmem:[%s4471_s19 + $0x1c0] sm:$0xff]  ;;  %v4775_v58 = vld [vmem:[%s4471_s19 + $0x1d8] sm:$0xff] }
  0x48   : > { %7101 = vst [vmem:[#allocation6_spill] sm:$0xff] %v4763_v57  ;;  %7102 = vst [vmem:[#allocation7_spill] sm:$0xff] %v4775_v58  ;;  %v4778_v59 = vld [vmem:[%s4471_s19 + $0x1d0] sm:$0xff]  ;;  %v4789_v62 = vld [vmem:[%s4471_s19 + $0x1e8] sm:$0xff] }
  0x49   : > { %7103 = vst [vmem:[#allocation8_spill] sm:$0xff] %v4778_v59  ;;  %v4792_v63 = vld [vmem:[%s4471_s19 + $0x1e0] sm:$0xff] }
  0x4b   : > { %296 = vrot.lane.b32.xlu1 %v4538_v12, %s4380_s20  ;;  %294 = vrot.lane.b32.xlu0 %v4541_v13, %s4380_s20 }
  0x4f   : > { %300 = vrot.lane.b32.xlu1 %v4548_v14, %s4380_s20  ;;  %298 = vrot.lane.b32.xlu0 %v4551_v15, %s4380_s20 }
  0x53   : > { %304 = vrot.lane.b32.xlu1 %v4558_v16, %s4380_s20  ;;  %302 = vrot.lane.b32.xlu0 %v4561_v17, %s4380_s20 }
  0x57   : > { %308 = vrot.lane.b32.xlu1 %v4568_v18, %s4380_s20  ;;  %306 = vrot.lane.b32.xlu0 %v4571_v19, %s4380_s20 }
  0x5b   : > { %312 = vrot.lane.b32.xlu1 %v4578_v20, %s4380_s20  ;;  %310 = vrot.lane.b32.xlu0 %v4581_v21, %s4380_s20 }
  0x5f   : > { %316 = vrot.lane.b32.xlu1 %v4588_v22, %s4380_s20  ;;  %314 = vrot.lane.b32.xlu0 %v4591_v23, %s4380_s20 }
  0x63   : > { %320 = vrot.lane.b32.xlu1 %v4598_v24, %s4380_s20  ;;  %318 = vrot.lane.b32.xlu0 %v4601_v25, %s4380_s20 }
  0x67   : > { %324 = vrot.lane.b32.xlu1 %v4608_v26, %s4380_s20  ;;  %322 = vrot.lane.b32.xlu0 %v4611_v27, %s4380_s20 }
  0x6b   : > { %328 = vrot.lane.b32.xlu1 %v4618_v28, %s4380_s20  ;;  %326 = vrot.lane.b32.xlu0 %v4621_v29, %s4380_s20 }
  0x6f   : > { %332 = vrot.lane.b32.xlu1 %v4628_v30, %s4380_s20  ;;  %330 = vrot.lane.b32.xlu0 %v4631_v31, %s4380_s20 }
  0x73   : > { %336 = vrot.lane.b32.xlu1 %v4638_v32, %s4380_s20  ;;  %334 = vrot.lane.b32.xlu0 %v4641_v33, %s4380_s20 }
  0x77   : > { %340 = vrot.lane.b32.xlu1 %v4648_v34, %s4380_s20  ;;  %338 = vrot.lane.b32.xlu0 %v4651_v35, %s4380_s20 }
  0x7b   : > { %344 = vrot.lane.b32.xlu1 %v4658_v36, %s4380_s20  ;;  %342 = vrot.lane.b32.xlu0 %v4661_v37, %s4380_s20 }
  0x7f   : > { %348 = vrot.lane.b32.xlu1 %v4668_v38, %s4380_s20  ;;  %346 = vrot.lane.b32.xlu0 %v4671_v39, %s4380_s20 }
  0x83   : > { %352 = vrot.lane.b32.xlu1 %v4678_v40, %s4380_s20  ;;  %350 = vrot.lane.b32.xlu0 %v4681_v41, %s4380_s20 }
  0x87   : > { %356 = vrot.lane.b32.xlu1 %v4688_v42, %s4380_s20  ;;  %354 = vrot.lane.b32.xlu0 %v4691_v43, %s4380_s20 }
  0x8b   : > { %360 = vrot.lane.b32.xlu1 %v4698_v44, %s4380_s20  ;;  %358 = vrot.lane.b32.xlu0 %v4701_v45, %s4380_s20 }
  0x8f   : > { %364 = vrot.lane.b32.xlu1 %v4708_v46, %s4380_s20  ;;  %362 = vrot.lane.b32.xlu0 %v4711_v47, %s4380_s20 }
  0x93   : > { %368 = vrot.lane.b32.xlu1 %v4718_v48, %s4380_s20  ;;  %366 = vrot.lane.b32.xlu0 %v4721_v49, %s4380_s20 }
  0x97   : > { %372 = vrot.lane.b32.xlu1 %v4728_v50, %s4380_s20  ;;  %370 = vrot.lane.b32.xlu0 %v4731_v51, %s4380_s20 }
  0x9b   : > { %376 = vrot.lane.b32.xlu1 %v4740_v52, %s4380_s20  ;;  %374 = vrot.lane.b32.xlu0 %v4743_v53, %s4380_s20 }
  0x9f   : > { %380 = vrot.lane.b32.xlu1 %v4750_v54, %s4380_s20  ;;  %378 = vrot.lane.b32.xlu0 %v4753_v55, %s4380_s20 }
  0xa3   : > { %384 = vrot.lane.b32.xlu1 %v4760_v56, %s4380_s20  ;;  %382 = vrot.lane.b32.xlu0 %v4763_v57, %s4380_s20 }
  0xa5   : > { %v275_v60 = vpop.permute.xlu1 %274  ;;  %v271_v61 = vpop.permute.xlu0 %270 }
  0xa6   : > { %3690 = vst.msk [vmem:[%s4772_s22 + $0x4a] sm:$0xff] %vm463_vm0, %v275_v60  ;;  %3688 = vst.msk [vmem:[%s4772_s22 + $0x32] sm:$0xff] %vm463_vm0, %v271_v61  ;;  %v4803_v60 = vld [vmem:[%s4471_s19 + $0x1f8] sm:$0xff]  ;;  %v4806_v61 = vld [vmem:[%s4471_s19 + $0x1f0] sm:$0xff] }
  0xa7   : > { %388 = vrot.lane.b32.xlu1 %v4775_v58, %s4380_s20  ;;  %386 = vrot.lane.b32.xlu0 %v4778_v59, %s4380_s20 }
  0xa9   : > { %v277_v57 = vpop.permute.xlu1 %276  ;;  %v273_v56 = vpop.permute.xlu0 %272 }
  0xaa   : > { %3691 = vst.msk [vmem:[%s4772_s22 + $0x52] sm:$0xff] %vm463_vm0, %v277_v57  ;;  %3689 = vst.msk [vmem:[%s4772_s22 + $0x3a] sm:$0xff] %vm463_vm0, %v273_v56 }
  0xab   : > { %392 = vrot.lane.b32.xlu1 %v4789_v62, %s4380_s20  ;;  %390 = vrot.lane.b32.xlu0 %v4792_v63, %s4380_s20 }
  0xad   : > { %v281_v59 = vpop.permute.xlu1 %280  ;;  %v279_v58 = vpop.permute.xlu0 %278 }
  0xae   : > { %3693 = vst.msk [vmem:[%s4772_s22 + $0x6a] sm:$0xff] %vm463_vm0, %v281_v59  ;;  %3692 = vst.msk [vmem:[%s4772_s22 + $0x62] sm:$0xff] %vm463_vm0, %v279_v58 }
  0xaf   : > { %396 = vrot.lane.b32.xlu1 %v4803_v60, %s4380_s20  ;;  %394 = vrot.lane.b32.xlu0 %v4806_v61, %s4380_s20 }
  0xb1   : > { %v285_v56 = vpop.permute.xlu1 %284  ;;  %v283_v57 = vpop.permute.xlu0 %282 }
  0xb2   : > { %3695 = vst.msk [vmem:[%s4772_s22 + $0x82] sm:$0xff] %vm463_vm0, %v285_v56  ;;  %3694 = vst.msk [vmem:[%s4772_s22 + $0x7a] sm:$0xff] %vm463_vm0, %v283_v57 }
  0xb3   : > { %658 = vrot.lane.b32.xlu1 %v4491_v3, %s4381_s23  ;;  %656 = vrot.lane.b32.xlu0 %v4481_v1, %s4381_s23 }
  0xb5   : > { %v289_v58 = vpop.permute.xlu1 %288  ;;  %v287_v59 = vpop.permute.xlu0 %286 }
  0xb6   : > { %3697 = vst.msk [vmem:[%s4772_s22 + $0x9a] sm:$0xff] %vm463_vm0, %v289_v58  ;;  %3696 = vst.msk [vmem:[%s4772_s22 + $0x92] sm:$0xff] %vm463_vm0, %v287_v59 }
  0xb7   : > { %662 = vrot.lane.b32.xlu1 %v4488_v2, %s4381_s23  ;;  %660 = vrot.lane.b32.xlu0 %v4478_v0, %s4381_s23 }
  0xb9   : > { %v293_v56 = vpop.permute.xlu1 %292  ;;  %v291_v57 = vpop.permute.xlu0 %290 }
  0xba   : > { %3699 = vst.msk [vmem:[%s4772_s22 + $0xb2] sm:$0xff] %vm463_vm0, %v293_v56  ;;  %3698 = vst.msk [vmem:[%s4772_s22 + $0xaa] sm:$0xff] %vm463_vm0, %v291_v57 }
  0xbb   : > { %666 = vrot.lane.b32.xlu1 %v4498_v4, %s4381_s23  ;;  %664 = vrot.lane.b32.xlu0 %v4501_v5, %s4381_s23 }
  0xbd   : > { %v297_v58 = vpop.permute.xlu1 %296  ;;  %v295_v59 = vpop.permute.xlu0 %294 }
  0xbe   : > { %3701 = vst.msk [vmem:[%s4772_s22 + $0xca] sm:$0xff] %vm463_vm0, %v297_v58  ;;  %3700 = vst.msk [vmem:[%s4772_s22 + $0xc2] sm:$0xff] %vm463_vm0, %v295_v59 }
  0xbf   : > { %670 = vrot.lane.b32.xlu1 %v4508_v6, %s4381_s23  ;;  %668 = vrot.lane.b32.xlu0 %v4511_v7, %s4381_s23 }
  0xc1   : > { %v301_v56 = vpop.permute.xlu1 %300  ;;  %v299_v57 = vpop.permute.xlu0 %298 }
  0xc2   : > { %3703 = vst.msk [vmem:[%s4772_s22 + $0xe2] sm:$0xff] %vm463_vm0, %v301_v56  ;;  %3702 = vst.msk [vmem:[%s4772_s22 + $0xda] sm:$0xff] %vm463_vm0, %v299_v57 }
  0xc3   : > { %674 = vrot.lane.b32.xlu1 %v4518_v8, %s4381_s23  ;;  %672 = vrot.lane.b32.xlu0 %v4521_v9, %s4381_s23 }
  0xc5   : > { %v305_v58 = vpop.permute.xlu1 %304  ;;  %v303_v59 = vpop.permute.xlu0 %302 }
  0xc6   : > { %3705 = vst.msk [vmem:[%s4772_s22 + $0x15a] sm:$0xff] %vm463_vm0, %v305_v58  ;;  %3704 = vst.msk [vmem:[%s4772_s22 + $0x152] sm:$0xff] %vm463_vm0, %v303_v59 }
  0xc7   : > { %678 = vrot.lane.b32.xlu1 %v4528_v10, %s4381_s23  ;;  %676 = vrot.lane.b32.xlu0 %v4531_v11, %s4381_s23 }
  0xc9   : > { %v309_v56 = vpop.permute.xlu1 %308  ;;  %v307_v57 = vpop.permute.xlu0 %306 }
  0xca   : > { %3707 = vst.msk [vmem:[%s4772_s22 + $0x172] sm:$0xff] %vm463_vm0, %v309_v56  ;;  %3706 = vst.msk [vmem:[%s4772_s22 + $0x16a] sm:$0xff] %vm463_vm0, %v307_v57 }
  0xcb   : > { %682 = vrot.lane.b32.xlu1 %v4538_v12, %s4381_s23  ;;  %680 = vrot.lane.b32.xlu0 %v4541_v13, %s4381_s23 }
  0xcd   : > { %v313_v58 = vpop.permute.xlu1 %312  ;;  %v311_v59 = vpop.permute.xlu0 %310 }
  0xce   : > { %3709 = vst.msk [vmem:[%s4772_s22 + $0x18a] sm:$0xff] %vm463_vm0, %v313_v58  ;;  %3708 = vst.msk [vmem:[%s4772_s22 + $0x182] sm:$0xff] %vm463_vm0, %v311_v59 }
  0xcf   : > { %686 = vrot.lane.b32.xlu1 %v4548_v14, %s4381_s23  ;;  %684 = vrot.lane.b32.xlu0 %v4551_v15, %s4381_s23 }
  0xd1   : > { %v317_v56 = vpop.permute.xlu1 %316  ;;  %v315_v57 = vpop.permute.xlu0 %314 }
  0xd2   : > { %3711 = vst.msk [vmem:[%s4772_s22 + $0x1a2] sm:$0xff] %vm463_vm0, %v317_v56  ;;  %3710 = vst.msk [vmem:[%s4772_s22 + $0x19a] sm:$0xff] %vm463_vm0, %v315_v57 }
  0xd3   : > { %690 = vrot.lane.b32.xlu1 %v4558_v16, %s4381_s23  ;;  %688 = vrot.lane.b32.xlu0 %v4561_v17, %s4381_s23 }
  0xd5   : > { %v321_v58 = vpop.permute.xlu1 %320  ;;  %v319_v59 = vpop.permute.xlu0 %318 }
  0xd6   : > { %3713 = vst.msk [vmem:[%s4772_s22 + $0x1ba] sm:$0xff] %vm463_vm0, %v321_v58  ;;  %3712 = vst.msk [vmem:[%s4772_s22 + $0x1b2] sm:$0xff] %vm463_vm0, %v319_v59 }
  0xd7   : > { %694 = vrot.lane.b32.xlu1 %v4568_v18, %s4381_s23  ;;  %692 = vrot.lane.b32.xlu0 %v4571_v19, %s4381_s23 }
  0xd9   : > { %v325_v56 = vpop.permute.xlu1 %324  ;;  %v323_v57 = vpop.permute.xlu0 %322 }
  0xda   : > { %3715 = vst.msk [vmem:[%s4772_s22 + $0x1d2] sm:$0xff] %vm463_vm0, %v325_v56  ;;  %3714 = vst.msk [vmem:[%s4772_s22 + $0x1ca] sm:$0xff] %vm463_vm0, %v323_v57 }
  0xdb   : > { %698 = vrot.lane.b32.xlu1 %v4578_v20, %s4381_s23  ;;  %696 = vrot.lane.b32.xlu0 %v4581_v21, %s4381_s23 }
  0xdd   : > { %v329_v58 = vpop.permute.xlu1 %328  ;;  %v327_v59 = vpop.permute.xlu0 %326 }
  0xde   : > { %3717 = vst.msk [vmem:[%s4772_s22 + $0x1ea] sm:$0xff] %vm463_vm0, %v329_v58  ;;  %3716 = vst.msk [vmem:[%s4772_s22 + $0x1e2] sm:$0xff] %vm463_vm0, %v327_v59 }
  0xdf   : > { %702 = vrot.lane.b32.xlu1 %v4588_v22, %s4381_s23  ;;  %700 = vrot.lane.b32.xlu0 %v4591_v23, %s4381_s23 }
  0xe1   : > { %v333_v56 = vpop.permute.xlu1 %332  ;;  %v331_v57 = vpop.permute.xlu0 %330 }
  0xe2   : > { %3719 = vst.msk [vmem:[%s4772_s22 + $0x202] sm:$0xff] %vm463_vm0, %v333_v56  ;;  %3718 = vst.msk [vmem:[%s4772_s22 + $0x1fa] sm:$0xff] %vm463_vm0, %v331_v57 }
  0xe3   : > { %706 = vrot.lane.b32.xlu1 %v4598_v24, %s4381_s23  ;;  %704 = vrot.lane.b32.xlu0 %v4601_v25, %s4381_s23 }
  0xe5   : > { %v337_v58 = vpop.permute.xlu1 %336  ;;  %v335_v59 = vpop.permute.xlu0 %334 }
  0xe6   : > { %3721 = vst.msk [vmem:[%s4772_s22 + $0x27a] sm:$0xff] %vm463_vm0, %v337_v58  ;;  %3720 = vst.msk [vmem:[%s4772_s22 + $0x272] sm:$0xff] %vm463_vm0, %v335_v59 }
  0xe7   : > { %710 = vrot.lane.b32.xlu1 %v4608_v26, %s4381_s23  ;;  %708 = vrot.lane.b32.xlu0 %v4611_v27, %s4381_s23 }
  0xe9   : > { %v341_v56 = vpop.permute.xlu1 %340  ;;  %v339_v57 = vpop.permute.xlu0 %338 }
  0xea   : > { %3723 = vst.msk [vmem:[%s4772_s22 + $0x292] sm:$0xff] %vm463_vm0, %v341_v56  ;;  %3722 = vst.msk [vmem:[%s4772_s22 + $0x28a] sm:$0xff] %vm463_vm0, %v339_v57 }
  0xeb   : > { %714 = vrot.lane.b32.xlu1 %v4618_v28, %s4381_s23  ;;  %712 = vrot.lane.b32.xlu0 %v4621_v29, %s4381_s23 }
  0xed   : > { %v345_v58 = vpop.permute.xlu1 %344  ;;  %v343_v59 = vpop.permute.xlu0 %342 }
  0xee   : > { %3725 = vst.msk [vmem:[%s4772_s22 + $0x2aa] sm:$0xff] %vm463_vm0, %v345_v58  ;;  %3724 = vst.msk [vmem:[%s4772_s22 + $0x2a2] sm:$0xff] %vm463_vm0, %v343_v59 }
  0xef   : > { %718 = vrot.lane.b32.xlu1 %v4628_v30, %s4381_s23  ;;  %716 = vrot.lane.b32.xlu0 %v4631_v31, %s4381_s23 }
  0xf1   : > { %v349_v56 = vpop.permute.xlu1 %348  ;;  %v347_v57 = vpop.permute.xlu0 %346 }
  0xf2   : > { %3727 = vst.msk [vmem:[%s4772_s22 + $0x2c2] sm:$0xff] %vm463_vm0, %v349_v56  ;;  %3726 = vst.msk [vmem:[%s4772_s22 + $0x2ba] sm:$0xff] %vm463_vm0, %v347_v57 }
  0xf3   : > { %722 = vrot.lane.b32.xlu1 %v4638_v32, %s4381_s23  ;;  %720 = vrot.lane.b32.xlu0 %v4641_v33, %s4381_s23 }
  0xf5   : > { %v353_v58 = vpop.permute.xlu1 %352  ;;  %v351_v59 = vpop.permute.xlu0 %350 }
  0xf6   : > { %3729 = vst.msk [vmem:[%s4772_s22 + $0x2da] sm:$0xff] %vm463_vm0, %v353_v58  ;;  %3728 = vst.msk [vmem:[%s4772_s22 + $0x2d2] sm:$0xff] %vm463_vm0, %v351_v59 }
  0xf7   : > { %726 = vrot.lane.b32.xlu1 %v4648_v34, %s4381_s23  ;;  %724 = vrot.lane.b32.xlu0 %v4651_v35, %s4381_s23 }
  0xf9   : > { %v357_v56 = vpop.permute.xlu1 %356  ;;  %v355_v57 = vpop.permute.xlu0 %354 }
  0xfa   : > { %3731 = vst.msk [vmem:[%s4772_s22 + $0x2f2] sm:$0xff] %vm463_vm0, %v357_v56  ;;  %3730 = vst.msk [vmem:[%s4772_s22 + $0x2ea] sm:$0xff] %vm463_vm0, %v355_v57 }
  0xfb   : > { %730 = vrot.lane.b32.xlu1 %v4658_v36, %s4381_s23  ;;  %728 = vrot.lane.b32.xlu0 %v4661_v37, %s4381_s23 }
  0xfd   : > { %v361_v58 = vpop.permute.xlu1 %360  ;;  %v359_v59 = vpop.permute.xlu0 %358 }
  0xfe   : > { %3733 = vst.msk [vmem:[%s4772_s22 + $0x30a] sm:$0xff] %vm463_vm0, %v361_v58  ;;  %3732 = vst.msk [vmem:[%s4772_s22 + $0x302] sm:$0xff] %vm463_vm0, %v359_v59 }
  0xff   : > { %734 = vrot.lane.b32.xlu1 %v4668_v38, %s4381_s23  ;;  %732 = vrot.lane.b32.xlu0 %v4671_v39, %s4381_s23 }
 0x101   : > { %v365_v56 = vpop.permute.xlu1 %364  ;;  %v363_v57 = vpop.permute.xlu0 %362 }
 0x102   : > { %3735 = vst.msk [vmem:[%s4772_s22 + $0x322] sm:$0xff] %vm463_vm0, %v365_v56  ;;  %3734 = vst.msk [vmem:[%s4772_s22 + $0x31a] sm:$0xff] %vm463_vm0, %v363_v57 }
 0x103   : > { %738 = vrot.lane.b32.xlu1 %v4678_v40, %s4381_s23  ;;  %736 = vrot.lane.b32.xlu0 %v4681_v41, %s4381_s23 }
 0x105   : > { %v369_v58 = vpop.permute.xlu1 %368  ;;  %v367_v59 = vpop.permute.xlu0 %366 }
 0x106   : > { %3737 = vst.msk [vmem:[%s4772_s22 + $0x39a] sm:$0xff] %vm463_vm0, %v369_v58  ;;  %3736 = vst.msk [vmem:[%s4772_s22 + $0x392] sm:$0xff] %vm463_vm0, %v367_v59 }
 0x107   : > { %742 = vrot.lane.b32.xlu1 %v4688_v42, %s4381_s23  ;;  %740 = vrot.lane.b32.xlu0 %v4691_v43, %s4381_s23 }
 0x109   : > { %v373_v56 = vpop.permute.xlu1 %372  ;;  %v371_v57 = vpop.permute.xlu0 %370 }
 0x10a   : > { %3739 = vst.msk [vmem:[%s4772_s22 + $0x3b2] sm:$0xff] %vm463_vm0, %v373_v56  ;;  %3738 = vst.msk [vmem:[%s4772_s22 + $0x3aa] sm:$0xff] %vm463_vm0, %v371_v57 }
 0x10b   : > { %746 = vrot.lane.b32.xlu1 %v4698_v44, %s4381_s23  ;;  %744 = vrot.lane.b32.xlu0 %v4701_v45, %s4381_s23 }
 0x10d   : > { %v377_v58 = vpop.permute.xlu1 %376  ;;  %v375_v59 = vpop.permute.xlu0 %374 }
 0x10e   : > { %3741 = vst.msk [vmem:[%s4772_s22 + $0x3ca] sm:$0xff] %vm463_vm0, %v377_v58  ;;  %3740 = vst.msk [vmem:[%s4772_s22 + $0x3c2] sm:$0xff] %vm463_vm0, %v375_v59 }
 0x10f   : > { %750 = vrot.lane.b32.xlu1 %v4708_v46, %s4381_s23  ;;  %748 = vrot.lane.b32.xlu0 %v4711_v47, %s4381_s23 }
 0x111   : > { %v381_v56 = vpop.permute.xlu1 %380  ;;  %v379_v57 = vpop.permute.xlu0 %378 }
 0x112   : > { %3743 = vst.msk [vmem:[%s4772_s22 + $0x3e2] sm:$0xff] %vm463_vm0, %v381_v56  ;;  %3742 = vst.msk [vmem:[%s4772_s22 + $0x3da] sm:$0xff] %vm463_vm0, %v379_v57 }
 0x113   : > { %754 = vrot.lane.b32.xlu1 %v4718_v48, %s4381_s23  ;;  %752 = vrot.lane.b32.xlu0 %v4721_v49, %s4381_s23 }
 0x115   : > { %v385_v58 = vpop.permute.xlu1 %384  ;;  %v383_v59 = vpop.permute.xlu0 %382 }
 0x116   : > { %3745 = vst.msk [vmem:[%s4772_s22 + $0x3fa] sm:$0xff] %vm463_vm0, %v385_v58  ;;  %3744 = vst.msk [vmem:[%s4772_s22 + $0x3f2] sm:$0xff] %vm463_vm0, %v383_v59 }
 0x117   : > { %758 = vrot.lane.b32.xlu1 %v4728_v50, %s4381_s23  ;;  %756 = vrot.lane.b32.xlu0 %v4731_v51, %s4381_s23 }
 0x119   : > { %v389_v56 = vpop.permute.xlu1 %388  ;;  %v387_v57 = vpop.permute.xlu0 %386 }
 0x11a   : > { %3747 = vst.msk [vmem:[%s4772_s22 + $0x412] sm:$0xff] %vm463_vm0, %v389_v56  ;;  %3746 = vst.msk [vmem:[%s4772_s22 + $0x40a] sm:$0xff] %vm463_vm0, %v387_v57  ;;  %v7105_v57 = vld [vmem:[#allocation6_spill] sm:$0xff] }
 0x11b   : > { %762 = vrot.lane.b32.xlu1 %v4740_v52, %s4381_s23  ;;  %760 = vrot.lane.b32.xlu0 %v4743_v53, %s4381_s23  ;;  %v7104_v53 = vld [vmem:[#allocation5_spill] sm:$0xff] }
 0x11d   : > { %v393_v58 = vpop.permute.xlu1 %392  ;;  %v391_v59 = vpop.permute.xlu0 %390 }
 0x11e   : > { %3749 = vst.msk [vmem:[%s4772_s22 + $0x42a] sm:$0xff] %vm463_vm0, %v393_v58  ;;  %3748 = vst.msk [vmem:[%s4772_s22 + $0x422] sm:$0xff] %vm463_vm0, %v391_v59  ;;  %v7107_v59 = vld [vmem:[#allocation8_spill] sm:$0xff] }
 0x11f   : > { %766 = vrot.lane.b32.xlu1 %v4750_v54, %s4381_s23  ;;  %764 = vrot.lane.b32.xlu0 %v4753_v55, %s4381_s23  ;;  %v7106_v55 = vld [vmem:[#allocation7_spill] sm:$0xff] }
 0x121   : > { %v397_v56 = vpop.permute.xlu1 %396  ;;  %v395_v52 = vpop.permute.xlu0 %394 }
 0x122   : > { %3751 = vst.msk [vmem:[%s4772_s22 + $0x442] sm:$0xff] %vm463_vm0, %v397_v56  ;;  %3750 = vst.msk [vmem:[%s4772_s22 + $0x43a] sm:$0xff] %vm463_vm0, %v395_v52 }
 0x123   : > { %770 = vrot.lane.b32.xlu1 %v7104_v53, %s4381_s23  ;;  %768 = vrot.lane.b32.xlu0 %v7105_v57, %s4381_s23 }
 0x125   : > { %v659_v54 = vpop.permute.xlu1 %658  ;;  %v657_v58 = vpop.permute.xlu0 %656 }
 0x126   : > { %3753 = vst.msk [vmem:[%s4772_s22 + $0x3a] sm:$0xff] %vm848_vm1, %v659_v54  ;;  %3752 = vst.msk [vmem:[%s4772_s22 + $0x32] sm:$0xff] %vm848_vm1, %v657_v58 }
 0x127   : > { %774 = vrot.lane.b32.xlu1 %v7106_v55, %s4381_s23  ;;  %772 = vrot.lane.b32.xlu0 %v7107_v59, %s4381_s23  ;;  %v967_v55 = vld [vmem:[%s4471_s19 + $0x1b0] sm:$0xff] }
 0x129   : > { %v663_v56 = vpop.permute.xlu1 %662  ;;  %v661_v52 = vpop.permute.xlu0 %660 }
 0x12a   : > { %3755 = vst.msk [vmem:[%s4772_s22 + $0x52] sm:$0xff] %vm848_vm1, %v663_v56  ;;  %3754 = vst.msk [vmem:[%s4772_s22 + $0x4a] sm:$0xff] %vm848_vm1, %v661_v52  ;;  %v970_v56 = vld [vmem:[%s4471_s19 + $0x1c8] sm:$0xff]  ;;  %v969_v52 = vld [vmem:[%s4471_s19 + $0x1c0] sm:$0xff] }
 0x12b   : > { %778 = vrot.lane.b32.xlu1 %v4789_v62, %s4381_s23  ;;  %776 = vrot.lane.b32.xlu0 %v4792_v63, %s4381_s23 }
 0x12d   : > { %v667_v53 = vpop.permute.xlu1 %666  ;;  %v665_v57 = vpop.permute.xlu0 %664 }
 0x12e   : > { %3757 = vst.msk [vmem:[%s4772_s22 + $0x6a] sm:$0xff] %vm848_vm1, %v667_v53  ;;  %3756 = vst.msk [vmem:[%s4772_s22 + $0x62] sm:$0xff] %vm848_vm1, %v665_v57 }
 0x12f   : > { %782 = vrot.lane.b32.xlu1 %v4803_v60, %s4381_s23  ;;  %780 = vrot.lane.b32.xlu0 %v4806_v61, %s4381_s23 }
 0x131   : > { %v671_v54 = vpop.permute.xlu1 %670  ;;  %v669_v62 = vpop.permute.xlu0 %668 }
 0x132   : > { %3759 = vst.msk [vmem:[%s4772_s22 + $0x82] sm:$0xff] %vm848_vm1, %v671_v54  ;;  %3758 = vst.msk [vmem:[%s4772_s22 + $0x7a] sm:$0xff] %vm848_vm1, %v669_v62  ;;  %v972_v54 = vld [vmem:[%s4471_s19 + $0x1d8] sm:$0xff]  ;;  %v971_v62 = vld [vmem:[%s4471_s19 + $0x1d0] sm:$0xff] }
 0x133   : > { %1043 = vrot.lane.b32.xlu1 %v4491_v3, %s4382_s24  ;;  %1041 = vrot.lane.b32.xlu0 %v4481_v1, %s4382_s24 }
 0x135   : > { %v675_v63 = vpop.permute.xlu1 %674  ;;  %v673_v60 = vpop.permute.xlu0 %672 }
 0x136   : > { %3761 = vst.msk [vmem:[%s4772_s22 + $0x9a] sm:$0xff] %vm848_vm1, %v675_v63  ;;  %3760 = vst.msk [vmem:[%s4772_s22 + $0x92] sm:$0xff] %vm848_vm1, %v673_v60 }
 0x137   : > { %1047 = vrot.lane.b32.xlu1 %v4488_v2, %s4382_s24  ;;  %1045 = vrot.lane.b32.xlu0 %v4478_v0, %s4382_s24 }
 0x139   : > { %v679_v3 = vpop.permute.xlu1 %678  ;;  %v677_v61 = vpop.permute.xlu0 %676 }
 0x13a   : > { %3763 = vst.msk [vmem:[%s4772_s22 + $0xb2] sm:$0xff] %vm848_vm1, %v679_v3  ;;  %3762 = vst.msk [vmem:[%s4772_s22 + $0xaa] sm:$0xff] %vm848_vm1, %v677_v61  ;;  %v974_v3 = vld [vmem:[%s4471_s19 + $0x1e8] sm:$0xff]  ;;  %v973_v61 = vld [vmem:[%s4471_s19 + $0x1e0] sm:$0xff] }
 0x13b   : > { %1051 = vrot.lane.b32.xlu1 %v4498_v4, %s4382_s24  ;;  %1049 = vrot.lane.b32.xlu0 %v4501_v5, %s4382_s24 }
 0x13d   : > { %v683_v1 = vpop.permute.xlu1 %682  ;;  %v681_v2 = vpop.permute.xlu0 %680 }
 0x13e   : > { %3765 = vst.msk [vmem:[%s4772_s22 + $0xca] sm:$0xff] %vm848_vm1, %v683_v1  ;;  %3764 = vst.msk [vmem:[%s4772_s22 + $0xc2] sm:$0xff] %vm848_vm1, %v681_v2 }
 0x13f   : > { %1055 = vrot.lane.b32.xlu1 %v4508_v6, %s4382_s24  ;;  %1053 = vrot.lane.b32.xlu0 %v4511_v7, %s4382_s24 }
 0x141   : > { %v687_v0 = vpop.permute.xlu1 %686  ;;  %v685_v4 = vpop.permute.xlu0 %684 }
 0x142   : > { %3767 = vst.msk [vmem:[%s4772_s22 + $0xe2] sm:$0xff] %vm848_vm1, %v687_v0  ;;  %3766 = vst.msk [vmem:[%s4772_s22 + $0xda] sm:$0xff] %vm848_vm1, %v685_v4  ;;  %v976_v0 = vld [vmem:[%s4471_s19 + $0x1f8] sm:$0xff]  ;;  %v975_v4 = vld [vmem:[%s4471_s19 + $0x1f0] sm:$0xff] }
 0x143   : > { %1059 = vrot.lane.b32.xlu1 %v4518_v8, %s4382_s24  ;;  %1057 = vrot.lane.b32.xlu0 %v4521_v9, %s4382_s24 }
 0x145   : > { %v691_v5 = vpop.permute.xlu1 %690  ;;  %v689_v6 = vpop.permute.xlu0 %688 }
 0x146   : > { %3769 = vst.msk [vmem:[%s4772_s22 + $0x15a] sm:$0xff] %vm848_vm1, %v691_v5  ;;  %3768 = vst.msk [vmem:[%s4772_s22 + $0x152] sm:$0xff] %vm848_vm1, %v689_v6 }
 0x147   : > { %1063 = vrot.lane.b32.xlu1 %v4528_v10, %s4382_s24  ;;  %1061 = vrot.lane.b32.xlu0 %v4531_v11, %s4382_s24 }
 0x149   : > { %v695_v7 = vpop.permute.xlu1 %694  ;;  %v693_v8 = vpop.permute.xlu0 %692 }
 0x14a   : > { %3771 = vst.msk [vmem:[%s4772_s22 + $0x172] sm:$0xff] %vm848_vm1, %v695_v7  ;;  %3770 = vst.msk [vmem:[%s4772_s22 + $0x16a] sm:$0xff] %vm848_vm1, %v693_v8  ;;  %v1299_v7 = vld [vmem:[%s4471_s19 + $0x1e] sm:$0x3]  ;;  %v1298_v8 = vld [vmem:[%s4471_s19 + $0xe] sm:$0x3] }
 0x14b   : > { %1067 = vrot.lane.b32.xlu1 %v4538_v12, %s4382_s24  ;;  %1065 = vrot.lane.b32.xlu0 %v4541_v13, %s4382_s24 }
 0x14d   : > { %v699_v9 = vpop.permute.xlu1 %698  ;;  %v697_v10 = vpop.permute.xlu0 %696 }
 0x14e   : > { %3773 = vst.msk [vmem:[%s4772_s22 + $0x18a] sm:$0xff] %vm848_vm1, %v699_v9  ;;  %3772 = vst.msk [vmem:[%s4772_s22 + $0x182] sm:$0xff] %vm848_vm1, %v697_v10 }
 0x14f   : > { %1071 = vrot.lane.b32.xlu1 %v4548_v14, %s4382_s24  ;;  %1069 = vrot.lane.b32.xlu0 %v4551_v15, %s4382_s24 }
 0x151   : > { %v703_v11 = vpop.permute.xlu1 %702  ;;  %v701_v12 = vpop.permute.xlu0 %700 }
 0x152   : > { %3775 = vst.msk [vmem:[%s4772_s22 + $0x1a2] sm:$0xff] %vm848_vm1, %v703_v11  ;;  %3774 = vst.msk [vmem:[%s4772_s22 + $0x19a] sm:$0xff] %vm848_vm1, %v701_v12  ;;  %v1301_v11 = vld [vmem:[%s4471_s19 + $0x3e] sm:$0x3]  ;;  %v1300_v12 = vld [vmem:[%s4471_s19 + $0x2e] sm:$0x3] }
 0x153   : > { %1075 = vrot.lane.b32.xlu1 %v4558_v16, %s4382_s24  ;;  %1073 = vrot.lane.b32.xlu0 %v4561_v17, %s4382_s24 }
 0x155   : > { %v707_v13 = vpop.permute.xlu1 %706  ;;  %v705_v14 = vpop.permute.xlu0 %704 }
 0x156   : > { %3777 = vst.msk [vmem:[%s4772_s22 + $0x1ba] sm:$0xff] %vm848_vm1, %v707_v13  ;;  %3776 = vst.msk [vmem:[%s4772_s22 + $0x1b2] sm:$0xff] %vm848_vm1, %v705_v14 }
 0x157   : > { %1079 = vrot.lane.b32.xlu1 %v4568_v18, %s4382_s24  ;;  %1077 = vrot.lane.b32.xlu0 %v4571_v19, %s4382_s24 }
 0x159   : > { %v711_v15 = vpop.permute.xlu1 %710  ;;  %v709_v16 = vpop.permute.xlu0 %708 }
 0x15a   : > { %3779 = vst.msk [vmem:[%s4772_s22 + $0x1d2] sm:$0xff] %vm848_vm1, %v711_v15  ;;  %3778 = vst.msk [vmem:[%s4772_s22 + $0x1ca] sm:$0xff] %vm848_vm1, %v709_v16  ;;  %v1303_v15 = vld [vmem:[%s4471_s19 + $0x5e] sm:$0x3]  ;;  %v1302_v16 = vld [vmem:[%s4471_s19 + $0x4e] sm:$0x3] }
 0x15b   : > { %1083 = vrot.lane.b32.xlu1 %v4578_v20, %s4382_s24  ;;  %1081 = vrot.lane.b32.xlu0 %v4581_v21, %s4382_s24 }
 0x15d   : > { %v715_v17 = vpop.permute.xlu1 %714  ;;  %v713_v18 = vpop.permute.xlu0 %712 }
 0x15e   : > { %3781 = vst.msk [vmem:[%s4772_s22 + $0x1ea] sm:$0xff] %vm848_vm1, %v715_v17  ;;  %3780 = vst.msk [vmem:[%s4772_s22 + $0x1e2] sm:$0xff] %vm848_vm1, %v713_v18 }
 0x15f   : > { %1087 = vrot.lane.b32.xlu1 %v4588_v22, %s4382_s24  ;;  %1085 = vrot.lane.b32.xlu0 %v4591_v23, %s4382_s24 }
 0x161   : > { %v719_v19 = vpop.permute.xlu1 %718  ;;  %v717_v20 = vpop.permute.xlu0 %716 }
 0x162   : > { %3783 = vst.msk [vmem:[%s4772_s22 + $0x202] sm:$0xff] %vm848_vm1, %v719_v19  ;;  %3782 = vst.msk [vmem:[%s4772_s22 + $0x1fa] sm:$0xff] %vm848_vm1, %v717_v20  ;;  %v1305_v19 = vld [vmem:[%s4471_s19 + $0x7e] sm:$0x3]  ;;  %v1304_v20 = vld [vmem:[%s4471_s19 + $0x6e] sm:$0x3] }
 0x163   : > { %1091 = vrot.lane.b32.xlu1 %v4598_v24, %s4382_s24  ;;  %1089 = vrot.lane.b32.xlu0 %v4601_v25, %s4382_s24 }
 0x165   : > { %v723_v21 = vpop.permute.xlu1 %722  ;;  %v721_v22 = vpop.permute.xlu0 %720 }
 0x166   : > { %3785 = vst.msk [vmem:[%s4772_s22 + $0x27a] sm:$0xff] %vm848_vm1, %v723_v21  ;;  %3784 = vst.msk [vmem:[%s4772_s22 + $0x272] sm:$0xff] %vm848_vm1, %v721_v22 }
 0x167   : > { %1095 = vrot.lane.b32.xlu1 %v4608_v26, %s4382_s24  ;;  %1093 = vrot.lane.b32.xlu0 %v4611_v27, %s4382_s24 }
 0x169   : > { %v727_v23 = vpop.permute.xlu1 %726  ;;  %v725_v24 = vpop.permute.xlu0 %724 }
 0x16a   : > { %3787 = vst.msk [vmem:[%s4772_s22 + $0x292] sm:$0xff] %vm848_vm1, %v727_v23  ;;  %3786 = vst.msk [vmem:[%s4772_s22 + $0x28a] sm:$0xff] %vm848_vm1, %v725_v24  ;;  %v1307_v23 = vld [vmem:[%s4471_s19 + $0x9e] sm:$0x3]  ;;  %v1306_v24 = vld [vmem:[%s4471_s19 + $0x8e] sm:$0x3] }
 0x16b   : > { %1099 = vrot.lane.b32.xlu1 %v4618_v28, %s4382_s24  ;;  %1097 = vrot.lane.b32.xlu0 %v4621_v29, %s4382_s24 }
 0x16d   : > { %v731_v25 = vpop.permute.xlu1 %730  ;;  %v729_v26 = vpop.permute.xlu0 %728 }
 0x16e   : > { %3789 = vst.msk [vmem:[%s4772_s22 + $0x2aa] sm:$0xff] %vm848_vm1, %v731_v25  ;;  %3788 = vst.msk [vmem:[%s4772_s22 + $0x2a2] sm:$0xff] %vm848_vm1, %v729_v26 }
 0x16f   : > { %1103 = vrot.lane.b32.xlu1 %v4628_v30, %s4382_s24  ;;  %1101 = vrot.lane.b32.xlu0 %v4631_v31, %s4382_s24 }
 0x171   : > { %v735_v27 = vpop.permute.xlu1 %734  ;;  %v733_v28 = vpop.permute.xlu0 %732 }
 0x172   : > { %3791 = vst.msk [vmem:[%s4772_s22 + $0x2c2] sm:$0xff] %vm848_vm1, %v735_v27  ;;  %3790 = vst.msk [vmem:[%s4772_s22 + $0x2ba] sm:$0xff] %vm848_vm1, %v733_v28  ;;  %v1309_v27 = vld [vmem:[%s4471_s19 + $0xbe] sm:$0x3]  ;;  %v1308_v28 = vld [vmem:[%s4471_s19 + $0xae] sm:$0x3] }
 0x173   : > { %1107 = vrot.lane.b32.xlu1 %v4638_v32, %s4382_s24  ;;  %1105 = vrot.lane.b32.xlu0 %v4641_v33, %s4382_s24 }
 0x175   : > { %v739_v29 = vpop.permute.xlu1 %738  ;;  %v737_v30 = vpop.permute.xlu0 %736 }
 0x176   : > { %3793 = vst.msk [vmem:[%s4772_s22 + $0x2da] sm:$0xff] %vm848_vm1, %v739_v29  ;;  %3792 = vst.msk [vmem:[%s4772_s22 + $0x2d2] sm:$0xff] %vm848_vm1, %v737_v30 }
 0x177   : > { %1111 = vrot.lane.b32.xlu1 %v4648_v34, %s4382_s24  ;;  %1109 = vrot.lane.b32.xlu0 %v4651_v35, %s4382_s24 }
 0x179   : > { %v743_v31 = vpop.permute.xlu1 %742  ;;  %v741_v32 = vpop.permute.xlu0 %740 }
 0x17a   : > { %3795 = vst.msk [vmem:[%s4772_s22 + $0x2f2] sm:$0xff] %vm848_vm1, %v743_v31  ;;  %3794 = vst.msk [vmem:[%s4772_s22 + $0x2ea] sm:$0xff] %vm848_vm1, %v741_v32  ;;  %v1311_v31 = vld [vmem:[%s4471_s19 + $0xde] sm:$0x3]  ;;  %v1310_v32 = vld [vmem:[%s4471_s19 + $0xce] sm:$0x3] }
 0x17b   : > { %1115 = vrot.lane.b32.xlu1 %v4658_v36, %s4382_s24  ;;  %1113 = vrot.lane.b32.xlu0 %v4661_v37, %s4382_s24 }
 0x17d   : > { %v747_v33 = vpop.permute.xlu1 %746  ;;  %v745_v34 = vpop.permute.xlu0 %744 }
 0x17e   : > { %3797 = vst.msk [vmem:[%s4772_s22 + $0x30a] sm:$0xff] %vm848_vm1, %v747_v33  ;;  %3796 = vst.msk [vmem:[%s4772_s22 + $0x302] sm:$0xff] %vm848_vm1, %v745_v34 }
 0x17f   : > { %1119 = vrot.lane.b32.xlu1 %v4668_v38, %s4382_s24  ;;  %1117 = vrot.lane.b32.xlu0 %v4671_v39, %s4382_s24 }
 0x181   : > { %v751_v35 = vpop.permute.xlu1 %750  ;;  %v749_v36 = vpop.permute.xlu0 %748 }
 0x182   : > { %3799 = vst.msk [vmem:[%s4772_s22 + $0x322] sm:$0xff] %vm848_vm1, %v751_v35  ;;  %3798 = vst.msk [vmem:[%s4772_s22 + $0x31a] sm:$0xff] %vm848_vm1, %v749_v36  ;;  %v1313_v35 = vld [vmem:[%s4471_s19 + $0xfe] sm:$0x3]  ;;  %v1312_v36 = vld [vmem:[%s4471_s19 + $0xee] sm:$0x3] }
 0x183   : > { %1123 = vrot.lane.b32.xlu1 %v4678_v40, %s4382_s24  ;;  %1121 = vrot.lane.b32.xlu0 %v4681_v41, %s4382_s24 }
 0x185   : > { %v755_v37 = vpop.permute.xlu1 %754  ;;  %v753_v38 = vpop.permute.xlu0 %752 }
 0x186   : > { %3801 = vst.msk [vmem:[%s4772_s22 + $0x39a] sm:$0xff] %vm848_vm1, %v755_v37  ;;  %3800 = vst.msk [vmem:[%s4772_s22 + $0x392] sm:$0xff] %vm848_vm1, %v753_v38 }
 0x187   : > { %1127 = vrot.lane.b32.xlu1 %v4688_v42, %s4382_s24  ;;  %1125 = vrot.lane.b32.xlu0 %v4691_v43, %s4382_s24 }
 0x189   : > { %v759_v39 = vpop.permute.xlu1 %758  ;;  %v757_v40 = vpop.permute.xlu0 %756 }
 0x18a   : > { %3803 = vst.msk [vmem:[%s4772_s22 + $0x3b2] sm:$0xff] %vm848_vm1, %v759_v39  ;;  %3802 = vst.msk [vmem:[%s4772_s22 + $0x3aa] sm:$0xff] %vm848_vm1, %v757_v40  ;;  %v1315_v39 = vld [vmem:[%s4471_s19 + $0x11e] sm:$0x3]  ;;  %v1314_v40 = vld [vmem:[%s4471_s19 + $0x10e] sm:$0x3] }
 0x18b   : > { %1131 = vrot.lane.b32.xlu1 %v4698_v44, %s4382_s24  ;;  %1129 = vrot.lane.b32.xlu0 %v4701_v45, %s4382_s24 }
 0x18d   : > { %v763_v41 = vpop.permute.xlu1 %762  ;;  %v761_v42 = vpop.permute.xlu0 %760 }
 0x18e   : > { %3805 = vst.msk [vmem:[%s4772_s22 + $0x3ca] sm:$0xff] %vm848_vm1, %v763_v41  ;;  %3804 = vst.msk [vmem:[%s4772_s22 + $0x3c2] sm:$0xff] %vm848_vm1, %v761_v42 }
 0x18f   : > { %1135 = vrot.lane.b32.xlu1 %v4708_v46, %s4382_s24  ;;  %1133 = vrot.lane.b32.xlu0 %v4711_v47, %s4382_s24  ;;  %v966_v47 = vld [vmem:[%s4471_s19 + $0x1a8] sm:$0xff] }
 0x191   : > { %v767_v43 = vpop.permute.xlu1 %766  ;;  %v765_v44 = vpop.permute.xlu0 %764 }
 0x192   : > { %3807 = vst.msk [vmem:[%s4772_s22 + $0x3e2] sm:$0xff] %vm848_vm1, %v767_v43  ;;  %3806 = vst.msk [vmem:[%s4772_s22 + $0x3da] sm:$0xff] %vm848_vm1, %v765_v44  ;;  %v1317_v43 = vld [vmem:[%s4471_s19 + $0x13e] sm:$0x3]  ;;  %v1316_v44 = vld [vmem:[%s4471_s19 + $0x12e] sm:$0x3] }
 0x193   : > { %1139 = vrot.lane.b32.xlu1 %v4718_v48, %s4382_s24  ;;  %1137 = vrot.lane.b32.xlu0 %v4721_v49, %s4382_s24  ;;  %v965_v48 = vld [vmem:[%s4471_s19 + $0x1a0] sm:$0xff] }
 0x195   : > { %v771_v45 = vpop.permute.xlu1 %770  ;;  %v769_v46 = vpop.permute.xlu0 %768 }
 0x196   : > { %3809 = vst.msk [vmem:[%s4772_s22 + $0x3fa] sm:$0xff] %vm848_vm1, %v771_v45  ;;  %3808 = vst.msk [vmem:[%s4772_s22 + $0x3f2] sm:$0xff] %vm848_vm1, %v769_v46 }
 0x197   : > { %1143 = vrot.lane.b32.xlu1 %v4728_v50, %s4382_s24  ;;  %1141 = vrot.lane.b32.xlu0 %v4731_v51, %s4382_s24  ;;  %v968_v50 = vld [vmem:[%s4471_s19 + $0x1b8] sm:$0xff] }
 0x199   : > { %v775_v49 = vpop.permute.xlu1 %774  ;;  %v773_v58 = vpop.permute.xlu0 %772 }
 0x19a   : > { %3811 = vst.msk [vmem:[%s4772_s22 + $0x412] sm:$0xff] %vm848_vm1, %v775_v49  ;;  %3810 = vst.msk [vmem:[%s4772_s22 + $0x40a] sm:$0xff] %vm848_vm1, %v773_v58 }
 0x19b   : > { %1147 = vrot.lane.b32.xlu1 %v966_v47, %s4382_s24  ;;  %1145 = vrot.lane.b32.xlu0 %v965_v48, %s4382_s24  ;;  %v1319_v47 = vld [vmem:[%s4471_s19 + $0x15e] sm:$0x3]  ;;  %v1318_v48 = vld [vmem:[%s4471_s19 + $0x14e] sm:$0x3] }
 0x19d   : > { %v779_v51 = vpop.permute.xlu1 %778  ;;  %v777_v59 = vpop.permute.xlu0 %776 }
 0x19e   : > { %3813 = vst.msk [vmem:[%s4772_s22 + $0x42a] sm:$0xff] %vm848_vm1, %v779_v51  ;;  %3812 = vst.msk [vmem:[%s4772_s22 + $0x422] sm:$0xff] %vm848_vm1, %v777_v59 }
 0x19f   : > { %1151 = vrot.lane.b32.xlu1 %v968_v50, %s4382_s24  ;;  %1149 = vrot.lane.b32.xlu0 %v967_v55, %s4382_s24  ;;  %v1321_v50 = vld [vmem:[%s4471_s19 + $0x17e] sm:$0x3]  ;;  %v1320_v55 = vld [vmem:[%s4471_s19 + $0x16e] sm:$0x3] }
 0x1a1   : > { %v783_v53 = vpop.permute.xlu1 %782  ;;  %v781_v57 = vpop.permute.xlu0 %780 }
 0x1a2   : > { %3815 = vst.msk [vmem:[%s4772_s22 + $0x442] sm:$0xff] %vm848_vm1, %v783_v53  ;;  %3814 = vst.msk [vmem:[%s4772_s22 + $0x43a] sm:$0xff] %vm848_vm1, %v781_v57 }
 0x1a3   : > { %1155 = vrot.lane.b32.xlu1 %v970_v56, %s4382_s24  ;;  %1153 = vrot.lane.b32.xlu0 %v969_v52, %s4382_s24  ;;  %v1323_v56 = vld [vmem:[%s4471_s19 + $0x19e] sm:$0x3]  ;;  %v1322_v52 = vld [vmem:[%s4471_s19 + $0x18e] sm:$0x3] }
 0x1a5   : > { %v1044_v63 = vpop.permute.xlu1 %1043  ;;  %v1042_v60 = vpop.permute.xlu0 %1041 }
 0x1a6   : > { %3817 = vst.msk [vmem:[%s4772_s22 + $0x3a] sm:$0xff] %vm1233_vm2, %v1044_v63  ;;  %3816 = vst.msk [vmem:[%s4772_s22 + $0x32] sm:$0xff] %vm1233_vm2, %v1042_v60 }
 0x1a7   : > { %1159 = vrot.lane.b32.xlu1 %v972_v54, %s4382_s24  ;;  %1157 = vrot.lane.b32.xlu0 %v971_v62, %s4382_s24  ;;  %v1325_v54 = vld [vmem:[%s4471_s19 + $0x1be] sm:$0x3]  ;;  %v1324_v62 = vld [vmem:[%s4471_s19 + $0x1ae] sm:$0x3] }
 0x1a9   : > { %v1048_v1 = vpop.permute.xlu1 %1047  ;;  %v1046_v2 = vpop.permute.xlu0 %1045 }
 0x1aa   : > { %3819 = vst.msk [vmem:[%s4772_s22 + $0x52] sm:$0xff] %vm1233_vm2, %v1048_v1  ;;  %3818 = vst.msk [vmem:[%s4772_s22 + $0x4a] sm:$0xff] %vm1233_vm2, %v1046_v2 }
 0x1ab   : > { %1163 = vrot.lane.b32.xlu1 %v974_v3, %s4382_s24  ;;  %1161 = vrot.lane.b32.xlu0 %v973_v61, %s4382_s24  ;;  %v1327_v3 = vld [vmem:[%s4471_s19 + $0x1de] sm:$0x3]  ;;  %v1326_v61 = vld [vmem:[%s4471_s19 + $0x1ce] sm:$0x3] }
 0x1ad   : > { %v1052_v5 = vpop.permute.xlu1 %1051  ;;  %v1050_v6 = vpop.permute.xlu0 %1049 }
 0x1ae   : > { %3821 = vst.msk [vmem:[%s4772_s22 + $0x6a] sm:$0xff] %vm1233_vm2, %v1052_v5  ;;  %3820 = vst.msk [vmem:[%s4772_s22 + $0x62] sm:$0xff] %vm1233_vm2, %v1050_v6 }
 0x1af   : > { %1167 = vrot.lane.b32.xlu1 %v976_v0, %s4382_s24  ;;  %1165 = vrot.lane.b32.xlu0 %v975_v4, %s4382_s24  ;;  %v1329_v0 = vld [vmem:[%s4471_s19 + $0x1fe] sm:$0x3]  ;;  %v1328_v4 = vld [vmem:[%s4471_s19 + $0x1ee] sm:$0x3] }
 0x1b1   : > { %v1056_v9 = vpop.permute.xlu1 %1055  ;;  %v1054_v10 = vpop.permute.xlu0 %1053 }
 0x1b2   : > { %3823 = vst.msk [vmem:[%s4772_s22 + $0x82] sm:$0xff] %vm1233_vm2, %v1056_v9  ;;  %3822 = vst.msk [vmem:[%s4772_s22 + $0x7a] sm:$0xff] %vm1233_vm2, %v1054_v10 }
 0x1b3   : > { %1364 = vrot.lane.b32.xlu1 %v1299_v7, %s4380_s20  ;;  %1362 = vrot.lane.b32.xlu0 %v1298_v8, %s4380_s20  ;;  %v1492_v7 = vld [vmem:[%s4471_s19 + $0x1e] sm:$0x3]  ;;  %v1491_v8 = vld [vmem:[%s4471_s19 + $0xe] sm:$0x3] }
 0x1b5   : > { %v1060_v13 = vpop.permute.xlu1 %1059  ;;  %v1058_v14 = vpop.permute.xlu0 %1057 }
 0x1b6   : > { %3825 = vst.msk [vmem:[%s4772_s22 + $0x9a] sm:$0xff] %vm1233_vm2, %v1060_v13  ;;  %3824 = vst.msk [vmem:[%s4772_s22 + $0x92] sm:$0xff] %vm1233_vm2, %v1058_v14 }
 0x1b7   : > { %1368 = vrot.lane.b32.xlu1 %v1301_v11, %s4380_s20  ;;  %1366 = vrot.lane.b32.xlu0 %v1300_v12, %s4380_s20  ;;  %v1494_v11 = vld [vmem:[%s4471_s19 + $0x3e] sm:$0x3]  ;;  %v1493_v12 = vld [vmem:[%s4471_s19 + $0x2e] sm:$0x3] }
 0x1b9   : > { %v1064_v17 = vpop.permute.xlu1 %1063  ;;  %v1062_v18 = vpop.permute.xlu0 %1061 }
 0x1ba   : > { %3827 = vst.msk [vmem:[%s4772_s22 + $0xb2] sm:$0xff] %vm1233_vm2, %v1064_v17  ;;  %3826 = vst.msk [vmem:[%s4772_s22 + $0xaa] sm:$0xff] %vm1233_vm2, %v1062_v18 }
 0x1bb   : > { %1372 = vrot.lane.b32.xlu1 %v1303_v15, %s4380_s20  ;;  %1370 = vrot.lane.b32.xlu0 %v1302_v16, %s4380_s20  ;;  %v1496_v15 = vld [vmem:[%s4471_s19 + $0x5e] sm:$0x3]  ;;  %v1495_v16 = vld [vmem:[%s4471_s19 + $0x4e] sm:$0x3] }
 0x1bd   : > { %v1068_v21 = vpop.permute.xlu1 %1067  ;;  %v1066_v22 = vpop.permute.xlu0 %1065 }
 0x1be   : > { %3829 = vst.msk [vmem:[%s4772_s22 + $0xca] sm:$0xff] %vm1233_vm2, %v1068_v21  ;;  %3828 = vst.msk [vmem:[%s4772_s22 + $0xc2] sm:$0xff] %vm1233_vm2, %v1066_v22 }
 0x1bf   : > { %1376 = vrot.lane.b32.xlu1 %v1305_v19, %s4380_s20  ;;  %1374 = vrot.lane.b32.xlu0 %v1304_v20, %s4380_s20  ;;  %v1498_v19 = vld [vmem:[%s4471_s19 + $0x7e] sm:$0x3]  ;;  %v1497_v20 = vld [vmem:[%s4471_s19 + $0x6e] sm:$0x3] }
 0x1c1   : > { %v1072_v25 = vpop.permute.xlu1 %1071  ;;  %v1070_v26 = vpop.permute.xlu0 %1069 }
 0x1c2   : > { %3831 = vst.msk [vmem:[%s4772_s22 + $0xe2] sm:$0xff] %vm1233_vm2, %v1072_v25  ;;  %3830 = vst.msk [vmem:[%s4772_s22 + $0xda] sm:$0xff] %vm1233_vm2, %v1070_v26 }
 0x1c3   : > { %1380 = vrot.lane.b32.xlu1 %v1307_v23, %s4380_s20  ;;  %1378 = vrot.lane.b32.xlu0 %v1306_v24, %s4380_s20  ;;  %v1500_v23 = vld [vmem:[%s4471_s19 + $0x9e] sm:$0x3]  ;;  %v1499_v24 = vld [vmem:[%s4471_s19 + $0x8e] sm:$0x3] }
 0x1c5   : > { %v1076_v29 = vpop.permute.xlu1 %1075  ;;  %v1074_v30 = vpop.permute.xlu0 %1073 }
 0x1c6   : > { %3833 = vst.msk [vmem:[%s4772_s22 + $0x15a] sm:$0xff] %vm1233_vm2, %v1076_v29  ;;  %3832 = vst.msk [vmem:[%s4772_s22 + $0x152] sm:$0xff] %vm1233_vm2, %v1074_v30 }
 0x1c7   : > { %1384 = vrot.lane.b32.xlu1 %v1309_v27, %s4380_s20  ;;  %1382 = vrot.lane.b32.xlu0 %v1308_v28, %s4380_s20  ;;  %v1502_v27 = vld [vmem:[%s4471_s19 + $0xbe] sm:$0x3]  ;;  %v1501_v28 = vld [vmem:[%s4471_s19 + $0xae] sm:$0x3] }
 0x1c9   : > { %v1080_v33 = vpop.permute.xlu1 %1079  ;;  %v1078_v34 = vpop.permute.xlu0 %1077 }
 0x1ca   : > { %3835 = vst.msk [vmem:[%s4772_s22 + $0x172] sm:$0xff] %vm1233_vm2, %v1080_v33  ;;  %3834 = vst.msk [vmem:[%s4772_s22 + $0x16a] sm:$0xff] %vm1233_vm2, %v1078_v34 }
 0x1cb   : > { %1388 = vrot.lane.b32.xlu1 %v1311_v31, %s4380_s20  ;;  %1386 = vrot.lane.b32.xlu0 %v1310_v32, %s4380_s20  ;;  %v1504_v31 = vld [vmem:[%s4471_s19 + $0xde] sm:$0x3]  ;;  %v1503_v32 = vld [vmem:[%s4471_s19 + $0xce] sm:$0x3] }
 0x1cd   : > { %v1084_v37 = vpop.permute.xlu1 %1083  ;;  %v1082_v38 = vpop.permute.xlu0 %1081 }
 0x1ce   : > { %3837 = vst.msk [vmem:[%s4772_s22 + $0x18a] sm:$0xff] %vm1233_vm2, %v1084_v37  ;;  %3836 = vst.msk [vmem:[%s4772_s22 + $0x182] sm:$0xff] %vm1233_vm2, %v1082_v38 }
 0x1cf   : > { %1392 = vrot.lane.b32.xlu1 %v1313_v35, %s4380_s20  ;;  %1390 = vrot.lane.b32.xlu0 %v1312_v36, %s4380_s20  ;;  %v1506_v35 = vld [vmem:[%s4471_s19 + $0xfe] sm:$0x3]  ;;  %v1505_v36 = vld [vmem:[%s4471_s19 + $0xee] sm:$0x3] }
 0x1d1   : > { %v1088_v41 = vpop.permute.xlu1 %1087  ;;  %v1086_v42 = vpop.permute.xlu0 %1085 }
 0x1d2   : > { %3839 = vst.msk [vmem:[%s4772_s22 + $0x1a2] sm:$0xff] %vm1233_vm2, %v1088_v41  ;;  %3838 = vst.msk [vmem:[%s4772_s22 + $0x19a] sm:$0xff] %vm1233_vm2, %v1086_v42 }
 0x1d3   : > { %1396 = vrot.lane.b32.xlu1 %v1315_v39, %s4380_s20  ;;  %1394 = vrot.lane.b32.xlu0 %v1314_v40, %s4380_s20  ;;  %v1508_v39 = vld [vmem:[%s4471_s19 + $0x11e] sm:$0x3]  ;;  %v1507_v40 = vld [vmem:[%s4471_s19 + $0x10e] sm:$0x3] }
 0x1d5   : > { %v1092_v45 = vpop.permute.xlu1 %1091  ;;  %v1090_v46 = vpop.permute.xlu0 %1089 }
 0x1d6   : > { %3841 = vst.msk [vmem:[%s4772_s22 + $0x1ba] sm:$0xff] %vm1233_vm2, %v1092_v45  ;;  %3840 = vst.msk [vmem:[%s4772_s22 + $0x1b2] sm:$0xff] %vm1233_vm2, %v1090_v46 }
 0x1d7   : > { %1400 = vrot.lane.b32.xlu1 %v1317_v43, %s4380_s20  ;;  %1398 = vrot.lane.b32.xlu0 %v1316_v44, %s4380_s20  ;;  %v1510_v43 = vld [vmem:[%s4471_s19 + $0x13e] sm:$0x3]  ;;  %v1509_v44 = vld [vmem:[%s4471_s19 + $0x12e] sm:$0x3] }
 0x1d9   : > { %v1096_v49 = vpop.permute.xlu1 %1095  ;;  %v1094_v58 = vpop.permute.xlu0 %1093 }
 0x1da   : > { %3843 = vst.msk [vmem:[%s4772_s22 + $0x1d2] sm:$0xff] %vm1233_vm2, %v1096_v49  ;;  %3842 = vst.msk [vmem:[%s4772_s22 + $0x1ca] sm:$0xff] %vm1233_vm2, %v1094_v58 }
 0x1db   : > { %1404 = vrot.lane.b32.xlu1 %v1319_v47, %s4380_s20  ;;  %1402 = vrot.lane.b32.xlu0 %v1318_v48, %s4380_s20  ;;  %v1512_v47 = vld [vmem:[%s4471_s19 + $0x15e] sm:$0x3]  ;;  %v1511_v48 = vld [vmem:[%s4471_s19 + $0x14e] sm:$0x3] }
 0x1dd   : > { %v1100_v51 = vpop.permute.xlu1 %1099  ;;  %v1098_v59 = vpop.permute.xlu0 %1097 }
 0x1de   : > { %3845 = vst.msk [vmem:[%s4772_s22 + $0x1ea] sm:$0xff] %vm1233_vm2, %v1100_v51  ;;  %3844 = vst.msk [vmem:[%s4772_s22 + $0x1e2] sm:$0xff] %vm1233_vm2, %v1098_v59 }
 0x1df   : > { %1408 = vrot.lane.b32.xlu1 %v1321_v50, %s4380_s20  ;;  %1406 = vrot.lane.b32.xlu0 %v1320_v55, %s4380_s20  ;;  %v1514_v50 = vld [vmem:[%s4471_s19 + $0x17e] sm:$0x3]  ;;  %v1513_v55 = vld [vmem:[%s4471_s19 + $0x16e] sm:$0x3] }
 0x1e1   : > { %v1104_v53 = vpop.permute.xlu1 %1103  ;;  %v1102_v57 = vpop.permute.xlu0 %1101 }
 0x1e2   : > { %3847 = vst.msk [vmem:[%s4772_s22 + $0x202] sm:$0xff] %vm1233_vm2, %v1104_v53  ;;  %3846 = vst.msk [vmem:[%s4772_s22 + $0x1fa] sm:$0xff] %vm1233_vm2, %v1102_v57 }
 0x1e3   : > { %1412 = vrot.lane.b32.xlu1 %v1323_v56, %s4380_s20  ;;  %1410 = vrot.lane.b32.xlu0 %v1322_v52, %s4380_s20  ;;  %v1516_v56 = vld [vmem:[%s4471_s19 + $0x19e] sm:$0x3]  ;;  %v1515_v52 = vld [vmem:[%s4471_s19 + $0x18e] sm:$0x3] }
 0x1e5   : > { %v1108_v63 = vpop.permute.xlu1 %1107  ;;  %v1106_v60 = vpop.permute.xlu0 %1105 }
 0x1e6   : > { %3849 = vst.msk [vmem:[%s4772_s22 + $0x27a] sm:$0xff] %vm1233_vm2, %v1108_v63  ;;  %3848 = vst.msk [vmem:[%s4772_s22 + $0x272] sm:$0xff] %vm1233_vm2, %v1106_v60 }
 0x1e7   : > { %1416 = vrot.lane.b32.xlu1 %v1325_v54, %s4380_s20  ;;  %1414 = vrot.lane.b32.xlu0 %v1324_v62, %s4380_s20  ;;  %v1518_v54 = vld [vmem:[%s4471_s19 + $0x1be] sm:$0x3]  ;;  %v1517_v62 = vld [vmem:[%s4471_s19 + $0x1ae] sm:$0x3] }
 0x1e9   : > { %v1112_v1 = vpop.permute.xlu1 %1111  ;;  %v1110_v2 = vpop.permute.xlu0 %1109 }
 0x1ea   : > { %3851 = vst.msk [vmem:[%s4772_s22 + $0x292] sm:$0xff] %vm1233_vm2, %v1112_v1  ;;  %3850 = vst.msk [vmem:[%s4772_s22 + $0x28a] sm:$0xff] %vm1233_vm2, %v1110_v2 }
 0x1eb   : > { %1420 = vrot.lane.b32.xlu1 %v1327_v3, %s4380_s20  ;;  %1418 = vrot.lane.b32.xlu0 %v1326_v61, %s4380_s20  ;;  %v1520_v3 = vld [vmem:[%s4471_s19 + $0x1de] sm:$0x3]  ;;  %v1519_v61 = vld [vmem:[%s4471_s19 + $0x1ce] sm:$0x3] }
 0x1ed   : > { %v1116_v5 = vpop.permute.xlu1 %1115  ;;  %v1114_v6 = vpop.permute.xlu0 %1113 }
 0x1ee   : > { %3853 = vst.msk [vmem:[%s4772_s22 + $0x2aa] sm:$0xff] %vm1233_vm2, %v1116_v5  ;;  %3852 = vst.msk [vmem:[%s4772_s22 + $0x2a2] sm:$0xff] %vm1233_vm2, %v1114_v6 }
 0x1ef   : > { %1424 = vrot.lane.b32.xlu1 %v1329_v0, %s4380_s20  ;;  %1422 = vrot.lane.b32.xlu0 %v1328_v4, %s4380_s20  ;;  %v1522_v0 = vld [vmem:[%s4471_s19 + $0x1fe] sm:$0x3]  ;;  %v1521_v4 = vld [vmem:[%s4471_s19 + $0x1ee] sm:$0x3] }
 0x1f1   : > { %v1120_v9 = vpop.permute.xlu1 %1119  ;;  %v1118_v10 = vpop.permute.xlu0 %1117 }
 0x1f2   : > { %3855 = vst.msk [vmem:[%s4772_s22 + $0x2c2] sm:$0xff] %vm1233_vm2, %v1120_v9  ;;  %3854 = vst.msk [vmem:[%s4772_s22 + $0x2ba] sm:$0xff] %vm1233_vm2, %v1118_v10 }
 0x1f3   : > { %1557 = vrot.lane.b32.xlu1 %v1492_v7, %s4381_s23  ;;  %1555 = vrot.lane.b32.xlu0 %v1491_v8, %s4381_s23  ;;  %v1685_v7 = vld [vmem:[%s4471_s19 + $0x1e] sm:$0x3]  ;;  %v1684_v8 = vld [vmem:[%s4471_s19 + $0xe] sm:$0x3] }
 0x1f5   : > { %v1124_v13 = vpop.permute.xlu1 %1123  ;;  %v1122_v14 = vpop.permute.xlu0 %1121 }
 0x1f6   : > { %3857 = vst.msk [vmem:[%s4772_s22 + $0x2da] sm:$0xff] %vm1233_vm2, %v1124_v13  ;;  %3856 = vst.msk [vmem:[%s4772_s22 + $0x2d2] sm:$0xff] %vm1233_vm2, %v1122_v14 }
 0x1f7   : > { %1561 = vrot.lane.b32.xlu1 %v1494_v11, %s4381_s23  ;;  %1559 = vrot.lane.b32.xlu0 %v1493_v12, %s4381_s23  ;;  %v1687_v11 = vld [vmem:[%s4471_s19 + $0x3e] sm:$0x3]  ;;  %v1686_v12 = vld [vmem:[%s4471_s19 + $0x2e] sm:$0x3] }
 0x1f9   : > { %v1128_v17 = vpop.permute.xlu1 %1127  ;;  %v1126_v18 = vpop.permute.xlu0 %1125 }
 0x1fa   : > { %3859 = vst.msk [vmem:[%s4772_s22 + $0x2f2] sm:$0xff] %vm1233_vm2, %v1128_v17  ;;  %3858 = vst.msk [vmem:[%s4772_s22 + $0x2ea] sm:$0xff] %vm1233_vm2, %v1126_v18 }
 0x1fb   : > { %1565 = vrot.lane.b32.xlu1 %v1496_v15, %s4381_s23  ;;  %1563 = vrot.lane.b32.xlu0 %v1495_v16, %s4381_s23  ;;  %v1689_v15 = vld [vmem:[%s4471_s19 + $0x5e] sm:$0x3]  ;;  %v1688_v16 = vld [vmem:[%s4471_s19 + $0x4e] sm:$0x3] }
 0x1fd   : > { %v1132_v21 = vpop.permute.xlu1 %1131  ;;  %v1130_v22 = vpop.permute.xlu0 %1129 }
 0x1fe   : > { %3861 = vst.msk [vmem:[%s4772_s22 + $0x30a] sm:$0xff] %vm1233_vm2, %v1132_v21  ;;  %3860 = vst.msk [vmem:[%s4772_s22 + $0x302] sm:$0xff] %vm1233_vm2, %v1130_v22 }
 0x1ff   : > { %1569 = vrot.lane.b32.xlu1 %v1498_v19, %s4381_s23  ;;  %1567 = vrot.lane.b32.xlu0 %v1497_v20, %s4381_s23  ;;  %v1691_v19 = vld [vmem:[%s4471_s19 + $0x7e] sm:$0x3]  ;;  %v1690_v20 = vld [vmem:[%s4471_s19 + $0x6e] sm:$0x3] }
 0x201   : > { %v1136_v25 = vpop.permute.xlu1 %1135  ;;  %v1134_v26 = vpop.permute.xlu0 %1133 }
 0x202   : > { %3863 = vst.msk [vmem:[%s4772_s22 + $0x322] sm:$0xff] %vm1233_vm2, %v1136_v25  ;;  %3862 = vst.msk [vmem:[%s4772_s22 + $0x31a] sm:$0xff] %vm1233_vm2, %v1134_v26 }
 0x203   : > { %1573 = vrot.lane.b32.xlu1 %v1500_v23, %s4381_s23  ;;  %1571 = vrot.lane.b32.xlu0 %v1499_v24, %s4381_s23  ;;  %v1693_v23 = vld [vmem:[%s4471_s19 + $0x9e] sm:$0x3]  ;;  %v1692_v24 = vld [vmem:[%s4471_s19 + $0x8e] sm:$0x3] }
 0x205   : > { %v1140_v29 = vpop.permute.xlu1 %1139  ;;  %v1138_v30 = vpop.permute.xlu0 %1137 }
 0x206   : > { %3865 = vst.msk [vmem:[%s4772_s22 + $0x39a] sm:$0xff] %vm1233_vm2, %v1140_v29  ;;  %3864 = vst.msk [vmem:[%s4772_s22 + $0x392] sm:$0xff] %vm1233_vm2, %v1138_v30 }
 0x207   : > { %1577 = vrot.lane.b32.xlu1 %v1502_v27, %s4381_s23  ;;  %1575 = vrot.lane.b32.xlu0 %v1501_v28, %s4381_s23  ;;  %v1695_v27 = vld [vmem:[%s4471_s19 + $0xbe] sm:$0x3]  ;;  %v1694_v28 = vld [vmem:[%s4471_s19 + $0xae] sm:$0x3] }
 0x209   : > { %v1144_v33 = vpop.permute.xlu1 %1143  ;;  %v1142_v34 = vpop.permute.xlu0 %1141 }
 0x20a   : > { %3867 = vst.msk [vmem:[%s4772_s22 + $0x3b2] sm:$0xff] %vm1233_vm2, %v1144_v33  ;;  %3866 = vst.msk [vmem:[%s4772_s22 + $0x3aa] sm:$0xff] %vm1233_vm2, %v1142_v34 }
 0x20b   : > { %1581 = vrot.lane.b32.xlu1 %v1504_v31, %s4381_s23  ;;  %1579 = vrot.lane.b32.xlu0 %v1503_v32, %s4381_s23  ;;  %v1697_v31 = vld [vmem:[%s4471_s19 + $0xde] sm:$0x3]  ;;  %v1696_v32 = vld [vmem:[%s4471_s19 + $0xce] sm:$0x3] }
 0x20d   : > { %v1148_v37 = vpop.permute.xlu1 %1147  ;;  %v1146_v38 = vpop.permute.xlu0 %1145 }
 0x20e   : > { %3869 = vst.msk [vmem:[%s4772_s22 + $0x3ca] sm:$0xff] %vm1233_vm2, %v1148_v37  ;;  %3868 = vst.msk [vmem:[%s4772_s22 + $0x3c2] sm:$0xff] %vm1233_vm2, %v1146_v38 }
 0x20f   : > { %1585 = vrot.lane.b32.xlu1 %v1506_v35, %s4381_s23  ;;  %1583 = vrot.lane.b32.xlu0 %v1505_v36, %s4381_s23  ;;  %v1699_v35 = vld [vmem:[%s4471_s19 + $0xfe] sm:$0x3]  ;;  %v1698_v36 = vld [vmem:[%s4471_s19 + $0xee] sm:$0x3] }
 0x211   : > { %v1152_v41 = vpop.permute.xlu1 %1151  ;;  %v1150_v42 = vpop.permute.xlu0 %1149 }
 0x212   : > { %3871 = vst.msk [vmem:[%s4772_s22 + $0x3e2] sm:$0xff] %vm1233_vm2, %v1152_v41  ;;  %3870 = vst.msk [vmem:[%s4772_s22 + $0x3da] sm:$0xff] %vm1233_vm2, %v1150_v42 }
 0x213   : > { %1589 = vrot.lane.b32.xlu1 %v1508_v39, %s4381_s23  ;;  %1587 = vrot.lane.b32.xlu0 %v1507_v40, %s4381_s23  ;;  %v1701_v39 = vld [vmem:[%s4471_s19 + $0x11e] sm:$0x3]  ;;  %v1700_v40 = vld [vmem:[%s4471_s19 + $0x10e] sm:$0x3] }
 0x215   : > { %v1156_v45 = vpop.permute.xlu1 %1155  ;;  %v1154_v46 = vpop.permute.xlu0 %1153 }
 0x216   : > { %3873 = vst.msk [vmem:[%s4772_s22 + $0x3fa] sm:$0xff] %vm1233_vm2, %v1156_v45  ;;  %3872 = vst.msk [vmem:[%s4772_s22 + $0x3f2] sm:$0xff] %vm1233_vm2, %v1154_v46 }
 0x217   : > { %1593 = vrot.lane.b32.xlu1 %v1510_v43, %s4381_s23  ;;  %1591 = vrot.lane.b32.xlu0 %v1509_v44, %s4381_s23  ;;  %v1703_v43 = vld [vmem:[%s4471_s19 + $0x13e] sm:$0x3]  ;;  %v1702_v44 = vld [vmem:[%s4471_s19 + $0x12e] sm:$0x3] }
 0x219   : > { %v1160_v49 = vpop.permute.xlu1 %1159  ;;  %v1158_v58 = vpop.permute.xlu0 %1157 }
 0x21a   : > { %3875 = vst.msk [vmem:[%s4772_s22 + $0x412] sm:$0xff] %vm1233_vm2, %v1160_v49  ;;  %3874 = vst.msk [vmem:[%s4772_s22 + $0x40a] sm:$0xff] %vm1233_vm2, %v1158_v58 }
 0x21b   : > { %1597 = vrot.lane.b32.xlu1 %v1512_v47, %s4381_s23  ;;  %1595 = vrot.lane.b32.xlu0 %v1511_v48, %s4381_s23  ;;  %v1705_v47 = vld [vmem:[%s4471_s19 + $0x15e] sm:$0x3]  ;;  %v1704_v48 = vld [vmem:[%s4471_s19 + $0x14e] sm:$0x3] }
 0x21d   : > { %v1164_v51 = vpop.permute.xlu1 %1163  ;;  %v1162_v59 = vpop.permute.xlu0 %1161 }
 0x21e   : > { %3877 = vst.msk [vmem:[%s4772_s22 + $0x42a] sm:$0xff] %vm1233_vm2, %v1164_v51  ;;  %3876 = vst.msk [vmem:[%s4772_s22 + $0x422] sm:$0xff] %vm1233_vm2, %v1162_v59 }
 0x21f   : > { %1601 = vrot.lane.b32.xlu1 %v1514_v50, %s4381_s23  ;;  %1599 = vrot.lane.b32.xlu0 %v1513_v55, %s4381_s23  ;;  %v1707_v50 = vld [vmem:[%s4471_s19 + $0x17e] sm:$0x3]  ;;  %v1706_v55 = vld [vmem:[%s4471_s19 + $0x16e] sm:$0x3] }
 0x221   : > { %v1168_v53 = vpop.permute.xlu1 %1167  ;;  %v1166_v57 = vpop.permute.xlu0 %1165 }
 0x222   : > { %3879 = vst.msk [vmem:[%s4772_s22 + $0x442] sm:$0xff] %vm1233_vm2, %v1168_v53  ;;  %3878 = vst.msk [vmem:[%s4772_s22 + $0x43a] sm:$0xff] %vm1233_vm2, %v1166_v57 }
 0x223   : > { %1605 = vrot.lane.b32.xlu1 %v1516_v56, %s4381_s23  ;;  %1603 = vrot.lane.b32.xlu0 %v1515_v52, %s4381_s23  ;;  %v1709_v56 = vld [vmem:[%s4471_s19 + $0x19e] sm:$0x3]  ;;  %v1708_v52 = vld [vmem:[%s4471_s19 + $0x18e] sm:$0x3] }
 0x225   : > { %v1365_v63 = vpop.permute.xlu1 %1364  ;;  %v1363_v60 = vpop.permute.xlu0 %1362 }
 0x226   : > { %3881 = vst.msk [vmem:[%s4772_s22 + $0x48] sm:$0x3] %vm1458_vm3, %v1365_v63  ;;  %3880 = vst.msk [vmem:[%s4772_s22 + $0x30] sm:$0x3] %vm1458_vm3, %v1363_v60 }
 0x227   : > { %1609 = vrot.lane.b32.xlu1 %v1518_v54, %s4381_s23  ;;  %1607 = vrot.lane.b32.xlu0 %v1517_v62, %s4381_s23  ;;  %v1711_v54 = vld [vmem:[%s4471_s19 + $0x1be] sm:$0x3]  ;;  %v1710_v62 = vld [vmem:[%s4471_s19 + $0x1ae] sm:$0x3] }
 0x229   : > { %v1369_v1 = vpop.permute.xlu1 %1368  ;;  %v1367_v2 = vpop.permute.xlu0 %1366 }
 0x22a   : > { %3883 = vst.msk [vmem:[%s4772_s22 + $0x78] sm:$0x3] %vm1458_vm3, %v1369_v1  ;;  %3882 = vst.msk [vmem:[%s4772_s22 + $0x60] sm:$0x3] %vm1458_vm3, %v1367_v2 }
 0x22b   : > { %1613 = vrot.lane.b32.xlu1 %v1520_v3, %s4381_s23  ;;  %1611 = vrot.lane.b32.xlu0 %v1519_v61, %s4381_s23  ;;  %v1713_v3 = vld [vmem:[%s4471_s19 + $0x1de] sm:$0x3]  ;;  %v1712_v61 = vld [vmem:[%s4471_s19 + $0x1ce] sm:$0x3] }
 0x22d   : > { %v1373_v5 = vpop.permute.xlu1 %1372  ;;  %v1371_v6 = vpop.permute.xlu0 %1370 }
 0x22e   : > { %3885 = vst.msk [vmem:[%s4772_s22 + $0xa8] sm:$0x3] %vm1458_vm3, %v1373_v5  ;;  %3884 = vst.msk [vmem:[%s4772_s22 + $0x90] sm:$0x3] %vm1458_vm3, %v1371_v6 }
 0x22f   : > { %1617 = vrot.lane.b32.xlu1 %v1522_v0, %s4381_s23  ;;  %1615 = vrot.lane.b32.xlu0 %v1521_v4, %s4381_s23  ;;  %v1715_v0 = vld [vmem:[%s4471_s19 + $0x1fe] sm:$0x3]  ;;  %v1714_v4 = vld [vmem:[%s4471_s19 + $0x1ee] sm:$0x3] }
 0x231   : > { %v1377_v9 = vpop.permute.xlu1 %1376  ;;  %v1375_v10 = vpop.permute.xlu0 %1374 }
 0x232   : > { %3887 = vst.msk [vmem:[%s4772_s22 + $0xd8] sm:$0x3] %vm1458_vm3, %v1377_v9  ;;  %3886 = vst.msk [vmem:[%s4772_s22 + $0xc0] sm:$0x3] %vm1458_vm3, %v1375_v10 }
 0x233   : > { %1750 = vrot.lane.b32.xlu1 %v1685_v7, %s4382_s24  ;;  %1748 = vrot.lane.b32.xlu0 %v1684_v8, %s4382_s24  ;;  %v1878_v7 = vld [vmem:[%s4471_s19 + $0x10] sm:$0x3]  ;;  %v1877_v8 = vld [vmem:[%s4471_s19] sm:$0x3] }
 0x235   : > { %v1381_v13 = vpop.permute.xlu1 %1380  ;;  %v1379_v14 = vpop.permute.xlu0 %1378 }
 0x236   : > { %3889 = vst.msk [vmem:[%s4772_s22 + $0x168] sm:$0x3] %vm1458_vm3, %v1381_v13  ;;  %3888 = vst.msk [vmem:[%s4772_s22 + $0x150] sm:$0x3] %vm1458_vm3, %v1379_v14 }
 0x237   : > { %1754 = vrot.lane.b32.xlu1 %v1687_v11, %s4382_s24  ;;  %1752 = vrot.lane.b32.xlu0 %v1686_v12, %s4382_s24  ;;  %v1880_v11 = vld [vmem:[%s4471_s19 + $0x30] sm:$0x3]  ;;  %v1879_v12 = vld [vmem:[%s4471_s19 + $0x20] sm:$0x3] }
 0x239   : > { %v1385_v17 = vpop.permute.xlu1 %1384  ;;  %v1383_v18 = vpop.permute.xlu0 %1382 }
 0x23a   : > { %3891 = vst.msk [vmem:[%s4772_s22 + $0x198] sm:$0x3] %vm1458_vm3, %v1385_v17  ;;  %3890 = vst.msk [vmem:[%s4772_s22 + $0x180] sm:$0x3] %vm1458_vm3, %v1383_v18 }
 0x23b   : > { %1758 = vrot.lane.b32.xlu1 %v1689_v15, %s4382_s24  ;;  %1756 = vrot.lane.b32.xlu0 %v1688_v16, %s4382_s24  ;;  %v1882_v15 = vld [vmem:[%s4471_s19 + $0x50] sm:$0x3]  ;;  %v1881_v16 = vld [vmem:[%s4471_s19 + $0x40] sm:$0x3] }
 0x23d   : > { %v1389_v21 = vpop.permute.xlu1 %1388  ;;  %v1387_v22 = vpop.permute.xlu0 %1386 }
 0x23e   : > { %3893 = vst.msk [vmem:[%s4772_s22 + $0x1c8] sm:$0x3] %vm1458_vm3, %v1389_v21  ;;  %3892 = vst.msk [vmem:[%s4772_s22 + $0x1b0] sm:$0x3] %vm1458_vm3, %v1387_v22 }
 0x23f   : > { %1762 = vrot.lane.b32.xlu1 %v1691_v19, %s4382_s24  ;;  %1760 = vrot.lane.b32.xlu0 %v1690_v20, %s4382_s24  ;;  %v1884_v19 = vld [vmem:[%s4471_s19 + $0x70] sm:$0x3]  ;;  %v1883_v20 = vld [vmem:[%s4471_s19 + $0x60] sm:$0x3] }
 0x241   : > { %v1393_v25 = vpop.permute.xlu1 %1392  ;;  %v1391_v26 = vpop.permute.xlu0 %1390 }
 0x242   : > { %3895 = vst.msk [vmem:[%s4772_s22 + $0x1f8] sm:$0x3] %vm1458_vm3, %v1393_v25  ;;  %3894 = vst.msk [vmem:[%s4772_s22 + $0x1e0] sm:$0x3] %vm1458_vm3, %v1391_v26 }
 0x243   : > { %1766 = vrot.lane.b32.xlu1 %v1693_v23, %s4382_s24  ;;  %1764 = vrot.lane.b32.xlu0 %v1692_v24, %s4382_s24  ;;  %v1886_v23 = vld [vmem:[%s4471_s19 + $0x90] sm:$0x3]  ;;  %v1885_v24 = vld [vmem:[%s4471_s19 + $0x80] sm:$0x3] }
 0x245   : > { %v1397_v29 = vpop.permute.xlu1 %1396  ;;  %v1395_v30 = vpop.permute.xlu0 %1394 }
 0x246   : > { %3897 = vst.msk [vmem:[%s4772_s22 + $0x288] sm:$0x3] %vm1458_vm3, %v1397_v29  ;;  %3896 = vst.msk [vmem:[%s4772_s22 + $0x270] sm:$0x3] %vm1458_vm3, %v1395_v30 }
 0x247   : > { %1770 = vrot.lane.b32.xlu1 %v1695_v27, %s4382_s24  ;;  %1768 = vrot.lane.b32.xlu0 %v1694_v28, %s4382_s24  ;;  %v1888_v27 = vld [vmem:[%s4471_s19 + $0xb0] sm:$0x3]  ;;  %v1887_v28 = vld [vmem:[%s4471_s19 + $0xa0] sm:$0x3] }
 0x249   : > { %v1401_v33 = vpop.permute.xlu1 %1400  ;;  %v1399_v34 = vpop.permute.xlu0 %1398 }
 0x24a   : > { %3899 = vst.msk [vmem:[%s4772_s22 + $0x2b8] sm:$0x3] %vm1458_vm3, %v1401_v33  ;;  %3898 = vst.msk [vmem:[%s4772_s22 + $0x2a0] sm:$0x3] %vm1458_vm3, %v1399_v34 }
 0x24b   : > { %1774 = vrot.lane.b32.xlu1 %v1697_v31, %s4382_s24  ;;  %1772 = vrot.lane.b32.xlu0 %v1696_v32, %s4382_s24  ;;  %v1890_v31 = vld [vmem:[%s4471_s19 + $0xd0] sm:$0x3]  ;;  %v1889_v32 = vld [vmem:[%s4471_s19 + $0xc0] sm:$0x3] }
 0x24d   : > { %v1405_v37 = vpop.permute.xlu1 %1404  ;;  %v1403_v38 = vpop.permute.xlu0 %1402 }
 0x24e   : > { %3901 = vst.msk [vmem:[%s4772_s22 + $0x2e8] sm:$0x3] %vm1458_vm3, %v1405_v37  ;;  %3900 = vst.msk [vmem:[%s4772_s22 + $0x2d0] sm:$0x3] %vm1458_vm3, %v1403_v38 }
 0x24f   : > { %1778 = vrot.lane.b32.xlu1 %v1699_v35, %s4382_s24  ;;  %1776 = vrot.lane.b32.xlu0 %v1698_v36, %s4382_s24  ;;  %v1892_v35 = vld [vmem:[%s4471_s19 + $0xf0] sm:$0x3]  ;;  %v1891_v36 = vld [vmem:[%s4471_s19 + $0xe0] sm:$0x3] }
 0x251   : > { %v1409_v41 = vpop.permute.xlu1 %1408  ;;  %v1407_v42 = vpop.permute.xlu0 %1406 }
 0x252   : > { %3903 = vst.msk [vmem:[%s4772_s22 + $0x318] sm:$0x3] %vm1458_vm3, %v1409_v41  ;;  %3902 = vst.msk [vmem:[%s4772_s22 + $0x300] sm:$0x3] %vm1458_vm3, %v1407_v42 }
 0x253   : > { %1782 = vrot.lane.b32.xlu1 %v1701_v39, %s4382_s24  ;;  %1780 = vrot.lane.b32.xlu0 %v1700_v40, %s4382_s24  ;;  %v1894_v39 = vld [vmem:[%s4471_s19 + $0x110] sm:$0x3]  ;;  %v1893_v40 = vld [vmem:[%s4471_s19 + $0x100] sm:$0x3] }
 0x255   : > { %v1413_v45 = vpop.permute.xlu1 %1412  ;;  %v1411_v46 = vpop.permute.xlu0 %1410 }
 0x256   : > { %3905 = vst.msk [vmem:[%s4772_s22 + $0x3a8] sm:$0x3] %vm1458_vm3, %v1413_v45  ;;  %3904 = vst.msk [vmem:[%s4772_s22 + $0x390] sm:$0x3] %vm1458_vm3, %v1411_v46 }
 0x257   : > { %1786 = vrot.lane.b32.xlu1 %v1703_v43, %s4382_s24  ;;  %1784 = vrot.lane.b32.xlu0 %v1702_v44, %s4382_s24  ;;  %v1896_v43 = vld [vmem:[%s4471_s19 + $0x130] sm:$0x3]  ;;  %v1895_v44 = vld [vmem:[%s4471_s19 + $0x120] sm:$0x3] }
 0x259   : > { %v1417_v49 = vpop.permute.xlu1 %1416  ;;  %v1415_v58 = vpop.permute.xlu0 %1414 }
 0x25a   : > { %3907 = vst.msk [vmem:[%s4772_s22 + $0x3d8] sm:$0x3] %vm1458_vm3, %v1417_v49  ;;  %3906 = vst.msk [vmem:[%s4772_s22 + $0x3c0] sm:$0x3] %vm1458_vm3, %v1415_v58 }
 0x25b   : > { %1790 = vrot.lane.b32.xlu1 %v1705_v47, %s4382_s24  ;;  %1788 = vrot.lane.b32.xlu0 %v1704_v48, %s4382_s24  ;;  %v1898_v47 = vld [vmem:[%s4471_s19 + $0x150] sm:$0x3]  ;;  %v1897_v48 = vld [vmem:[%s4471_s19 + $0x140] sm:$0x3] }
 0x25d   : > { %v1421_v51 = vpop.permute.xlu1 %1420  ;;  %v1419_v59 = vpop.permute.xlu0 %1418 }
 0x25e   : > { %3909 = vst.msk [vmem:[%s4772_s22 + $0x408] sm:$0x3] %vm1458_vm3, %v1421_v51  ;;  %3908 = vst.msk [vmem:[%s4772_s22 + $0x3f0] sm:$0x3] %vm1458_vm3, %v1419_v59 }
 0x25f   : > { %1794 = vrot.lane.b32.xlu1 %v1707_v50, %s4382_s24  ;;  %1792 = vrot.lane.b32.xlu0 %v1706_v55, %s4382_s24  ;;  %v1900_v50 = vld [vmem:[%s4471_s19 + $0x170] sm:$0x3]  ;;  %v1899_v55 = vld [vmem:[%s4471_s19 + $0x160] sm:$0x3] }
 0x261   : > { %v1425_v53 = vpop.permute.xlu1 %1424  ;;  %v1423_v57 = vpop.permute.xlu0 %1422 }
 0x262   : > { %3911 = vst.msk [vmem:[%s4772_s22 + $0x438] sm:$0x3] %vm1458_vm3, %v1425_v53  ;;  %3910 = vst.msk [vmem:[%s4772_s22 + $0x420] sm:$0x3] %vm1458_vm3, %v1423_v57 }
 0x263   : > { %1798 = vrot.lane.b32.xlu1 %v1709_v56, %s4382_s24  ;;  %1796 = vrot.lane.b32.xlu0 %v1708_v52, %s4382_s24  ;;  %v1902_v56 = vld [vmem:[%s4471_s19 + $0x190] sm:$0x3]  ;;  %v1901_v52 = vld [vmem:[%s4471_s19 + $0x180] sm:$0x3] }
 0x265   : > { %v1558_v63 = vpop.permute.xlu1 %1557  ;;  %v1556_v60 = vpop.permute.xlu0 %1555 }
 0x266   : > { %3913 = vst.msk [vmem:[%s4772_s22 + $0x48] sm:$0x3] %vm1651_vm4, %v1558_v63  ;;  %3912 = vst.msk [vmem:[%s4772_s22 + $0x30] sm:$0x3] %vm1651_vm4, %v1556_v60 }
 0x267   : > { %1802 = vrot.lane.b32.xlu1 %v1711_v54, %s4382_s24  ;;  %1800 = vrot.lane.b32.xlu0 %v1710_v62, %s4382_s24  ;;  %v1904_v54 = vld [vmem:[%s4471_s19 + $0x1b0] sm:$0x3]  ;;  %v1903_v62 = vld [vmem:[%s4471_s19 + $0x1a0] sm:$0x3] }
 0x269   : > { %v1562_v1 = vpop.permute.xlu1 %1561  ;;  %v1560_v2 = vpop.permute.xlu0 %1559 }
 0x26a   : > { %3915 = vst.msk [vmem:[%s4772_s22 + $0x78] sm:$0x3] %vm1651_vm4, %v1562_v1  ;;  %3914 = vst.msk [vmem:[%s4772_s22 + $0x60] sm:$0x3] %vm1651_vm4, %v1560_v2 }
 0x26b   : > { %1806 = vrot.lane.b32.xlu1 %v1713_v3, %s4382_s24  ;;  %1804 = vrot.lane.b32.xlu0 %v1712_v61, %s4382_s24  ;;  %v1906_v3 = vld [vmem:[%s4471_s19 + $0x1d0] sm:$0x3]  ;;  %v1905_v61 = vld [vmem:[%s4471_s19 + $0x1c0] sm:$0x3] }
 0x26d   : > { %v1566_v5 = vpop.permute.xlu1 %1565  ;;  %v1564_v6 = vpop.permute.xlu0 %1563 }
 0x26e   : > { %3917 = vst.msk [vmem:[%s4772_s22 + $0xa8] sm:$0x3] %vm1651_vm4, %v1566_v5  ;;  %3916 = vst.msk [vmem:[%s4772_s22 + $0x90] sm:$0x3] %vm1651_vm4, %v1564_v6 }
 0x26f   : > { %1810 = vrot.lane.b32.xlu1 %v1715_v0, %s4382_s24  ;;  %1808 = vrot.lane.b32.xlu0 %v1714_v4, %s4382_s24  ;;  %v1908_v0 = vld [vmem:[%s4471_s19 + $0x1f0] sm:$0x3]  ;;  %v1907_v4 = vld [vmem:[%s4471_s19 + $0x1e0] sm:$0x3] }
 0x271   : > { %v1570_v9 = vpop.permute.xlu1 %1569  ;;  %v1568_v10 = vpop.permute.xlu0 %1567 }
 0x272   : > { %3919 = vst.msk [vmem:[%s4772_s22 + $0xd8] sm:$0x3] %vm1651_vm4, %v1570_v9  ;;  %3918 = vst.msk [vmem:[%s4772_s22 + $0xc0] sm:$0x3] %vm1651_vm4, %v1568_v10 }
 0x273   : > { %1943 = vrot.lane.b32.xlu1 %v1878_v7, %s4380_s20  ;;  %1941 = vrot.lane.b32.xlu0 %v1877_v8, %s4380_s20  ;;  %v2070_v7 = vld [vmem:[%s4471_s19 + $0x10] sm:$0x3]  ;;  %v2069_v8 = vld [vmem:[%s4471_s19] sm:$0x3] }
 0x275   : > { %v1574_v13 = vpop.permute.xlu1 %1573  ;;  %v1572_v14 = vpop.permute.xlu0 %1571 }
 0x276   : > { %3921 = vst.msk [vmem:[%s4772_s22 + $0x168] sm:$0x3] %vm1651_vm4, %v1574_v13  ;;  %3920 = vst.msk [vmem:[%s4772_s22 + $0x150] sm:$0x3] %vm1651_vm4, %v1572_v14 }
 0x277   : > { %1947 = vrot.lane.b32.xlu1 %v1880_v11, %s4380_s20  ;;  %1945 = vrot.lane.b32.xlu0 %v1879_v12, %s4380_s20  ;;  %v2072_v11 = vld [vmem:[%s4471_s19 + $0x30] sm:$0x3]  ;;  %v2071_v12 = vld [vmem:[%s4471_s19 + $0x20] sm:$0x3] }
 0x279   : > { %v1578_v17 = vpop.permute.xlu1 %1577  ;;  %v1576_v18 = vpop.permute.xlu0 %1575 }
 0x27a   : > { %3923 = vst.msk [vmem:[%s4772_s22 + $0x198] sm:$0x3] %vm1651_vm4, %v1578_v17  ;;  %3922 = vst.msk [vmem:[%s4772_s22 + $0x180] sm:$0x3] %vm1651_vm4, %v1576_v18 }
 0x27b   : > { %1951 = vrot.lane.b32.xlu1 %v1882_v15, %s4380_s20  ;;  %1949 = vrot.lane.b32.xlu0 %v1881_v16, %s4380_s20  ;;  %v2074_v15 = vld [vmem:[%s4471_s19 + $0x50] sm:$0x3]  ;;  %v2073_v16 = vld [vmem:[%s4471_s19 + $0x40] sm:$0x3] }
 0x27d   : > { %v1582_v21 = vpop.permute.xlu1 %1581  ;;  %v1580_v22 = vpop.permute.xlu0 %1579 }
 0x27e   : > { %3925 = vst.msk [vmem:[%s4772_s22 + $0x1c8] sm:$0x3] %vm1651_vm4, %v1582_v21  ;;  %3924 = vst.msk [vmem:[%s4772_s22 + $0x1b0] sm:$0x3] %vm1651_vm4, %v1580_v22 }
 0x27f   : > { %1955 = vrot.lane.b32.xlu1 %v1884_v19, %s4380_s20  ;;  %1953 = vrot.lane.b32.xlu0 %v1883_v20, %s4380_s20  ;;  %v2076_v19 = vld [vmem:[%s4471_s19 + $0x70] sm:$0x3]  ;;  %v2075_v20 = vld [vmem:[%s4471_s19 + $0x60] sm:$0x3] }
 0x281   : > { %v1586_v25 = vpop.permute.xlu1 %1585  ;;  %v1584_v26 = vpop.permute.xlu0 %1583 }
 0x282   : > { %3927 = vst.msk [vmem:[%s4772_s22 + $0x1f8] sm:$0x3] %vm1651_vm4, %v1586_v25  ;;  %3926 = vst.msk [vmem:[%s4772_s22 + $0x1e0] sm:$0x3] %vm1651_vm4, %v1584_v26 }
 0x283   : > { %1959 = vrot.lane.b32.xlu1 %v1886_v23, %s4380_s20  ;;  %1957 = vrot.lane.b32.xlu0 %v1885_v24, %s4380_s20  ;;  %v2078_v23 = vld [vmem:[%s4471_s19 + $0x90] sm:$0x3]  ;;  %v2077_v24 = vld [vmem:[%s4471_s19 + $0x80] sm:$0x3] }
 0x285   : > { %v1590_v29 = vpop.permute.xlu1 %1589  ;;  %v1588_v30 = vpop.permute.xlu0 %1587 }
 0x286   : > { %3929 = vst.msk [vmem:[%s4772_s22 + $0x288] sm:$0x3] %vm1651_vm4, %v1590_v29  ;;  %3928 = vst.msk [vmem:[%s4772_s22 + $0x270] sm:$0x3] %vm1651_vm4, %v1588_v30 }
 0x287   : > { %1963 = vrot.lane.b32.xlu1 %v1888_v27, %s4380_s20  ;;  %1961 = vrot.lane.b32.xlu0 %v1887_v28, %s4380_s20  ;;  %v2080_v27 = vld [vmem:[%s4471_s19 + $0xb0] sm:$0x3]  ;;  %v2079_v28 = vld [vmem:[%s4471_s19 + $0xa0] sm:$0x3] }
 0x289   : > { %v1594_v33 = vpop.permute.xlu1 %1593  ;;  %v1592_v34 = vpop.permute.xlu0 %1591 }
 0x28a   : > { %3931 = vst.msk [vmem:[%s4772_s22 + $0x2b8] sm:$0x3] %vm1651_vm4, %v1594_v33  ;;  %3930 = vst.msk [vmem:[%s4772_s22 + $0x2a0] sm:$0x3] %vm1651_vm4, %v1592_v34 }
 0x28b   : > { %1967 = vrot.lane.b32.xlu1 %v1890_v31, %s4380_s20  ;;  %1965 = vrot.lane.b32.xlu0 %v1889_v32, %s4380_s20  ;;  %v2082_v31 = vld [vmem:[%s4471_s19 + $0xd0] sm:$0x3]  ;;  %v2081_v32 = vld [vmem:[%s4471_s19 + $0xc0] sm:$0x3] }
 0x28d   : > { %v1598_v37 = vpop.permute.xlu1 %1597  ;;  %v1596_v38 = vpop.permute.xlu0 %1595 }
 0x28e   : > { %3933 = vst.msk [vmem:[%s4772_s22 + $0x2e8] sm:$0x3] %vm1651_vm4, %v1598_v37  ;;  %3932 = vst.msk [vmem:[%s4772_s22 + $0x2d0] sm:$0x3] %vm1651_vm4, %v1596_v38 }
 0x28f   : > { %1971 = vrot.lane.b32.xlu1 %v1892_v35, %s4380_s20  ;;  %1969 = vrot.lane.b32.xlu0 %v1891_v36, %s4380_s20  ;;  %v2084_v35 = vld [vmem:[%s4471_s19 + $0xf0] sm:$0x3]  ;;  %v2083_v36 = vld [vmem:[%s4471_s19 + $0xe0] sm:$0x3] }
 0x291   : > { %v1602_v41 = vpop.permute.xlu1 %1601  ;;  %v1600_v42 = vpop.permute.xlu0 %1599 }
 0x292   : > { %3935 = vst.msk [vmem:[%s4772_s22 + $0x318] sm:$0x3] %vm1651_vm4, %v1602_v41  ;;  %3934 = vst.msk [vmem:[%s4772_s22 + $0x300] sm:$0x3] %vm1651_vm4, %v1600_v42 }
 0x293   : > { %1975 = vrot.lane.b32.xlu1 %v1894_v39, %s4380_s20  ;;  %1973 = vrot.lane.b32.xlu0 %v1893_v40, %s4380_s20  ;;  %v2086_v39 = vld [vmem:[%s4471_s19 + $0x110] sm:$0x3]  ;;  %v2085_v40 = vld [vmem:[%s4471_s19 + $0x100] sm:$0x3] }
 0x295   : > { %v1606_v45 = vpop.permute.xlu1 %1605  ;;  %v1604_v46 = vpop.permute.xlu0 %1603 }
 0x296   : > { %3937 = vst.msk [vmem:[%s4772_s22 + $0x3a8] sm:$0x3] %vm1651_vm4, %v1606_v45  ;;  %3936 = vst.msk [vmem:[%s4772_s22 + $0x390] sm:$0x3] %vm1651_vm4, %v1604_v46 }
 0x297   : > { %1979 = vrot.lane.b32.xlu1 %v1896_v43, %s4380_s20  ;;  %1977 = vrot.lane.b32.xlu0 %v1895_v44, %s4380_s20  ;;  %v2088_v43 = vld [vmem:[%s4471_s19 + $0x130] sm:$0x3]  ;;  %v2087_v44 = vld [vmem:[%s4471_s19 + $0x120] sm:$0x3] }
 0x299   : > { %v1610_v49 = vpop.permute.xlu1 %1609  ;;  %v1608_v58 = vpop.permute.xlu0 %1607 }
 0x29a   : > { %3939 = vst.msk [vmem:[%s4772_s22 + $0x3d8] sm:$0x3] %vm1651_vm4, %v1610_v49  ;;  %3938 = vst.msk [vmem:[%s4772_s22 + $0x3c0] sm:$0x3] %vm1651_vm4, %v1608_v58 }
 0x29b   : > { %1983 = vrot.lane.b32.xlu1 %v1898_v47, %s4380_s20  ;;  %1981 = vrot.lane.b32.xlu0 %v1897_v48, %s4380_s20  ;;  %v2090_v47 = vld [vmem:[%s4471_s19 + $0x150] sm:$0x3]  ;;  %v2089_v48 = vld [vmem:[%s4471_s19 + $0x140] sm:$0x3] }
 0x29d   : > { %v1614_v51 = vpop.permute.xlu1 %1613  ;;  %v1612_v59 = vpop.permute.xlu0 %1611 }
 0x29e   : > { %3941 = vst.msk [vmem:[%s4772_s22 + $0x408] sm:$0x3] %vm1651_vm4, %v1614_v51  ;;  %3940 = vst.msk [vmem:[%s4772_s22 + $0x3f0] sm:$0x3] %vm1651_vm4, %v1612_v59 }
 0x29f   : > { %1987 = vrot.lane.b32.xlu1 %v1900_v50, %s4380_s20  ;;  %1985 = vrot.lane.b32.xlu0 %v1899_v55, %s4380_s20  ;;  %v2092_v50 = vld [vmem:[%s4471_s19 + $0x170] sm:$0x3]  ;;  %v2091_v55 = vld [vmem:[%s4471_s19 + $0x160] sm:$0x3] }
 0x2a1   : > { %v1618_v53 = vpop.permute.xlu1 %1617  ;;  %v1616_v57 = vpop.permute.xlu0 %1615 }
 0x2a2   : > { %3943 = vst.msk [vmem:[%s4772_s22 + $0x438] sm:$0x3] %vm1651_vm4, %v1618_v53  ;;  %3942 = vst.msk [vmem:[%s4772_s22 + $0x420] sm:$0x3] %vm1651_vm4, %v1616_v57 }
 0x2a3   : > { %1991 = vrot.lane.b32.xlu1 %v1902_v56, %s4380_s20  ;;  %1989 = vrot.lane.b32.xlu0 %v1901_v52, %s4380_s20  ;;  %v2094_v56 = vld [vmem:[%s4471_s19 + $0x190] sm:$0x3]  ;;  %v2093_v52 = vld [vmem:[%s4471_s19 + $0x180] sm:$0x3] }
 0x2a5   : > { %v1751_v63 = vpop.permute.xlu1 %1750  ;;  %v1749_v60 = vpop.permute.xlu0 %1748 }
 0x2a6   : > { %3945 = vst.msk [vmem:[%s4772_s22 + $0x48] sm:$0x3] %vm1844_vm5, %v1751_v63  ;;  %3944 = vst.msk [vmem:[%s4772_s22 + $0x30] sm:$0x3] %vm1844_vm5, %v1749_v60 }
 0x2a7   : > { %1995 = vrot.lane.b32.xlu1 %v1904_v54, %s4380_s20  ;;  %1993 = vrot.lane.b32.xlu0 %v1903_v62, %s4380_s20  ;;  %v2096_v54 = vld [vmem:[%s4471_s19 + $0x1b0] sm:$0x3]  ;;  %v2095_v62 = vld [vmem:[%s4471_s19 + $0x1a0] sm:$0x3] }
 0x2a9   : > { %v1755_v1 = vpop.permute.xlu1 %1754  ;;  %v1753_v2 = vpop.permute.xlu0 %1752 }
 0x2aa   : > { %3947 = vst.msk [vmem:[%s4772_s22 + $0x78] sm:$0x3] %vm1844_vm5, %v1755_v1  ;;  %3946 = vst.msk [vmem:[%s4772_s22 + $0x60] sm:$0x3] %vm1844_vm5, %v1753_v2 }
 0x2ab   : > { %1999 = vrot.lane.b32.xlu1 %v1906_v3, %s4380_s20  ;;  %1997 = vrot.lane.b32.xlu0 %v1905_v61, %s4380_s20  ;;  %v2098_v3 = vld [vmem:[%s4471_s19 + $0x1d0] sm:$0x3]  ;;  %v2097_v61 = vld [vmem:[%s4471_s19 + $0x1c0] sm:$0x3] }
 0x2ad   : > { %v1759_v5 = vpop.permute.xlu1 %1758  ;;  %v1757_v6 = vpop.permute.xlu0 %1756 }
 0x2ae   : > { %3949 = vst.msk [vmem:[%s4772_s22 + $0xa8] sm:$0x3] %vm1844_vm5, %v1759_v5  ;;  %3948 = vst.msk [vmem:[%s4772_s22 + $0x90] sm:$0x3] %vm1844_vm5, %v1757_v6 }
 0x2af   : > { %2003 = vrot.lane.b32.xlu1 %v1908_v0, %s4380_s20  ;;  %2001 = vrot.lane.b32.xlu0 %v1907_v4, %s4380_s20  ;;  %v2100_v0 = vld [vmem:[%s4471_s19 + $0x1f0] sm:$0x3]  ;;  %v2099_v4 = vld [vmem:[%s4471_s19 + $0x1e0] sm:$0x3] }
 0x2b1   : > { %v1763_v9 = vpop.permute.xlu1 %1762  ;;  %v1761_v10 = vpop.permute.xlu0 %1760 }
 0x2b2   : > { %3951 = vst.msk [vmem:[%s4772_s22 + $0xd8] sm:$0x3] %vm1844_vm5, %v1763_v9  ;;  %3950 = vst.msk [vmem:[%s4772_s22 + $0xc0] sm:$0x3] %vm1844_vm5, %v1761_v10 }
 0x2b3   : > { %2135 = vrot.lane.b32.xlu1 %v2070_v7, %s4381_s23  ;;  %2133 = vrot.lane.b32.xlu0 %v2069_v8, %s4381_s23  ;;  %v2262_v7 = vld [vmem:[%s4471_s19 + $0x10] sm:$0x3]  ;;  %v2261_v8 = vld [vmem:[%s4471_s19] sm:$0x3] }
 0x2b5   : > { %v1767_v13 = vpop.permute.xlu1 %1766  ;;  %v1765_v14 = vpop.permute.xlu0 %1764 }
 0x2b6   : > { %3953 = vst.msk [vmem:[%s4772_s22 + $0x168] sm:$0x3] %vm1844_vm5, %v1767_v13  ;;  %3952 = vst.msk [vmem:[%s4772_s22 + $0x150] sm:$0x3] %vm1844_vm5, %v1765_v14 }
 0x2b7   : > { %2139 = vrot.lane.b32.xlu1 %v2072_v11, %s4381_s23  ;;  %2137 = vrot.lane.b32.xlu0 %v2071_v12, %s4381_s23  ;;  %v2264_v11 = vld [vmem:[%s4471_s19 + $0x30] sm:$0x3]  ;;  %v2263_v12 = vld [vmem:[%s4471_s19 + $0x20] sm:$0x3] }
 0x2b9   : > { %v1771_v17 = vpop.permute.xlu1 %1770  ;;  %v1769_v18 = vpop.permute.xlu0 %1768 }
 0x2ba   : > { %3955 = vst.msk [vmem:[%s4772_s22 + $0x198] sm:$0x3] %vm1844_vm5, %v1771_v17  ;;  %3954 = vst.msk [vmem:[%s4772_s22 + $0x180] sm:$0x3] %vm1844_vm5, %v1769_v18 }
 0x2bb   : > { %2143 = vrot.lane.b32.xlu1 %v2074_v15, %s4381_s23  ;;  %2141 = vrot.lane.b32.xlu0 %v2073_v16, %s4381_s23  ;;  %v2266_v15 = vld [vmem:[%s4471_s19 + $0x50] sm:$0x3]  ;;  %v2265_v16 = vld [vmem:[%s4471_s19 + $0x40] sm:$0x3] }
 0x2bd   : > { %v1775_v21 = vpop.permute.xlu1 %1774  ;;  %v1773_v22 = vpop.permute.xlu0 %1772 }
 0x2be   : > { %3957 = vst.msk [vmem:[%s4772_s22 + $0x1c8] sm:$0x3] %vm1844_vm5, %v1775_v21  ;;  %3956 = vst.msk [vmem:[%s4772_s22 + $0x1b0] sm:$0x3] %vm1844_vm5, %v1773_v22 }
 0x2bf   : > { %2147 = vrot.lane.b32.xlu1 %v2076_v19, %s4381_s23  ;;  %2145 = vrot.lane.b32.xlu0 %v2075_v20, %s4381_s23  ;;  %v2268_v19 = vld [vmem:[%s4471_s19 + $0x70] sm:$0x3]  ;;  %v2267_v20 = vld [vmem:[%s4471_s19 + $0x60] sm:$0x3] }
 0x2c1   : > { %v1779_v25 = vpop.permute.xlu1 %1778  ;;  %v1777_v26 = vpop.permute.xlu0 %1776 }
 0x2c2   : > { %3959 = vst.msk [vmem:[%s4772_s22 + $0x1f8] sm:$0x3] %vm1844_vm5, %v1779_v25  ;;  %3958 = vst.msk [vmem:[%s4772_s22 + $0x1e0] sm:$0x3] %vm1844_vm5, %v1777_v26 }
 0x2c3   : > { %2151 = vrot.lane.b32.xlu1 %v2078_v23, %s4381_s23  ;;  %2149 = vrot.lane.b32.xlu0 %v2077_v24, %s4381_s23  ;;  %v2270_v23 = vld [vmem:[%s4471_s19 + $0x90] sm:$0x3]  ;;  %v2269_v24 = vld [vmem:[%s4471_s19 + $0x80] sm:$0x3] }
 0x2c5   : > { %v1783_v29 = vpop.permute.xlu1 %1782  ;;  %v1781_v30 = vpop.permute.xlu0 %1780 }
 0x2c6   : > { %3961 = vst.msk [vmem:[%s4772_s22 + $0x288] sm:$0x3] %vm1844_vm5, %v1783_v29  ;;  %3960 = vst.msk [vmem:[%s4772_s22 + $0x270] sm:$0x3] %vm1844_vm5, %v1781_v30 }
 0x2c7   : > { %2155 = vrot.lane.b32.xlu1 %v2080_v27, %s4381_s23  ;;  %2153 = vrot.lane.b32.xlu0 %v2079_v28, %s4381_s23  ;;  %v2272_v27 = vld [vmem:[%s4471_s19 + $0xb0] sm:$0x3]  ;;  %v2271_v28 = vld [vmem:[%s4471_s19 + $0xa0] sm:$0x3] }
 0x2c9   : > { %v1787_v33 = vpop.permute.xlu1 %1786  ;;  %v1785_v34 = vpop.permute.xlu0 %1784 }
 0x2ca   : > { %3963 = vst.msk [vmem:[%s4772_s22 + $0x2b8] sm:$0x3] %vm1844_vm5, %v1787_v33  ;;  %3962 = vst.msk [vmem:[%s4772_s22 + $0x2a0] sm:$0x3] %vm1844_vm5, %v1785_v34 }
 0x2cb   : > { %2159 = vrot.lane.b32.xlu1 %v2082_v31, %s4381_s23  ;;  %2157 = vrot.lane.b32.xlu0 %v2081_v32, %s4381_s23  ;;  %v2274_v31 = vld [vmem:[%s4471_s19 + $0xd0] sm:$0x3]  ;;  %v2273_v32 = vld [vmem:[%s4471_s19 + $0xc0] sm:$0x3] }
 0x2cd   : > { %v1791_v37 = vpop.permute.xlu1 %1790  ;;  %v1789_v38 = vpop.permute.xlu0 %1788 }
 0x2ce   : > { %3965 = vst.msk [vmem:[%s4772_s22 + $0x2e8] sm:$0x3] %vm1844_vm5, %v1791_v37  ;;  %3964 = vst.msk [vmem:[%s4772_s22 + $0x2d0] sm:$0x3] %vm1844_vm5, %v1789_v38 }
 0x2cf   : > { %2163 = vrot.lane.b32.xlu1 %v2084_v35, %s4381_s23  ;;  %2161 = vrot.lane.b32.xlu0 %v2083_v36, %s4381_s23  ;;  %v2276_v35 = vld [vmem:[%s4471_s19 + $0xf0] sm:$0x3]  ;;  %v2275_v36 = vld [vmem:[%s4471_s19 + $0xe0] sm:$0x3] }
 0x2d1   : > { %v1795_v41 = vpop.permute.xlu1 %1794  ;;  %v1793_v42 = vpop.permute.xlu0 %1792 }
 0x2d2   : > { %3967 = vst.msk [vmem:[%s4772_s22 + $0x318] sm:$0x3] %vm1844_vm5, %v1795_v41  ;;  %3966 = vst.msk [vmem:[%s4772_s22 + $0x300] sm:$0x3] %vm1844_vm5, %v1793_v42 }
 0x2d3   : > { %2167 = vrot.lane.b32.xlu1 %v2086_v39, %s4381_s23  ;;  %2165 = vrot.lane.b32.xlu0 %v2085_v40, %s4381_s23  ;;  %v2278_v39 = vld [vmem:[%s4471_s19 + $0x110] sm:$0x3]  ;;  %v2277_v40 = vld [vmem:[%s4471_s19 + $0x100] sm:$0x3] }
 0x2d5   : > { %v1799_v45 = vpop.permute.xlu1 %1798  ;;  %v1797_v46 = vpop.permute.xlu0 %1796 }
 0x2d6   : > { %3969 = vst.msk [vmem:[%s4772_s22 + $0x3a8] sm:$0x3] %vm1844_vm5, %v1799_v45  ;;  %3968 = vst.msk [vmem:[%s4772_s22 + $0x390] sm:$0x3] %vm1844_vm5, %v1797_v46 }
 0x2d7   : > { %2171 = vrot.lane.b32.xlu1 %v2088_v43, %s4381_s23  ;;  %2169 = vrot.lane.b32.xlu0 %v2087_v44, %s4381_s23  ;;  %v2280_v43 = vld [vmem:[%s4471_s19 + $0x130] sm:$0x3]  ;;  %v2279_v44 = vld [vmem:[%s4471_s19 + $0x120] sm:$0x3] }
 0x2d9   : > { %v1803_v49 = vpop.permute.xlu1 %1802  ;;  %v1801_v58 = vpop.permute.xlu0 %1800 }
 0x2da   : > { %3971 = vst.msk [vmem:[%s4772_s22 + $0x3d8] sm:$0x3] %vm1844_vm5, %v1803_v49  ;;  %3970 = vst.msk [vmem:[%s4772_s22 + $0x3c0] sm:$0x3] %vm1844_vm5, %v1801_v58 }
 0x2db   : > { %2175 = vrot.lane.b32.xlu1 %v2090_v47, %s4381_s23  ;;  %2173 = vrot.lane.b32.xlu0 %v2089_v48, %s4381_s23  ;;  %v2282_v47 = vld [vmem:[%s4471_s19 + $0x150] sm:$0x3]  ;;  %v2281_v48 = vld [vmem:[%s4471_s19 + $0x140] sm:$0x3] }
 0x2dd   : > { %v1807_v51 = vpop.permute.xlu1 %1806  ;;  %v1805_v59 = vpop.permute.xlu0 %1804 }
 0x2de   : > { %3973 = vst.msk [vmem:[%s4772_s22 + $0x408] sm:$0x3] %vm1844_vm5, %v1807_v51  ;;  %3972 = vst.msk [vmem:[%s4772_s22 + $0x3f0] sm:$0x3] %vm1844_vm5, %v1805_v59 }
 0x2df   : > { %2179 = vrot.lane.b32.xlu1 %v2092_v50, %s4381_s23  ;;  %2177 = vrot.lane.b32.xlu0 %v2091_v55, %s4381_s23  ;;  %v2284_v50 = vld [vmem:[%s4471_s19 + $0x170] sm:$0x3]  ;;  %v2283_v55 = vld [vmem:[%s4471_s19 + $0x160] sm:$0x3] }
 0x2e1   : > { %v1811_v53 = vpop.permute.xlu1 %1810  ;;  %v1809_v57 = vpop.permute.xlu0 %1808 }
 0x2e2   : > { %3975 = vst.msk [vmem:[%s4772_s22 + $0x438] sm:$0x3] %vm1844_vm5, %v1811_v53  ;;  %3974 = vst.msk [vmem:[%s4772_s22 + $0x420] sm:$0x3] %vm1844_vm5, %v1809_v57 }
 0x2e3   : > { %2183 = vrot.lane.b32.xlu1 %v2094_v56, %s4381_s23  ;;  %2181 = vrot.lane.b32.xlu0 %v2093_v52, %s4381_s23  ;;  %v2286_v56 = vld [vmem:[%s4471_s19 + $0x190] sm:$0x3]  ;;  %v2285_v52 = vld [vmem:[%s4471_s19 + $0x180] sm:$0x3] }
 0x2e5   : > { %v1944_v63 = vpop.permute.xlu1 %1943  ;;  %v1942_v60 = vpop.permute.xlu0 %1941 }
 0x2e6   : > { %3977 = vst.msk [vmem:[%s4772_s22 + $0x5a] sm:$0x3] %vm1458_vm3, %v1944_v63  ;;  %3976 = vst.msk [vmem:[%s4772_s22 + $0x42] sm:$0x3] %vm1458_vm3, %v1942_v60 }
 0x2e7   : > { %2187 = vrot.lane.b32.xlu1 %v2096_v54, %s4381_s23  ;;  %2185 = vrot.lane.b32.xlu0 %v2095_v62, %s4381_s23  ;;  %v2288_v54 = vld [vmem:[%s4471_s19 + $0x1b0] sm:$0x3]  ;;  %v2287_v62 = vld [vmem:[%s4471_s19 + $0x1a0] sm:$0x3] }
 0x2e9   : > { %v1948_v1 = vpop.permute.xlu1 %1947  ;;  %v1946_v2 = vpop.permute.xlu0 %1945 }
 0x2ea   : > { %3979 = vst.msk [vmem:[%s4772_s22 + $0x8a] sm:$0x3] %vm1458_vm3, %v1948_v1  ;;  %3978 = vst.msk [vmem:[%s4772_s22 + $0x72] sm:$0x3] %vm1458_vm3, %v1946_v2 }
 0x2eb   : > { %2191 = vrot.lane.b32.xlu1 %v2098_v3, %s4381_s23  ;;  %2189 = vrot.lane.b32.xlu0 %v2097_v61, %s4381_s23  ;;  %v2290_v3 = vld [vmem:[%s4471_s19 + $0x1d0] sm:$0x3]  ;;  %v2289_v61 = vld [vmem:[%s4471_s19 + $0x1c0] sm:$0x3] }
 0x2ed   : > { %v1952_v5 = vpop.permute.xlu1 %1951  ;;  %v1950_v6 = vpop.permute.xlu0 %1949 }
 0x2ee   : > { %3981 = vst.msk [vmem:[%s4772_s22 + $0xba] sm:$0x3] %vm1458_vm3, %v1952_v5  ;;  %3980 = vst.msk [vmem:[%s4772_s22 + $0xa2] sm:$0x3] %vm1458_vm3, %v1950_v6 }
 0x2ef   : > { %2195 = vrot.lane.b32.xlu1 %v2100_v0, %s4381_s23  ;;  %2193 = vrot.lane.b32.xlu0 %v2099_v4, %s4381_s23  ;;  %v2292_v0 = vld [vmem:[%s4471_s19 + $0x1f0] sm:$0x3]  ;;  %v2291_v4 = vld [vmem:[%s4471_s19 + $0x1e0] sm:$0x3] }
 0x2f1   : > { %v1956_v9 = vpop.permute.xlu1 %1955  ;;  %v1954_v10 = vpop.permute.xlu0 %1953 }
 0x2f2   : > { %3983 = vst.msk [vmem:[%s4772_s22 + $0xea] sm:$0x3] %vm1458_vm3, %v1956_v9  ;;  %3982 = vst.msk [vmem:[%s4772_s22 + $0xd2] sm:$0x3] %vm1458_vm3, %v1954_v10 }
 0x2f3   : > { %2327 = vrot.lane.b32.xlu1 %v2262_v7, %s4382_s24  ;;  %2325 = vrot.lane.b32.xlu0 %v2261_v8, %s4382_s24  ;;  %v6097_v7 = vld [vmem:[%s4471_s19 + $0x68] sm:$0xff]  ;;  %v6100_v8 = vld [vmem:[%s4471_s19 + $0x60] sm:$0xff] }
 0x2f5   : > { %v1960_v13 = vpop.permute.xlu1 %1959  ;;  %v1958_v14 = vpop.permute.xlu0 %1957 }
 0x2f6   : > { %3985 = vst.msk [vmem:[%s4772_s22 + $0x17a] sm:$0x3] %vm1458_vm3, %v1960_v13  ;;  %3984 = vst.msk [vmem:[%s4772_s22 + $0x162] sm:$0x3] %vm1458_vm3, %v1958_v14 }
 0x2f7   : > { %2331 = vrot.lane.b32.xlu1 %v2264_v11, %s4382_s24  ;;  %2329 = vrot.lane.b32.xlu0 %v2263_v12, %s4382_s24  ;;  %v6111_v11 = vld [vmem:[%s4471_s19 + $0x78] sm:$0xff]  ;;  %v6114_v12 = vld [vmem:[%s4471_s19 + $0x70] sm:$0xff] }
 0x2f9   : > { %v1964_v17 = vpop.permute.xlu1 %1963  ;;  %v1962_v18 = vpop.permute.xlu0 %1961 }
 0x2fa   : > { %3987 = vst.msk [vmem:[%s4772_s22 + $0x1aa] sm:$0x3] %vm1458_vm3, %v1964_v17  ;;  %3986 = vst.msk [vmem:[%s4772_s22 + $0x192] sm:$0x3] %vm1458_vm3, %v1962_v18 }
 0x2fb   : > { %2335 = vrot.lane.b32.xlu1 %v2266_v15, %s4382_s24  ;;  %2333 = vrot.lane.b32.xlu0 %v2265_v16, %s4382_s24  ;;  %v6125_v15 = vld [vmem:[%s4471_s19 + $0xe8] sm:$0xff]  ;;  %v6128_v16 = vld [vmem:[%s4471_s19 + $0xe0] sm:$0xff] }
 0x2fd   : > { %v1968_v21 = vpop.permute.xlu1 %1967  ;;  %v1966_v22 = vpop.permute.xlu0 %1965 }
 0x2fe   : > { %3989 = vst.msk [vmem:[%s4772_s22 + $0x1da] sm:$0x3] %vm1458_vm3, %v1968_v21  ;;  %3988 = vst.msk [vmem:[%s4772_s22 + $0x1c2] sm:$0x3] %vm1458_vm3, %v1966_v22 }
 0x2ff   : > { %2339 = vrot.lane.b32.xlu1 %v2268_v19, %s4382_s24  ;;  %2337 = vrot.lane.b32.xlu0 %v2267_v20, %s4382_s24  ;;  %v6139_v19 = vld [vmem:[%s4471_s19 + $0xf8] sm:$0xff]  ;;  %v6142_v20 = vld [vmem:[%s4471_s19 + $0xf0] sm:$0xff] }
 0x301   : > { %v1972_v25 = vpop.permute.xlu1 %1971  ;;  %v1970_v26 = vpop.permute.xlu0 %1969 }
 0x302   : > { %3991 = vst.msk [vmem:[%s4772_s22 + $0x20a] sm:$0x3] %vm1458_vm3, %v1972_v25  ;;  %3990 = vst.msk [vmem:[%s4772_s22 + $0x1f2] sm:$0x3] %vm1458_vm3, %v1970_v26 }
 0x303   : > { %2343 = vrot.lane.b32.xlu1 %v2270_v23, %s4382_s24  ;;  %2341 = vrot.lane.b32.xlu0 %v2269_v24, %s4382_s24  ;;  %v6153_v23 = vld [vmem:[%s4471_s19 + $0x168] sm:$0xff]  ;;  %v6156_v24 = vld [vmem:[%s4471_s19 + $0x160] sm:$0xff] }
 0x305   : > { %v1976_v29 = vpop.permute.xlu1 %1975  ;;  %v1974_v30 = vpop.permute.xlu0 %1973 }
 0x306   : > { %3993 = vst.msk [vmem:[%s4772_s22 + $0x29a] sm:$0x3] %vm1458_vm3, %v1976_v29  ;;  %3992 = vst.msk [vmem:[%s4772_s22 + $0x282] sm:$0x3] %vm1458_vm3, %v1974_v30 }
 0x307   : > { %2347 = vrot.lane.b32.xlu1 %v2272_v27, %s4382_s24  ;;  %2345 = vrot.lane.b32.xlu0 %v2271_v28, %s4382_s24  ;;  %v6167_v27 = vld [vmem:[%s4471_s19 + $0x178] sm:$0xff]  ;;  %v6170_v28 = vld [vmem:[%s4471_s19 + $0x170] sm:$0xff] }
 0x309   : > { %v1980_v33 = vpop.permute.xlu1 %1979  ;;  %v1978_v34 = vpop.permute.xlu0 %1977 }
 0x30a   : > { %3995 = vst.msk [vmem:[%s4772_s22 + $0x2ca] sm:$0x3] %vm1458_vm3, %v1980_v33  ;;  %3994 = vst.msk [vmem:[%s4772_s22 + $0x2b2] sm:$0x3] %vm1458_vm3, %v1978_v34 }
 0x30b   : > { %2351 = vrot.lane.b32.xlu1 %v2274_v31, %s4382_s24  ;;  %2349 = vrot.lane.b32.xlu0 %v2273_v32, %s4382_s24  ;;  %v6181_v31 = vld [vmem:[%s4471_s19 + $0x1e8] sm:$0xff]  ;;  %v6184_v32 = vld [vmem:[%s4471_s19 + $0x1e0] sm:$0xff] }
 0x30d   : > { %v1984_v37 = vpop.permute.xlu1 %1983  ;;  %v1982_v38 = vpop.permute.xlu0 %1981 }
 0x30e   : > { %3997 = vst.msk [vmem:[%s4772_s22 + $0x2fa] sm:$0x3] %vm1458_vm3, %v1984_v37  ;;  %3996 = vst.msk [vmem:[%s4772_s22 + $0x2e2] sm:$0x3] %vm1458_vm3, %v1982_v38 }
 0x30f   : > { %2355 = vrot.lane.b32.xlu1 %v2276_v35, %s4382_s24  ;;  %2353 = vrot.lane.b32.xlu0 %v2275_v36, %s4382_s24  ;;  %v6195_v35 = vld [vmem:[%s4471_s19 + $0x1f8] sm:$0xff]  ;;  %v6198_v36 = vld [vmem:[%s4471_s19 + $0x1f0] sm:$0xff] }
 0x311   : > { %v1988_v41 = vpop.permute.xlu1 %1987  ;;  %v1986_v42 = vpop.permute.xlu0 %1985 }
 0x312   : > { %3999 = vst.msk [vmem:[%s4772_s22 + $0x32a] sm:$0x3] %vm1458_vm3, %v1988_v41  ;;  %3998 = vst.msk [vmem:[%s4772_s22 + $0x312] sm:$0x3] %vm1458_vm3, %v1986_v42 }
 0x313   : > { %2359 = vrot.lane.b32.xlu1 %v2278_v39, %s4382_s24  ;;  %2357 = vrot.lane.b32.xlu0 %v2277_v40, %s4382_s24 }
 0x315   : > { %v1992_v45 = vpop.permute.xlu1 %1991  ;;  %v1990_v46 = vpop.permute.xlu0 %1989 }
 0x316   : > { %4001 = vst.msk [vmem:[%s4772_s22 + $0x3ba] sm:$0x3] %vm1458_vm3, %v1992_v45  ;;  %4000 = vst.msk [vmem:[%s4772_s22 + $0x3a2] sm:$0x3] %vm1458_vm3, %v1990_v46 }
 0x317   : > { %2363 = vrot.lane.b32.xlu1 %v2280_v43, %s4382_s24  ;;  %2361 = vrot.lane.b32.xlu0 %v2279_v44, %s4382_s24 }
 0x319   : > { %v1996_v49 = vpop.permute.xlu1 %1995  ;;  %v1994_v58 = vpop.permute.xlu0 %1993 }
 0x31a   : > { %4003 = vst.msk [vmem:[%s4772_s22 + $0x3ea] sm:$0x3] %vm1458_vm3, %v1996_v49  ;;  %4002 = vst.msk [vmem:[%s4772_s22 + $0x3d2] sm:$0x3] %vm1458_vm3, %v1994_v58 }
 0x31b   : > { %2367 = vrot.lane.b32.xlu1 %v2282_v47, %s4382_s24  ;;  %2365 = vrot.lane.b32.xlu0 %v2281_v48, %s4382_s24 }
 0x31d   : > { %v2000_v51 = vpop.permute.xlu1 %1999  ;;  %v1998_v59 = vpop.permute.xlu0 %1997 }
 0x31e   : > { %4005 = vst.msk [vmem:[%s4772_s22 + $0x41a] sm:$0x3] %vm1458_vm3, %v2000_v51  ;;  %4004 = vst.msk [vmem:[%s4772_s22 + $0x402] sm:$0x3] %vm1458_vm3, %v1998_v59 }
 0x31f   : > { %2371 = vrot.lane.b32.xlu1 %v2284_v50, %s4382_s24  ;;  %2369 = vrot.lane.b32.xlu0 %v2283_v55, %s4382_s24 }
 0x321   : > { %v2004_v53 = vpop.permute.xlu1 %2003  ;;  %v2002_v57 = vpop.permute.xlu0 %2001 }
 0x322   : > { %4007 = vst.msk [vmem:[%s4772_s22 + $0x44a] sm:$0x3] %vm1458_vm3, %v2004_v53  ;;  %4006 = vst.msk [vmem:[%s4772_s22 + $0x432] sm:$0x3] %vm1458_vm3, %v2002_v57 }
 0x323   : > { %2375 = vrot.lane.b32.xlu1 %v2286_v56, %s4382_s24  ;;  %2373 = vrot.lane.b32.xlu0 %v2285_v52, %s4382_s24 }
 0x325   : > { %v2136_v63 = vpop.permute.xlu1 %2135  ;;  %v2134_v60 = vpop.permute.xlu0 %2133 }
 0x326   : > { %4009 = vst.msk [vmem:[%s4772_s22 + $0x5a] sm:$0x3] %vm1651_vm4, %v2136_v63  ;;  %4008 = vst.msk [vmem:[%s4772_s22 + $0x42] sm:$0x3] %vm1651_vm4, %v2134_v60 }
 0x327   : > { %2379 = vrot.lane.b32.xlu1 %v2288_v54, %s4382_s24  ;;  %2377 = vrot.lane.b32.xlu0 %v2287_v62, %s4382_s24 }
 0x329   : > { %v2140_v1 = vpop.permute.xlu1 %2139  ;;  %v2138_v2 = vpop.permute.xlu0 %2137 }
 0x32a   : > { %4011 = vst.msk [vmem:[%s4772_s22 + $0x8a] sm:$0x3] %vm1651_vm4, %v2140_v1  ;;  %4010 = vst.msk [vmem:[%s4772_s22 + $0x72] sm:$0x3] %vm1651_vm4, %v2138_v2 }
 0x32b   : > { %2383 = vrot.lane.b32.xlu1 %v2290_v3, %s4382_s24  ;;  %2381 = vrot.lane.b32.xlu0 %v2289_v61, %s4382_s24 }
 0x32d   : > { %v2144_v5 = vpop.permute.xlu1 %2143  ;;  %v2142_v6 = vpop.permute.xlu0 %2141 }
 0x32e   : > { %4013 = vst.msk [vmem:[%s4772_s22 + $0xba] sm:$0x3] %vm1651_vm4, %v2144_v5  ;;  %4012 = vst.msk [vmem:[%s4772_s22 + $0xa2] sm:$0x3] %vm1651_vm4, %v2142_v6 }
 0x32f   : > { %2387 = vrot.lane.b32.xlu1 %v2292_v0, %s4382_s24  ;;  %2385 = vrot.lane.b32.xlu0 %v2291_v4, %s4382_s24 }
 0x331   : > { %v2148_v9 = vpop.permute.xlu1 %2147  ;;  %v2146_v10 = vpop.permute.xlu0 %2145 }
 0x332   : > { %4015 = vst.msk [vmem:[%s4772_s22 + $0xea] sm:$0x3] %vm1651_vm4, %v2148_v9  ;;  %4014 = vst.msk [vmem:[%s4772_s22 + $0xd2] sm:$0x3] %vm1651_vm4, %v2146_v10 }
 0x333   : > { %2488 = vrot.lane.b32.xlu1 %v6097_v7, %s4380_s20  ;;  %2486 = vrot.lane.b32.xlu0 %v6100_v8, %s4380_s20 }
 0x335   : > { %v2152_v13 = vpop.permute.xlu1 %2151  ;;  %v2150_v14 = vpop.permute.xlu0 %2149 }
 0x336   : > { %4017 = vst.msk [vmem:[%s4772_s22 + $0x17a] sm:$0x3] %vm1651_vm4, %v2152_v13  ;;  %4016 = vst.msk [vmem:[%s4772_s22 + $0x162] sm:$0x3] %vm1651_vm4, %v2150_v14 }
 0x337   : > { %2492 = vrot.lane.b32.xlu1 %v6111_v11, %s4380_s20  ;;  %2490 = vrot.lane.b32.xlu0 %v6114_v12, %s4380_s20 }
 0x339   : > { %v2156_v17 = vpop.permute.xlu1 %2155  ;;  %v2154_v18 = vpop.permute.xlu0 %2153 }
 0x33a   : > { %4019 = vst.msk [vmem:[%s4772_s22 + $0x1aa] sm:$0x3] %vm1651_vm4, %v2156_v17  ;;  %4018 = vst.msk [vmem:[%s4772_s22 + $0x192] sm:$0x3] %vm1651_vm4, %v2154_v18 }
 0x33b   : > { %2496 = vrot.lane.b32.xlu1 %v6125_v15, %s4380_s20  ;;  %2494 = vrot.lane.b32.xlu0 %v6128_v16, %s4380_s20 }
 0x33d   : > { %v2160_v21 = vpop.permute.xlu1 %2159  ;;  %v2158_v22 = vpop.permute.xlu0 %2157 }
 0x33e   : > { %4021 = vst.msk [vmem:[%s4772_s22 + $0x1da] sm:$0x3] %vm1651_vm4, %v2160_v21  ;;  %4020 = vst.msk [vmem:[%s4772_s22 + $0x1c2] sm:$0x3] %vm1651_vm4, %v2158_v22 }
 0x33f   : > { %2500 = vrot.lane.b32.xlu1 %v6139_v19, %s4380_s20  ;;  %2498 = vrot.lane.b32.xlu0 %v6142_v20, %s4380_s20 }
 0x341   : > { %v2164_v25 = vpop.permute.xlu1 %2163  ;;  %v2162_v26 = vpop.permute.xlu0 %2161 }
 0x342   : > { %4023 = vst.msk [vmem:[%s4772_s22 + $0x20a] sm:$0x3] %vm1651_vm4, %v2164_v25  ;;  %4022 = vst.msk [vmem:[%s4772_s22 + $0x1f2] sm:$0x3] %vm1651_vm4, %v2162_v26 }
 0x343   : > { %2504 = vrot.lane.b32.xlu1 %v6153_v23, %s4380_s20  ;;  %2502 = vrot.lane.b32.xlu0 %v6156_v24, %s4380_s20 }
 0x345   : > { %v2168_v29 = vpop.permute.xlu1 %2167  ;;  %v2166_v30 = vpop.permute.xlu0 %2165 }
 0x346   : > { %4025 = vst.msk [vmem:[%s4772_s22 + $0x29a] sm:$0x3] %vm1651_vm4, %v2168_v29  ;;  %4024 = vst.msk [vmem:[%s4772_s22 + $0x282] sm:$0x3] %vm1651_vm4, %v2166_v30 }
 0x347   : > { %2508 = vrot.lane.b32.xlu1 %v6167_v27, %s4380_s20  ;;  %2506 = vrot.lane.b32.xlu0 %v6170_v28, %s4380_s20 }
 0x349   : > { %v2172_v33 = vpop.permute.xlu1 %2171  ;;  %v2170_v34 = vpop.permute.xlu0 %2169 }
 0x34a   : > { %4027 = vst.msk [vmem:[%s4772_s22 + $0x2ca] sm:$0x3] %vm1651_vm4, %v2172_v33  ;;  %4026 = vst.msk [vmem:[%s4772_s22 + $0x2b2] sm:$0x3] %vm1651_vm4, %v2170_v34 }
 0x34b   : > { %2512 = vrot.lane.b32.xlu1 %v6181_v31, %s4380_s20  ;;  %2510 = vrot.lane.b32.xlu0 %v6184_v32, %s4380_s20 }
 0x34d   : > { %v2176_v37 = vpop.permute.xlu1 %2175  ;;  %v2174_v38 = vpop.permute.xlu0 %2173 }
 0x34e   : > { %4029 = vst.msk [vmem:[%s4772_s22 + $0x2fa] sm:$0x3] %vm1651_vm4, %v2176_v37  ;;  %4028 = vst.msk [vmem:[%s4772_s22 + $0x2e2] sm:$0x3] %vm1651_vm4, %v2174_v38 }
 0x34f   : > { %2516 = vrot.lane.b32.xlu1 %v6195_v35, %s4380_s20  ;;  %2514 = vrot.lane.b32.xlu0 %v6198_v36, %s4380_s20 }
 0x351   : > { %v2180_v39 = vpop.permute.xlu1 %2179  ;;  %v2178_v40 = vpop.permute.xlu0 %2177 }
 0x352   : > { %4031 = vst.msk [vmem:[%s4772_s22 + $0x32a] sm:$0x3] %vm1651_vm4, %v2180_v39  ;;  %4030 = vst.msk [vmem:[%s4772_s22 + $0x312] sm:$0x3] %vm1651_vm4, %v2178_v40  ;;  %v4137_v39 = vld [vmem:[%s4471_s19 + $0x7e] sm:$0x3] }
 0x353   : > { %2584 = vrot.lane.b32.xlu1 %v6097_v7, %s4381_s23  ;;  %2582 = vrot.lane.b32.xlu0 %v6100_v8, %s4381_s23  ;;  %v4136_v40 = vld [vmem:[%s4471_s19 + $0x6e] sm:$0x3] }
 0x355   : > { %v2184_v41 = vpop.permute.xlu1 %2183  ;;  %v2182_v42 = vpop.permute.xlu0 %2181 }
 0x356   : > { %4033 = vst.msk [vmem:[%s4772_s22 + $0x3ba] sm:$0x3] %vm1651_vm4, %v2184_v41  ;;  %4032 = vst.msk [vmem:[%s4772_s22 + $0x3a2] sm:$0x3] %vm1651_vm4, %v2182_v42 }
 0x357   : > { %2588 = vrot.lane.b32.xlu1 %v6111_v11, %s4381_s23  ;;  %2586 = vrot.lane.b32.xlu0 %v6114_v12, %s4381_s23 }
 0x359   : > { %v2188_v43 = vpop.permute.xlu1 %2187  ;;  %v2186_v44 = vpop.permute.xlu0 %2185 }
 0x35a   : > { %4035 = vst.msk [vmem:[%s4772_s22 + $0x3ea] sm:$0x3] %vm1651_vm4, %v2188_v43  ;;  %4034 = vst.msk [vmem:[%s4772_s22 + $0x3d2] sm:$0x3] %vm1651_vm4, %v2186_v44  ;;  %v4139_v43 = vld [vmem:[%s4471_s19 + $0xfe] sm:$0x3] }
 0x35b   : > { %2592 = vrot.lane.b32.xlu1 %v6125_v15, %s4381_s23  ;;  %2590 = vrot.lane.b32.xlu0 %v6128_v16, %s4381_s23  ;;  %v4138_v44 = vld [vmem:[%s4471_s19 + $0xee] sm:$0x3] }
 0x35d   : > { %v2192_v45 = vpop.permute.xlu1 %2191  ;;  %v2190_v46 = vpop.permute.xlu0 %2189 }
 0x35e   : > { %4037 = vst.msk [vmem:[%s4772_s22 + $0x41a] sm:$0x3] %vm1651_vm4, %v2192_v45  ;;  %4036 = vst.msk [vmem:[%s4772_s22 + $0x402] sm:$0x3] %vm1651_vm4, %v2190_v46 }
 0x35f   : > { %2596 = vrot.lane.b32.xlu1 %v6139_v19, %s4381_s23  ;;  %2594 = vrot.lane.b32.xlu0 %v6142_v20, %s4381_s23 }
 0x361   : > { %v2196_v47 = vpop.permute.xlu1 %2195  ;;  %v2194_v48 = vpop.permute.xlu0 %2193 }
 0x362   : > { %4039 = vst.msk [vmem:[%s4772_s22 + $0x44a] sm:$0x3] %vm1651_vm4, %v2196_v47  ;;  %4038 = vst.msk [vmem:[%s4772_s22 + $0x432] sm:$0x3] %vm1651_vm4, %v2194_v48  ;;  %v4141_v47 = vld [vmem:[%s4471_s19 + $0x17e] sm:$0x3] }
 0x363   : > { %2600 = vrot.lane.b32.xlu1 %v6153_v23, %s4381_s23  ;;  %2598 = vrot.lane.b32.xlu0 %v6156_v24, %s4381_s23  ;;  %v4140_v48 = vld [vmem:[%s4471_s19 + $0x16e] sm:$0x3] }
 0x365   : > { %v2328_v49 = vpop.permute.xlu1 %2327  ;;  %v2326_v58 = vpop.permute.xlu0 %2325 }
 0x366   : > { %4041 = vst.msk [vmem:[%s4772_s22 + $0x5a] sm:$0x3] %vm1844_vm5, %v2328_v49  ;;  %4040 = vst.msk [vmem:[%s4772_s22 + $0x42] sm:$0x3] %vm1844_vm5, %v2326_v58 }
 0x367   : > { %2604 = vrot.lane.b32.xlu1 %v6167_v27, %s4381_s23  ;;  %2602 = vrot.lane.b32.xlu0 %v6170_v28, %s4381_s23 }
 0x369   : > { %v2332_v50 = vpop.permute.xlu1 %2331  ;;  %v2330_v55 = vpop.permute.xlu0 %2329 }
 0x36a   : > { %4043 = vst.msk [vmem:[%s4772_s22 + $0x8a] sm:$0x3] %vm1844_vm5, %v2332_v50  ;;  %4042 = vst.msk [vmem:[%s4772_s22 + $0x72] sm:$0x3] %vm1844_vm5, %v2330_v55  ;;  %v4143_v50 = vld [vmem:[%s4471_s19 + $0x1fe] sm:$0x3] }
 0x36b   : > { %2608 = vrot.lane.b32.xlu1 %v6181_v31, %s4381_s23  ;;  %2606 = vrot.lane.b32.xlu0 %v6184_v32, %s4381_s23  ;;  %v4142_v55 = vld [vmem:[%s4471_s19 + $0x1ee] sm:$0x3] }
 0x36d   : > { %v2336_v51 = vpop.permute.xlu1 %2335  ;;  %v2334_v59 = vpop.permute.xlu0 %2333 }
 0x36e   : > { %4045 = vst.msk [vmem:[%s4772_s22 + $0xba] sm:$0x3] %vm1844_vm5, %v2336_v51  ;;  %4044 = vst.msk [vmem:[%s4772_s22 + $0xa2] sm:$0x3] %vm1844_vm5, %v2334_v59 }
 0x36f   : > { %2612 = vrot.lane.b32.xlu1 %v6195_v35, %s4381_s23  ;;  %2610 = vrot.lane.b32.xlu0 %v6198_v36, %s4381_s23 }
 0x371   : > { %v2340_v56 = vpop.permute.xlu1 %2339  ;;  %v2338_v52 = vpop.permute.xlu0 %2337 }
 0x372   : > { %4047 = vst.msk [vmem:[%s4772_s22 + $0xea] sm:$0x3] %vm1844_vm5, %v2340_v56  ;;  %4046 = vst.msk [vmem:[%s4772_s22 + $0xd2] sm:$0x3] %vm1844_vm5, %v2338_v52  ;;  %v4145_v56 = vld [vmem:[%s4471_s19 + $0x70] sm:$0x3] }
 0x373   : > { %2680 = vrot.lane.b32.xlu1 %v6097_v7, %s4382_s24  ;;  %2678 = vrot.lane.b32.xlu0 %v6100_v8, %s4382_s24  ;;  %v4121_v7 = vld [vmem:[%s4471_s19 + $0x7e] sm:$0x3]  ;;  %v4120_v8 = vld [vmem:[%s4471_s19 + $0x6e] sm:$0x3] }
 0x374   : > { %v4144_v52 = vld [vmem:[%s4471_s19 + $0x60] sm:$0x3] }
 0x375   : > { %v2344_v53 = vpop.permute.xlu1 %2343  ;;  %v2342_v57 = vpop.permute.xlu0 %2341 }
 0x376   : > { %4049 = vst.msk [vmem:[%s4772_s22 + $0x17a] sm:$0x3] %vm1844_vm5, %v2344_v53  ;;  %4048 = vst.msk [vmem:[%s4772_s22 + $0x162] sm:$0x3] %vm1844_vm5, %v2342_v57 }
 0x377   : > { %2684 = vrot.lane.b32.xlu1 %v6111_v11, %s4382_s24  ;;  %2682 = vrot.lane.b32.xlu0 %v6114_v12, %s4382_s24  ;;  %v4123_v11 = vld [vmem:[%s4471_s19 + $0xfe] sm:$0x3]  ;;  %v4122_v12 = vld [vmem:[%s4471_s19 + $0xee] sm:$0x3] }
 0x379   : > { %v2348_v54 = vpop.permute.xlu1 %2347  ;;  %v2346_v62 = vpop.permute.xlu0 %2345 }
 0x37a   : > { %4051 = vst.msk [vmem:[%s4772_s22 + $0x1aa] sm:$0x3] %vm1844_vm5, %v2348_v54  ;;  %4050 = vst.msk [vmem:[%s4772_s22 + $0x192] sm:$0x3] %vm1844_vm5, %v2346_v62  ;;  %v4147_v54 = vld [vmem:[%s4471_s19 + $0xf0] sm:$0x3] }
 0x37b   : > { %2688 = vrot.lane.b32.xlu1 %v6125_v15, %s4382_s24  ;;  %2686 = vrot.lane.b32.xlu0 %v6128_v16, %s4382_s24  ;;  %v4125_v15 = vld [vmem:[%s4471_s19 + $0x17e] sm:$0x3]  ;;  %v4124_v16 = vld [vmem:[%s4471_s19 + $0x16e] sm:$0x3] }
 0x37c   : > { %v4146_v62 = vld [vmem:[%s4471_s19 + $0xe0] sm:$0x3] }
 0x37d   : > { %v2352_v63 = vpop.permute.xlu1 %2351  ;;  %v2350_v60 = vpop.permute.xlu0 %2349 }
 0x37e   : > { %4053 = vst.msk [vmem:[%s4772_s22 + $0x1da] sm:$0x3] %vm1844_vm5, %v2352_v63  ;;  %4052 = vst.msk [vmem:[%s4772_s22 + $0x1c2] sm:$0x3] %vm1844_vm5, %v2350_v60 }
 0x37f   : > { %2692 = vrot.lane.b32.xlu1 %v6139_v19, %s4382_s24  ;;  %2690 = vrot.lane.b32.xlu0 %v6142_v20, %s4382_s24  ;;  %v4127_v19 = vld [vmem:[%s4471_s19 + $0x1fe] sm:$0x3]  ;;  %v4126_v20 = vld [vmem:[%s4471_s19 + $0x1ee] sm:$0x3] }
 0x381   : > { %v2356_v3 = vpop.permute.xlu1 %2355  ;;  %v2354_v61 = vpop.permute.xlu0 %2353 }
 0x382   : > { %4055 = vst.msk [vmem:[%s4772_s22 + $0x20a] sm:$0x3] %vm1844_vm5, %v2356_v3  ;;  %4054 = vst.msk [vmem:[%s4772_s22 + $0x1f2] sm:$0x3] %vm1844_vm5, %v2354_v61  ;;  %v4149_v3 = vld [vmem:[%s4471_s19 + $0x170] sm:$0x3] }
 0x383   : > { %2696 = vrot.lane.b32.xlu1 %v6153_v23, %s4382_s24  ;;  %2694 = vrot.lane.b32.xlu0 %v6156_v24, %s4382_s24  ;;  %v4129_v23 = vld [vmem:[%s4471_s19 + $0x7e] sm:$0x3]  ;;  %v4128_v24 = vld [vmem:[%s4471_s19 + $0x6e] sm:$0x3] }
 0x384   : > { %v4148_v61 = vld [vmem:[%s4471_s19 + $0x160] sm:$0x3] }
 0x385   : > { %v2360_v1 = vpop.permute.xlu1 %2359  ;;  %v2358_v2 = vpop.permute.xlu0 %2357 }
 0x386   : > { %4057 = vst.msk [vmem:[%s4772_s22 + $0x29a] sm:$0x3] %vm1844_vm5, %v2360_v1  ;;  %4056 = vst.msk [vmem:[%s4772_s22 + $0x282] sm:$0x3] %vm1844_vm5, %v2358_v2 }
 0x387   : > { %2700 = vrot.lane.b32.xlu1 %v6167_v27, %s4382_s24  ;;  %2698 = vrot.lane.b32.xlu0 %v6170_v28, %s4382_s24  ;;  %v4131_v27 = vld [vmem:[%s4471_s19 + $0xfe] sm:$0x3]  ;;  %v4130_v28 = vld [vmem:[%s4471_s19 + $0xee] sm:$0x3] }
 0x389   : > { %v2364_v0 = vpop.permute.xlu1 %2363  ;;  %v2362_v4 = vpop.permute.xlu0 %2361 }
 0x38a   : > { %4059 = vst.msk [vmem:[%s4772_s22 + $0x2ca] sm:$0x3] %vm1844_vm5, %v2364_v0  ;;  %4058 = vst.msk [vmem:[%s4772_s22 + $0x2b2] sm:$0x3] %vm1844_vm5, %v2362_v4  ;;  %v4151_v0 = vld [vmem:[%s4471_s19 + $0x1f0] sm:$0x3] }
 0x38b   : > { %2704 = vrot.lane.b32.xlu1 %v6181_v31, %s4382_s24  ;;  %2702 = vrot.lane.b32.xlu0 %v6184_v32, %s4382_s24  ;;  %v4133_v31 = vld [vmem:[%s4471_s19 + $0x17e] sm:$0x3]  ;;  %v4132_v32 = vld [vmem:[%s4471_s19 + $0x16e] sm:$0x3] }
 0x38c   : > { %v4150_v4 = vld [vmem:[%s4471_s19 + $0x1e0] sm:$0x3] }
 0x38d   : > { %v2368_v5 = vpop.permute.xlu1 %2367  ;;  %v2366_v6 = vpop.permute.xlu0 %2365 }
 0x38e   : > { %4061 = vst.msk [vmem:[%s4772_s22 + $0x2fa] sm:$0x3] %vm1844_vm5, %v2368_v5  ;;  %4060 = vst.msk [vmem:[%s4772_s22 + $0x2e2] sm:$0x3] %vm1844_vm5, %v2366_v6 }
 0x38f   : > { %2708 = vrot.lane.b32.xlu1 %v6195_v35, %s4382_s24  ;;  %2706 = vrot.lane.b32.xlu0 %v6198_v36, %s4382_s24  ;;  %v4135_v35 = vld [vmem:[%s4471_s19 + $0x1fe] sm:$0x3]  ;;  %v4134_v36 = vld [vmem:[%s4471_s19 + $0x1ee] sm:$0x3] }
 0x391   : > { %v2372_v9 = vpop.permute.xlu1 %2371  ;;  %v2370_v10 = vpop.permute.xlu0 %2369 }
 0x392   : > { %4063 = vst.msk [vmem:[%s4772_s22 + $0x32a] sm:$0x3] %vm1844_vm5, %v2372_v9  ;;  %4062 = vst.msk [vmem:[%s4772_s22 + $0x312] sm:$0x3] %vm1844_vm5, %v2370_v10 }
 0x393   : > { %2760 = vrot.lane.b32.xlu1 %v4121_v7, %s4380_s20  ;;  %2758 = vrot.lane.b32.xlu0 %v4120_v8, %s4380_s20  ;;  %v4153_v7 = vld [vmem:[%s4471_s19 + $0x70] sm:$0x3]  ;;  %v4152_v8 = vld [vmem:[%s4471_s19 + $0x60] sm:$0x3] }
 0x395   : > { %v2376_v13 = vpop.permute.xlu1 %2375  ;;  %v2374_v14 = vpop.permute.xlu0 %2373 }
 0x396   : > { %4065 = vst.msk [vmem:[%s4772_s22 + $0x3ba] sm:$0x3] %vm1844_vm5, %v2376_v13  ;;  %4064 = vst.msk [vmem:[%s4772_s22 + $0x3a2] sm:$0x3] %vm1844_vm5, %v2374_v14 }
 0x397   : > { %2764 = vrot.lane.b32.xlu1 %v4123_v11, %s4380_s20  ;;  %2762 = vrot.lane.b32.xlu0 %v4122_v12, %s4380_s20  ;;  %v4155_v11 = vld [vmem:[%s4471_s19 + $0xf0] sm:$0x3]  ;;  %v4154_v12 = vld [vmem:[%s4471_s19 + $0xe0] sm:$0x3] }
 0x399   : > { %v2380_v17 = vpop.permute.xlu1 %2379  ;;  %v2378_v18 = vpop.permute.xlu0 %2377 }
 0x39a   : > { %4067 = vst.msk [vmem:[%s4772_s22 + $0x3ea] sm:$0x3] %vm1844_vm5, %v2380_v17  ;;  %4066 = vst.msk [vmem:[%s4772_s22 + $0x3d2] sm:$0x3] %vm1844_vm5, %v2378_v18 }
 0x39b   : > { %2768 = vrot.lane.b32.xlu1 %v4125_v15, %s4380_s20  ;;  %2766 = vrot.lane.b32.xlu0 %v4124_v16, %s4380_s20  ;;  %v4157_v15 = vld [vmem:[%s4471_s19 + $0x170] sm:$0x3]  ;;  %v4156_v16 = vld [vmem:[%s4471_s19 + $0x160] sm:$0x3] }
 0x39d   : > { %v2384_v21 = vpop.permute.xlu1 %2383  ;;  %v2382_v22 = vpop.permute.xlu0 %2381 }
 0x39e   : > { %4069 = vst.msk [vmem:[%s4772_s22 + $0x41a] sm:$0x3] %vm1844_vm5, %v2384_v21  ;;  %4068 = vst.msk [vmem:[%s4772_s22 + $0x402] sm:$0x3] %vm1844_vm5, %v2382_v22 }
 0x39f   : > { %2772 = vrot.lane.b32.xlu1 %v4127_v19, %s4380_s20  ;;  %2770 = vrot.lane.b32.xlu0 %v4126_v20, %s4380_s20  ;;  %v4159_v19 = vld [vmem:[%s4471_s19 + $0x1f0] sm:$0x3]  ;;  %v4158_v20 = vld [vmem:[%s4471_s19 + $0x1e0] sm:$0x3] }
 0x3a1   : > { %v2388_v25 = vpop.permute.xlu1 %2387  ;;  %v2386_v26 = vpop.permute.xlu0 %2385 }
 0x3a2   : > { %4071 = vst.msk [vmem:[%s4772_s22 + $0x44a] sm:$0x3] %vm1844_vm5, %v2388_v25  ;;  %4070 = vst.msk [vmem:[%s4772_s22 + $0x432] sm:$0x3] %vm1844_vm5, %v2386_v26 }
 0x3a3   : > { %2808 = vrot.lane.b32.xlu1 %v4129_v23, %s4381_s23  ;;  %2806 = vrot.lane.b32.xlu0 %v4128_v24, %s4381_s23  ;;  %v4161_v23 = vld [vmem:[%s4471_s19 + $0x70] sm:$0x3]  ;;  %v4160_v24 = vld [vmem:[%s4471_s19 + $0x60] sm:$0x3] }
 0x3a5   : > { %v2489_v29 = vpop.permute.xlu1 %2488  ;;  %v2487_v30 = vpop.permute.xlu0 %2486 }
 0x3a6   : > { %2535 = vst.msk [vmem:[%s4772_s22 + $0xa] sm:$0xff] %vm463_vm0, %v2489_v29  ;;  %2534 = vst.msk [vmem:[%s4772_s22 + $0x2] sm:$0xff] %vm463_vm0, %v2487_v30 }
 0x3a7   : > { %2812 = vrot.lane.b32.xlu1 %v4131_v27, %s4381_s23  ;;  %2810 = vrot.lane.b32.xlu0 %v4130_v28, %s4381_s23  ;;  %v4163_v27 = vld [vmem:[%s4471_s19 + $0xf0] sm:$0x3]  ;;  %v4162_v28 = vld [vmem:[%s4471_s19 + $0xe0] sm:$0x3] }
 0x3a9   : > { %v2493_v33 = vpop.permute.xlu1 %2492  ;;  %v2491_v34 = vpop.permute.xlu0 %2490 }
 0x3aa   : > { %2537 = vst.msk [vmem:[%s4772_s22 + $0x22] sm:$0xff] %vm463_vm0, %v2493_v33  ;;  %2536 = vst.msk [vmem:[%s4772_s22 + $0x1a] sm:$0xff] %vm463_vm0, %v2491_v34 }
 0x3ab   : > { %2816 = vrot.lane.b32.xlu1 %v4133_v31, %s4381_s23  ;;  %2814 = vrot.lane.b32.xlu0 %v4132_v32, %s4381_s23  ;;  %v4165_v31 = vld [vmem:[%s4471_s19 + $0x170] sm:$0x3]  ;;  %v4164_v32 = vld [vmem:[%s4471_s19 + $0x160] sm:$0x3] }
 0x3ad   : > { %v2497_v37 = vpop.permute.xlu1 %2496  ;;  %v2495_v38 = vpop.permute.xlu0 %2494 }
 0x3ae   : > { %2539 = vst.msk [vmem:[%s4772_s22 + $0x12a] sm:$0xff] %vm463_vm0, %v2497_v37  ;;  %2538 = vst.msk [vmem:[%s4772_s22 + $0x122] sm:$0xff] %vm463_vm0, %v2495_v38 }
 0x3af   : > { %2820 = vrot.lane.b32.xlu1 %v4135_v35, %s4381_s23  ;;  %2818 = vrot.lane.b32.xlu0 %v4134_v36, %s4381_s23  ;;  %v4167_v35 = vld [vmem:[%s4471_s19 + $0x1f0] sm:$0x3]  ;;  %v4166_v36 = vld [vmem:[%s4471_s19 + $0x1e0] sm:$0x3] }
 0x3b1   : > { %v2501_v41 = vpop.permute.xlu1 %2500  ;;  %v2499_v42 = vpop.permute.xlu0 %2498 }
 0x3b2   : > { %2541 = vst.msk [vmem:[%s4772_s22 + $0x142] sm:$0xff] %vm463_vm0, %v2501_v41  ;;  %2540 = vst.msk [vmem:[%s4772_s22 + $0x13a] sm:$0xff] %vm463_vm0, %v2499_v42 }
 0x3b3   : > { %2856 = vrot.lane.b32.xlu1 %v4137_v39, %s4382_s24  ;;  %2854 = vrot.lane.b32.xlu0 %v4136_v40, %s4382_s24  ;;  %v6529_v39 = vld [vmem:[%s4471_s19 + $0x8] sm:$0xff]  ;;  %v6532_v40 = vld [vmem:[%s4471_s19] sm:$0xff] }
 0x3b5   : > { %v2505_v45 = vpop.permute.xlu1 %2504  ;;  %v2503_v46 = vpop.permute.xlu0 %2502 }
 0x3b6   : > { %2543 = vst.msk [vmem:[%s4772_s22 + $0x24a] sm:$0xff] %vm463_vm0, %v2505_v45  ;;  %2542 = vst.msk [vmem:[%s4772_s22 + $0x242] sm:$0xff] %vm463_vm0, %v2503_v46 }
 0x3b7   : > { %2860 = vrot.lane.b32.xlu1 %v4139_v43, %s4382_s24  ;;  %2858 = vrot.lane.b32.xlu0 %v4138_v44, %s4382_s24  ;;  %v6543_v43 = vld [vmem:[%s4471_s19 + $0x18] sm:$0xff]  ;;  %v6546_v44 = vld [vmem:[%s4471_s19 + $0x10] sm:$0xff] }
 0x3b9   : > { %v2509_v49 = vpop.permute.xlu1 %2508  ;;  %v2507_v58 = vpop.permute.xlu0 %2506 }
 0x3ba   : > { %2545 = vst.msk [vmem:[%s4772_s22 + $0x262] sm:$0xff] %vm463_vm0, %v2509_v49  ;;  %2544 = vst.msk [vmem:[%s4772_s22 + $0x25a] sm:$0xff] %vm463_vm0, %v2507_v58 }
 0x3bb   : > { %2864 = vrot.lane.b32.xlu1 %v4141_v47, %s4382_s24  ;;  %2862 = vrot.lane.b32.xlu0 %v4140_v48, %s4382_s24  ;;  %v6557_v47 = vld [vmem:[%s4471_s19 + $0x88] sm:$0xff]  ;;  %v6560_v48 = vld [vmem:[%s4471_s19 + $0x80] sm:$0xff] }
 0x3bd   : > { %v2513_v51 = vpop.permute.xlu1 %2512  ;;  %v2511_v59 = vpop.permute.xlu0 %2510 }
 0x3be   : > { %2547 = vst.msk [vmem:[%s4772_s22 + $0x36a] sm:$0xff] %vm463_vm0, %v2513_v51  ;;  %2546 = vst.msk [vmem:[%s4772_s22 + $0x362] sm:$0xff] %vm463_vm0, %v2511_v59 }
 0x3bf   : > { %2868 = vrot.lane.b32.xlu1 %v4143_v50, %s4382_s24  ;;  %2866 = vrot.lane.b32.xlu0 %v4142_v55, %s4382_s24  ;;  %v6571_v50 = vld [vmem:[%s4471_s19 + $0x98] sm:$0xff]  ;;  %v6574_v55 = vld [vmem:[%s4471_s19 + $0x90] sm:$0xff] }
 0x3c1   : > { %v2517_v53 = vpop.permute.xlu1 %2516  ;;  %v2515_v57 = vpop.permute.xlu0 %2514 }
 0x3c2   : > { %2549 = vst.msk [vmem:[%s4772_s22 + $0x382] sm:$0xff] %vm463_vm0, %v2517_v53  ;;  %2548 = vst.msk [vmem:[%s4772_s22 + $0x37a] sm:$0xff] %vm463_vm0, %v2515_v57 }
 0x3c3   : > { %2904 = vrot.lane.b32.xlu1 %v4145_v56, %s4380_s20  ;;  %2902 = vrot.lane.b32.xlu0 %v4144_v52, %s4380_s20  ;;  %v6585_v56 = vld [vmem:[%s4471_s19 + $0x108] sm:$0xff]  ;;  %v6588_v52 = vld [vmem:[%s4471_s19 + $0x100] sm:$0xff] }
 0x3c5   : > { %v2585_v63 = vpop.permute.xlu1 %2584  ;;  %v2583_v60 = vpop.permute.xlu0 %2582 }
 0x3c6   : > { %2631 = vst.msk [vmem:[%s4772_s22 + $0xa] sm:$0xff] %vm848_vm1, %v2585_v63  ;;  %2630 = vst.msk [vmem:[%s4772_s22 + $0x2] sm:$0xff] %vm848_vm1, %v2583_v60 }
 0x3c7   : > { %2908 = vrot.lane.b32.xlu1 %v4147_v54, %s4380_s20  ;;  %2906 = vrot.lane.b32.xlu0 %v4146_v62, %s4380_s20  ;;  %v6599_v54 = vld [vmem:[%s4471_s19 + $0x118] sm:$0xff]  ;;  %v6602_v62 = vld [vmem:[%s4471_s19 + $0x110] sm:$0xff] }
 0x3c9   : > { %v2589_v1 = vpop.permute.xlu1 %2588  ;;  %v2587_v2 = vpop.permute.xlu0 %2586 }
 0x3ca   : > { %2633 = vst.msk [vmem:[%s4772_s22 + $0x22] sm:$0xff] %vm848_vm1, %v2589_v1  ;;  %2632 = vst.msk [vmem:[%s4772_s22 + $0x1a] sm:$0xff] %vm848_vm1, %v2587_v2 }
 0x3cb   : > { %2912 = vrot.lane.b32.xlu1 %v4149_v3, %s4380_s20  ;;  %2910 = vrot.lane.b32.xlu0 %v4148_v61, %s4380_s20  ;;  %v6613_v3 = vld [vmem:[%s4471_s19 + $0x188] sm:$0xff]  ;;  %v6616_v61 = vld [vmem:[%s4471_s19 + $0x180] sm:$0xff] }
 0x3cd   : > { %v2593_v5 = vpop.permute.xlu1 %2592  ;;  %v2591_v6 = vpop.permute.xlu0 %2590 }
 0x3ce   : > { %2635 = vst.msk [vmem:[%s4772_s22 + $0x12a] sm:$0xff] %vm848_vm1, %v2593_v5  ;;  %2634 = vst.msk [vmem:[%s4772_s22 + $0x122] sm:$0xff] %vm848_vm1, %v2591_v6 }
 0x3cf   : > { %2916 = vrot.lane.b32.xlu1 %v4151_v0, %s4380_s20  ;;  %2914 = vrot.lane.b32.xlu0 %v4150_v4, %s4380_s20  ;;  %v6627_v0 = vld [vmem:[%s4471_s19 + $0x198] sm:$0xff]  ;;  %v6630_v4 = vld [vmem:[%s4471_s19 + $0x190] sm:$0xff] }
 0x3d1   : > { %v2597_v9 = vpop.permute.xlu1 %2596  ;;  %v2595_v10 = vpop.permute.xlu0 %2594 }
 0x3d2   : > { %2637 = vst.msk [vmem:[%s4772_s22 + $0x142] sm:$0xff] %vm848_vm1, %v2597_v9  ;;  %2636 = vst.msk [vmem:[%s4772_s22 + $0x13a] sm:$0xff] %vm848_vm1, %v2595_v10 }
 0x3d3   : > { %2952 = vrot.lane.b32.xlu1 %v4153_v7, %s4381_s23  ;;  %2950 = vrot.lane.b32.xlu0 %v4152_v8, %s4381_s23 }
 0x3d5   : > { %v2601_v13 = vpop.permute.xlu1 %2600  ;;  %v2599_v14 = vpop.permute.xlu0 %2598 }
 0x3d6   : > { %2639 = vst.msk [vmem:[%s4772_s22 + $0x24a] sm:$0xff] %vm848_vm1, %v2601_v13  ;;  %2638 = vst.msk [vmem:[%s4772_s22 + $0x242] sm:$0xff] %vm848_vm1, %v2599_v14 }
 0x3d7   : > { %2956 = vrot.lane.b32.xlu1 %v4155_v11, %s4381_s23  ;;  %2954 = vrot.lane.b32.xlu0 %v4154_v12, %s4381_s23 }
 0x3d9   : > { %v2605_v17 = vpop.permute.xlu1 %2604  ;;  %v2603_v18 = vpop.permute.xlu0 %2602 }
 0x3da   : > { %2641 = vst.msk [vmem:[%s4772_s22 + $0x262] sm:$0xff] %vm848_vm1, %v2605_v17  ;;  %2640 = vst.msk [vmem:[%s4772_s22 + $0x25a] sm:$0xff] %vm848_vm1, %v2603_v18 }
 0x3db   : > { %2960 = vrot.lane.b32.xlu1 %v4157_v15, %s4381_s23  ;;  %2958 = vrot.lane.b32.xlu0 %v4156_v16, %s4381_s23 }
 0x3dd   : > { %v2609_v21 = vpop.permute.xlu1 %2608  ;;  %v2607_v22 = vpop.permute.xlu0 %2606 }
 0x3de   : > { %2643 = vst.msk [vmem:[%s4772_s22 + $0x36a] sm:$0xff] %vm848_vm1, %v2609_v21  ;;  %2642 = vst.msk [vmem:[%s4772_s22 + $0x362] sm:$0xff] %vm848_vm1, %v2607_v22 }
 0x3df   : > { %2964 = vrot.lane.b32.xlu1 %v4159_v19, %s4381_s23  ;;  %2962 = vrot.lane.b32.xlu0 %v4158_v20, %s4381_s23 }
 0x3e1   : > { %v2613_v25 = vpop.permute.xlu1 %2612  ;;  %v2611_v26 = vpop.permute.xlu0 %2610 }
 0x3e2   : > { %2645 = vst.msk [vmem:[%s4772_s22 + $0x382] sm:$0xff] %vm848_vm1, %v2613_v25  ;;  %2644 = vst.msk [vmem:[%s4772_s22 + $0x37a] sm:$0xff] %vm848_vm1, %v2611_v26 }
 0x3e3   : > { %3000 = vrot.lane.b32.xlu1 %v4161_v23, %s4382_s24  ;;  %2998 = vrot.lane.b32.xlu0 %v4160_v24, %s4382_s24 }
 0x3e5   : > { %v2681_v29 = vpop.permute.xlu1 %2680  ;;  %v2679_v30 = vpop.permute.xlu0 %2678 }
 0x3e6   : > { %2727 = vst.msk [vmem:[%s4772_s22 + $0xa] sm:$0xff] %vm1233_vm2, %v2681_v29  ;;  %2726 = vst.msk [vmem:[%s4772_s22 + $0x2] sm:$0xff] %vm1233_vm2, %v2679_v30 }
 0x3e7   : > { %3004 = vrot.lane.b32.xlu1 %v4163_v27, %s4382_s24  ;;  %3002 = vrot.lane.b32.xlu0 %v4162_v28, %s4382_s24 }
 0x3e9   : > { %v2685_v33 = vpop.permute.xlu1 %2684  ;;  %v2683_v34 = vpop.permute.xlu0 %2682 }
 0x3ea   : > { %2729 = vst.msk [vmem:[%s4772_s22 + $0x22] sm:$0xff] %vm1233_vm2, %v2685_v33  ;;  %2728 = vst.msk [vmem:[%s4772_s22 + $0x1a] sm:$0xff] %vm1233_vm2, %v2683_v34 }
 0x3eb   : > { %3008 = vrot.lane.b32.xlu1 %v4165_v31, %s4382_s24  ;;  %3006 = vrot.lane.b32.xlu0 %v4164_v32, %s4382_s24 }
 0x3ed   : > { %v2689_v37 = vpop.permute.xlu1 %2688  ;;  %v2687_v38 = vpop.permute.xlu0 %2686 }
 0x3ee   : > { %2731 = vst.msk [vmem:[%s4772_s22 + $0x12a] sm:$0xff] %vm1233_vm2, %v2689_v37  ;;  %2730 = vst.msk [vmem:[%s4772_s22 + $0x122] sm:$0xff] %vm1233_vm2, %v2687_v38 }
 0x3ef   : > { %3012 = vrot.lane.b32.xlu1 %v4167_v35, %s4382_s24  ;;  %3010 = vrot.lane.b32.xlu0 %v4166_v36, %s4382_s24 }
 0x3f1   : > { %v2693_v41 = vpop.permute.xlu1 %2692  ;;  %v2691_v42 = vpop.permute.xlu0 %2690 }
 0x3f2   : > { %2733 = vst.msk [vmem:[%s4772_s22 + $0x142] sm:$0xff] %vm1233_vm2, %v2693_v41  ;;  %2732 = vst.msk [vmem:[%s4772_s22 + $0x13a] sm:$0xff] %vm1233_vm2, %v2691_v42 }
 0x3f3   : > { %3064 = vrot.lane.b32.xlu1 %v6529_v39, %s4380_s20  ;;  %3062 = vrot.lane.b32.xlu0 %v6532_v40, %s4380_s20 }
 0x3f5   : > { %v2697_v45 = vpop.permute.xlu1 %2696  ;;  %v2695_v46 = vpop.permute.xlu0 %2694 }
 0x3f6   : > { %2735 = vst.msk [vmem:[%s4772_s22 + $0x24a] sm:$0xff] %vm1233_vm2, %v2697_v45  ;;  %2734 = vst.msk [vmem:[%s4772_s22 + $0x242] sm:$0xff] %vm1233_vm2, %v2695_v46 }
 0x3f7   : > { %3068 = vrot.lane.b32.xlu1 %v6543_v43, %s4380_s20  ;;  %3066 = vrot.lane.b32.xlu0 %v6546_v44, %s4380_s20 }
 0x3f9   : > { %v2701_v49 = vpop.permute.xlu1 %2700  ;;  %v2699_v58 = vpop.permute.xlu0 %2698 }
 0x3fa   : > { %2737 = vst.msk [vmem:[%s4772_s22 + $0x262] sm:$0xff] %vm1233_vm2, %v2701_v49  ;;  %2736 = vst.msk [vmem:[%s4772_s22 + $0x25a] sm:$0xff] %vm1233_vm2, %v2699_v58 }
 0x3fb   : > { %3072 = vrot.lane.b32.xlu1 %v6557_v47, %s4380_s20  ;;  %3070 = vrot.lane.b32.xlu0 %v6560_v48, %s4380_s20 }
 0x3fd   : > { %v2705_v51 = vpop.permute.xlu1 %2704  ;;  %v2703_v59 = vpop.permute.xlu0 %2702 }
 0x3fe   : > { %2739 = vst.msk [vmem:[%s4772_s22 + $0x36a] sm:$0xff] %vm1233_vm2, %v2705_v51  ;;  %2738 = vst.msk [vmem:[%s4772_s22 + $0x362] sm:$0xff] %vm1233_vm2, %v2703_v59 }
 0x3ff   : > { %3076 = vrot.lane.b32.xlu1 %v6571_v50, %s4380_s20  ;;  %3074 = vrot.lane.b32.xlu0 %v6574_v55, %s4380_s20 }
 0x401   : > { %v2709_v53 = vpop.permute.xlu1 %2708  ;;  %v2707_v57 = vpop.permute.xlu0 %2706 }
 0x402   : > { %2741 = vst.msk [vmem:[%s4772_s22 + $0x382] sm:$0xff] %vm1233_vm2, %v2709_v53  ;;  %2740 = vst.msk [vmem:[%s4772_s22 + $0x37a] sm:$0xff] %vm1233_vm2, %v2707_v57 }
 0x403   : > { %3080 = vrot.lane.b32.xlu1 %v6585_v56, %s4380_s20  ;;  %3078 = vrot.lane.b32.xlu0 %v6588_v52, %s4380_s20 }
 0x405   : > { %v2761_v63 = vpop.permute.xlu1 %2760  ;;  %v2759_v60 = vpop.permute.xlu0 %2758 }
 0x406   : > { %2783 = vst.msk [vmem:[%s4772_s22 + $0x18] sm:$0x3] %vm1458_vm3, %v2761_v63  ;;  %2782 = vst.msk [vmem:[%s4772_s22] sm:$0x3] %vm1458_vm3, %v2759_v60 }
 0x407   : > { %3084 = vrot.lane.b32.xlu1 %v6599_v54, %s4380_s20  ;;  %3082 = vrot.lane.b32.xlu0 %v6602_v62, %s4380_s20 }
 0x409   : > { %v2765_v1 = vpop.permute.xlu1 %2764  ;;  %v2763_v2 = vpop.permute.xlu0 %2762 }
 0x40a   : > { %2785 = vst.msk [vmem:[%s4772_s22 + $0x138] sm:$0x3] %vm1458_vm3, %v2765_v1  ;;  %2784 = vst.msk [vmem:[%s4772_s22 + $0x120] sm:$0x3] %vm1458_vm3, %v2763_v2 }
 0x40b   : > { %3088 = vrot.lane.b32.xlu1 %v6613_v3, %s4380_s20  ;;  %3086 = vrot.lane.b32.xlu0 %v6616_v61, %s4380_s20 }
 0x40d   : > { %v2769_v5 = vpop.permute.xlu1 %2768  ;;  %v2767_v6 = vpop.permute.xlu0 %2766 }
 0x40e   : > { %2787 = vst.msk [vmem:[%s4772_s22 + $0x258] sm:$0x3] %vm1458_vm3, %v2769_v5  ;;  %2786 = vst.msk [vmem:[%s4772_s22 + $0x240] sm:$0x3] %vm1458_vm3, %v2767_v6 }
 0x40f   : > { %3092 = vrot.lane.b32.xlu1 %v6627_v0, %s4380_s20  ;;  %3090 = vrot.lane.b32.xlu0 %v6630_v4, %s4380_s20 }
 0x411   : > { %v2773_v7 = vpop.permute.xlu1 %2772  ;;  %v2771_v8 = vpop.permute.xlu0 %2770 }
 0x412   : > { %2789 = vst.msk [vmem:[%s4772_s22 + $0x378] sm:$0x3] %vm1458_vm3, %v2773_v7  ;;  %2788 = vst.msk [vmem:[%s4772_s22 + $0x360] sm:$0x3] %vm1458_vm3, %v2771_v8  ;;  %v3466_v7 = vld [vmem:[%s4471_s19 + $0x90] sm:$0x3] }
 0x413   : > { %3161 = vrot.lane.b32.xlu1 %v6529_v39, %s4381_s23  ;;  %3159 = vrot.lane.b32.xlu0 %v6532_v40, %s4381_s23  ;;  %v3465_v8 = vld [vmem:[%s4471_s19 + $0x80] sm:$0x3] }
 0x415   : > { %v2809_v9 = vpop.permute.xlu1 %2808  ;;  %v2807_v10 = vpop.permute.xlu0 %2806 }
 0x416   : > { %2831 = vst.msk [vmem:[%s4772_s22 + $0x18] sm:$0x3] %vm1651_vm4, %v2809_v9  ;;  %2830 = vst.msk [vmem:[%s4772_s22] sm:$0x3] %vm1651_vm4, %v2807_v10 }
 0x417   : > { %3165 = vrot.lane.b32.xlu1 %v6543_v43, %s4381_s23  ;;  %3163 = vrot.lane.b32.xlu0 %v6546_v44, %s4381_s23 }
 0x419   : > { %v2813_v11 = vpop.permute.xlu1 %2812  ;;  %v2811_v12 = vpop.permute.xlu0 %2810 }
 0x41a   : > { %2833 = vst.msk [vmem:[%s4772_s22 + $0x138] sm:$0x3] %vm1651_vm4, %v2813_v11  ;;  %2832 = vst.msk [vmem:[%s4772_s22 + $0x120] sm:$0x3] %vm1651_vm4, %v2811_v12  ;;  %v3468_v11 = vld [vmem:[%s4471_s19 + $0x110] sm:$0x3] }
 0x41b   : > { %3169 = vrot.lane.b32.xlu1 %v6557_v47, %s4381_s23  ;;  %3167 = vrot.lane.b32.xlu0 %v6560_v48, %s4381_s23  ;;  %v3467_v12 = vld [vmem:[%s4471_s19 + $0x100] sm:$0x3] }
 0x41d   : > { %v2817_v13 = vpop.permute.xlu1 %2816  ;;  %v2815_v14 = vpop.permute.xlu0 %2814 }
 0x41e   : > { %2835 = vst.msk [vmem:[%s4772_s22 + $0x258] sm:$0x3] %vm1651_vm4, %v2817_v13  ;;  %2834 = vst.msk [vmem:[%s4772_s22 + $0x240] sm:$0x3] %vm1651_vm4, %v2815_v14 }
 0x41f   : > { %3173 = vrot.lane.b32.xlu1 %v6571_v50, %s4381_s23  ;;  %3171 = vrot.lane.b32.xlu0 %v6574_v55, %s4381_s23 }
 0x421   : > { %v2821_v15 = vpop.permute.xlu1 %2820  ;;  %v2819_v16 = vpop.permute.xlu0 %2818 }
 0x422   : > { %2837 = vst.msk [vmem:[%s4772_s22 + $0x378] sm:$0x3] %vm1651_vm4, %v2821_v15  ;;  %2836 = vst.msk [vmem:[%s4772_s22 + $0x360] sm:$0x3] %vm1651_vm4, %v2819_v16  ;;  %v3470_v15 = vld [vmem:[%s4471_s19 + $0x190] sm:$0x3] }
 0x423   : > { %3177 = vrot.lane.b32.xlu1 %v6585_v56, %s4381_s23  ;;  %3175 = vrot.lane.b32.xlu0 %v6588_v52, %s4381_s23  ;;  %v3469_v16 = vld [vmem:[%s4471_s19 + $0x180] sm:$0x3] }
 0x425   : > { %v2857_v17 = vpop.permute.xlu1 %2856  ;;  %v2855_v18 = vpop.permute.xlu0 %2854 }
 0x426   : > { %2879 = vst.msk [vmem:[%s4772_s22 + $0x18] sm:$0x3] %vm1844_vm5, %v2857_v17  ;;  %2878 = vst.msk [vmem:[%s4772_s22] sm:$0x3] %vm1844_vm5, %v2855_v18 }
 0x427   : > { %3181 = vrot.lane.b32.xlu1 %v6599_v54, %s4381_s23  ;;  %3179 = vrot.lane.b32.xlu0 %v6602_v62, %s4381_s23 }
 0x429   : > { %v2861_v19 = vpop.permute.xlu1 %2860  ;;  %v2859_v20 = vpop.permute.xlu0 %2858 }
 0x42a   : > { %2881 = vst.msk [vmem:[%s4772_s22 + $0x138] sm:$0x3] %vm1844_vm5, %v2861_v19  ;;  %2880 = vst.msk [vmem:[%s4772_s22 + $0x120] sm:$0x3] %vm1844_vm5, %v2859_v20  ;;  %v3512_v19 = vld [vmem:[%s4471_s19 + $0x10] sm:$0x3] }
 0x42b   : > { %3185 = vrot.lane.b32.xlu1 %v6613_v3, %s4381_s23  ;;  %3183 = vrot.lane.b32.xlu0 %v6616_v61, %s4381_s23  ;;  %v3511_v20 = vld [vmem:[%s4471_s19] sm:$0x3] }
 0x42d   : > { %v2865_v21 = vpop.permute.xlu1 %2864  ;;  %v2863_v22 = vpop.permute.xlu0 %2862 }
 0x42e   : > { %2883 = vst.msk [vmem:[%s4772_s22 + $0x258] sm:$0x3] %vm1844_vm5, %v2865_v21  ;;  %2882 = vst.msk [vmem:[%s4772_s22 + $0x240] sm:$0x3] %vm1844_vm5, %v2863_v22 }
 0x42f   : > { %3189 = vrot.lane.b32.xlu1 %v6627_v0, %s4381_s23  ;;  %3187 = vrot.lane.b32.xlu0 %v6630_v4, %s4381_s23 }
 0x431   : > { %v2869_v23 = vpop.permute.xlu1 %2868  ;;  %v2867_v24 = vpop.permute.xlu0 %2866 }
 0x432   : > { %2885 = vst.msk [vmem:[%s4772_s22 + $0x378] sm:$0x3] %vm1844_vm5, %v2869_v23  ;;  %2884 = vst.msk [vmem:[%s4772_s22 + $0x360] sm:$0x3] %vm1844_vm5, %v2867_v24  ;;  %v3514_v23 = vld [vmem:[%s4471_s19 + $0x90] sm:$0x3] }
 0x433   : > { %3257 = vrot.lane.b32.xlu1 %v6529_v39, %s4382_s24  ;;  %3255 = vrot.lane.b32.xlu0 %v6532_v40, %s4382_s24  ;;  %v3320_v39 = vld [vmem:[%s4471_s19 + $0x1e] sm:$0x3]  ;;  %v3319_v40 = vld [vmem:[%s4471_s19 + $0xe] sm:$0x3] }
 0x434   : > { %v3513_v24 = vld [vmem:[%s4471_s19 + $0x80] sm:$0x3] }
 0x435   : > { %v2905_v25 = vpop.permute.xlu1 %2904  ;;  %v2903_v26 = vpop.permute.xlu0 %2902 }
 0x436   : > { %2927 = vst.msk [vmem:[%s4772_s22 + $0x2a] sm:$0x3] %vm1458_vm3, %v2905_v25  ;;  %2926 = vst.msk [vmem:[%s4772_s22 + $0x12] sm:$0x3] %vm1458_vm3, %v2903_v26 }
 0x437   : > { %3261 = vrot.lane.b32.xlu1 %v6543_v43, %s4382_s24  ;;  %3259 = vrot.lane.b32.xlu0 %v6546_v44, %s4382_s24  ;;  %v3322_v43 = vld [vmem:[%s4471_s19 + $0x9e] sm:$0x3]  ;;  %v3321_v44 = vld [vmem:[%s4471_s19 + $0x8e] sm:$0x3] }
 0x439   : > { %v2909_v27 = vpop.permute.xlu1 %2908  ;;  %v2907_v28 = vpop.permute.xlu0 %2906 }
 0x43a   : > { %2929 = vst.msk [vmem:[%s4772_s22 + $0x14a] sm:$0x3] %vm1458_vm3, %v2909_v27  ;;  %2928 = vst.msk [vmem:[%s4772_s22 + $0x132] sm:$0x3] %vm1458_vm3, %v2907_v28  ;;  %v3516_v27 = vld [vmem:[%s4471_s19 + $0x110] sm:$0x3] }
 0x43b   : > { %3265 = vrot.lane.b32.xlu1 %v6557_v47, %s4382_s24  ;;  %3263 = vrot.lane.b32.xlu0 %v6560_v48, %s4382_s24  ;;  %v3324_v47 = vld [vmem:[%s4471_s19 + $0x11e] sm:$0x3]  ;;  %v3323_v48 = vld [vmem:[%s4471_s19 + $0x10e] sm:$0x3] }
 0x43c   : > { %v3515_v28 = vld [vmem:[%s4471_s19 + $0x100] sm:$0x3] }
 0x43d   : > { %v2913_v29 = vpop.permute.xlu1 %2912  ;;  %v2911_v30 = vpop.permute.xlu0 %2910 }
 0x43e   : > { %2931 = vst.msk [vmem:[%s4772_s22 + $0x26a] sm:$0x3] %vm1458_vm3, %v2913_v29  ;;  %2930 = vst.msk [vmem:[%s4772_s22 + $0x252] sm:$0x3] %vm1458_vm3, %v2911_v30 }
 0x43f   : > { %3269 = vrot.lane.b32.xlu1 %v6571_v50, %s4382_s24  ;;  %3267 = vrot.lane.b32.xlu0 %v6574_v55, %s4382_s24  ;;  %v3326_v50 = vld [vmem:[%s4471_s19 + $0x19e] sm:$0x3]  ;;  %v3325_v55 = vld [vmem:[%s4471_s19 + $0x18e] sm:$0x3] }
 0x441   : > { %v2917_v31 = vpop.permute.xlu1 %2916  ;;  %v2915_v32 = vpop.permute.xlu0 %2914 }
 0x442   : > { %2933 = vst.msk [vmem:[%s4772_s22 + $0x38a] sm:$0x3] %vm1458_vm3, %v2917_v31  ;;  %2932 = vst.msk [vmem:[%s4772_s22 + $0x372] sm:$0x3] %vm1458_vm3, %v2915_v32  ;;  %v3374_v31 = vld [vmem:[%s4471_s19 + $0x19e] sm:$0x3] }
 0x443   : > { %3273 = vrot.lane.b32.xlu1 %v6585_v56, %s4382_s24  ;;  %3271 = vrot.lane.b32.xlu0 %v6588_v52, %s4382_s24  ;;  %v3368_v56 = vld [vmem:[%s4471_s19 + $0x1e] sm:$0x3]  ;;  %v3367_v52 = vld [vmem:[%s4471_s19 + $0xe] sm:$0x3] }
 0x444   : > { %v3373_v32 = vld [vmem:[%s4471_s19 + $0x18e] sm:$0x3] }
 0x445   : > { %v2953_v33 = vpop.permute.xlu1 %2952  ;;  %v2951_v34 = vpop.permute.xlu0 %2950 }
 0x446   : > { %2975 = vst.msk [vmem:[%s4772_s22 + $0x2a] sm:$0x3] %vm1651_vm4, %v2953_v33  ;;  %2974 = vst.msk [vmem:[%s4772_s22 + $0x12] sm:$0x3] %vm1651_vm4, %v2951_v34 }
 0x447   : > { %3277 = vrot.lane.b32.xlu1 %v6599_v54, %s4382_s24  ;;  %3275 = vrot.lane.b32.xlu0 %v6602_v62, %s4382_s24  ;;  %v3370_v54 = vld [vmem:[%s4471_s19 + $0x9e] sm:$0x3]  ;;  %v3369_v62 = vld [vmem:[%s4471_s19 + $0x8e] sm:$0x3] }
 0x449   : > { %v2957_v35 = vpop.permute.xlu1 %2956  ;;  %v2955_v36 = vpop.permute.xlu0 %2954 }
 0x44a   : > { %2977 = vst.msk [vmem:[%s4772_s22 + $0x14a] sm:$0x3] %vm1651_vm4, %v2957_v35  ;;  %2976 = vst.msk [vmem:[%s4772_s22 + $0x132] sm:$0x3] %vm1651_vm4, %v2955_v36  ;;  %v3518_v35 = vld [vmem:[%s4471_s19 + $0x190] sm:$0x3] }
 0x44b   : > { %3281 = vrot.lane.b32.xlu1 %v6613_v3, %s4382_s24  ;;  %3279 = vrot.lane.b32.xlu0 %v6616_v61, %s4382_s24  ;;  %v3372_v3 = vld [vmem:[%s4471_s19 + $0x11e] sm:$0x3]  ;;  %v3371_v61 = vld [vmem:[%s4471_s19 + $0x10e] sm:$0x3] }
 0x44c   : > { %v3517_v36 = vld [vmem:[%s4471_s19 + $0x180] sm:$0x3] }
 0x44d   : > { %v2961_v37 = vpop.permute.xlu1 %2960  ;;  %v2959_v38 = vpop.permute.xlu0 %2958 }
 0x44e   : > { %2979 = vst.msk [vmem:[%s4772_s22 + $0x26a] sm:$0x3] %vm1651_vm4, %v2961_v37  ;;  %2978 = vst.msk [vmem:[%s4772_s22 + $0x252] sm:$0x3] %vm1651_vm4, %v2959_v38 }
 0x44f   : > { %3285 = vrot.lane.b32.xlu1 %v6627_v0, %s4382_s24  ;;  %3283 = vrot.lane.b32.xlu0 %v6630_v4, %s4382_s24  ;;  %v3464_v0 = vld [vmem:[%s4471_s19 + $0x10] sm:$0x3]  ;;  %v3463_v4 = vld [vmem:[%s4471_s19] sm:$0x3] }
 0x451   : > { %v2965_v41 = vpop.permute.xlu1 %2964  ;;  %v2963_v42 = vpop.permute.xlu0 %2962 }
 0x452   : > { %2981 = vst.msk [vmem:[%s4772_s22 + $0x38a] sm:$0x3] %vm1651_vm4, %v2965_v41  ;;  %2980 = vst.msk [vmem:[%s4772_s22 + $0x372] sm:$0x3] %vm1651_vm4, %v2963_v42 }
 0x453   : > { %3337 = vrot.lane.b32.xlu1 %v3320_v39, %s4380_s20  ;;  %3335 = vrot.lane.b32.xlu0 %v3319_v40, %s4380_s20  ;;  %v3416_v39 = vld [vmem:[%s4471_s19 + $0x1e] sm:$0x3]  ;;  %v3415_v40 = vld [vmem:[%s4471_s19 + $0xe] sm:$0x3] }
 0x455   : > { %v3001_v45 = vpop.permute.xlu1 %3000  ;;  %v2999_v46 = vpop.permute.xlu0 %2998 }
 0x456   : > { %3023 = vst.msk [vmem:[%s4772_s22 + $0x2a] sm:$0x3] %vm1844_vm5, %v3001_v45  ;;  %3022 = vst.msk [vmem:[%s4772_s22 + $0x12] sm:$0x3] %vm1844_vm5, %v2999_v46 }
 0x457   : > { %3341 = vrot.lane.b32.xlu1 %v3322_v43, %s4380_s20  ;;  %3339 = vrot.lane.b32.xlu0 %v3321_v44, %s4380_s20  ;;  %v3560_v43 = vld [vmem:[%s4471_s19 + $0x10] sm:$0x3]  ;;  %v3559_v44 = vld [vmem:[%s4471_s19] sm:$0x3] }
 0x459   : > { %v3005_v49 = vpop.permute.xlu1 %3004  ;;  %v3003_v58 = vpop.permute.xlu0 %3002 }
 0x45a   : > { %3025 = vst.msk [vmem:[%s4772_s22 + $0x14a] sm:$0x3] %vm1844_vm5, %v3005_v49  ;;  %3024 = vst.msk [vmem:[%s4772_s22 + $0x132] sm:$0x3] %vm1844_vm5, %v3003_v58 }
 0x45b   : > { %3345 = vrot.lane.b32.xlu1 %v3324_v47, %s4380_s20  ;;  %3343 = vrot.lane.b32.xlu0 %v3323_v48, %s4380_s20  ;;  %v3418_v47 = vld [vmem:[%s4471_s19 + $0x9e] sm:$0x3]  ;;  %v3417_v48 = vld [vmem:[%s4471_s19 + $0x8e] sm:$0x3] }
 0x45d   : > { %v3009_v51 = vpop.permute.xlu1 %3008  ;;  %v3007_v59 = vpop.permute.xlu0 %3006 }
 0x45e   : > { %3027 = vst.msk [vmem:[%s4772_s22 + $0x26a] sm:$0x3] %vm1844_vm5, %v3009_v51  ;;  %3026 = vst.msk [vmem:[%s4772_s22 + $0x252] sm:$0x3] %vm1844_vm5, %v3007_v59 }
 0x45f   : > { %3349 = vrot.lane.b32.xlu1 %v3326_v50, %s4380_s20  ;;  %3347 = vrot.lane.b32.xlu0 %v3325_v55, %s4380_s20  ;;  %v3562_v50 = vld [vmem:[%s4471_s19 + $0x90] sm:$0x3]  ;;  %v3561_v55 = vld [vmem:[%s4471_s19 + $0x80] sm:$0x3] }
 0x461   : > { %v3013_v53 = vpop.permute.xlu1 %3012  ;;  %v3011_v57 = vpop.permute.xlu0 %3010 }
 0x462   : > { %3029 = vst.msk [vmem:[%s4772_s22 + $0x38a] sm:$0x3] %vm1844_vm5, %v3013_v53  ;;  %3028 = vst.msk [vmem:[%s4772_s22 + $0x372] sm:$0x3] %vm1844_vm5, %v3011_v57 }
 0x463   : > { %3385 = vrot.lane.b32.xlu1 %v3368_v56, %s4381_s23  ;;  %3383 = vrot.lane.b32.xlu0 %v3367_v52, %s4381_s23  ;;  %v3420_v56 = vld [vmem:[%s4471_s19 + $0x11e] sm:$0x3]  ;;  %v3419_v52 = vld [vmem:[%s4471_s19 + $0x10e] sm:$0x3] }
 0x465   : > { %v3065_v63 = vpop.permute.xlu1 %3064  ;;  %v3063_v60 = vpop.permute.xlu0 %3062 }
 0x466   : > { %4169 = vst.msk [vmem:[%s4772_s22 + $0xfa] sm:$0xff] %vm463_vm0, %v3065_v63  ;;  %4168 = vst.msk [vmem:[%s4772_s22 + $0xf2] sm:$0xff] %vm463_vm0, %v3063_v60 }
 0x467   : > { %3389 = vrot.lane.b32.xlu1 %v3370_v54, %s4381_s23  ;;  %3387 = vrot.lane.b32.xlu0 %v3369_v62, %s4381_s23  ;;  %v3564_v54 = vld [vmem:[%s4471_s19 + $0x110] sm:$0x3]  ;;  %v3563_v62 = vld [vmem:[%s4471_s19 + $0x100] sm:$0x3] }
 0x469   : > { %v3069_v1 = vpop.permute.xlu1 %3068  ;;  %v3067_v2 = vpop.permute.xlu0 %3066 }
 0x46a   : > { %4171 = vst.msk [vmem:[%s4772_s22 + $0x112] sm:$0xff] %vm463_vm0, %v3069_v1  ;;  %4170 = vst.msk [vmem:[%s4772_s22 + $0x10a] sm:$0xff] %vm463_vm0, %v3067_v2 }
 0x46b   : > { %3393 = vrot.lane.b32.xlu1 %v3372_v3, %s4381_s23  ;;  %3391 = vrot.lane.b32.xlu0 %v3371_v61, %s4381_s23  ;;  %v3422_v3 = vld [vmem:[%s4471_s19 + $0x19e] sm:$0x3]  ;;  %v3421_v61 = vld [vmem:[%s4471_s19 + $0x18e] sm:$0x3] }
 0x46d   : > { %v3073_v5 = vpop.permute.xlu1 %3072  ;;  %v3071_v6 = vpop.permute.xlu0 %3070 }
 0x46e   : > { %4173 = vst.msk [vmem:[%s4772_s22 + $0x21a] sm:$0xff] %vm463_vm0, %v3073_v5  ;;  %4172 = vst.msk [vmem:[%s4772_s22 + $0x212] sm:$0xff] %vm463_vm0, %v3071_v6 }
 0x46f   : > { %3481 = vrot.lane.b32.xlu1 %v3464_v0, %s4380_s20  ;;  %3479 = vrot.lane.b32.xlu0 %v3463_v4, %s4380_s20  ;;  %v3566_v0 = vld [vmem:[%s4471_s19 + $0x190] sm:$0x3]  ;;  %v3565_v4 = vld [vmem:[%s4471_s19 + $0x180] sm:$0x3] }
 0x471   : > { %v3077_v9 = vpop.permute.xlu1 %3076  ;;  %v3075_v10 = vpop.permute.xlu0 %3074 }
 0x472   : > { %4175 = vst.msk [vmem:[%s4772_s22 + $0x232] sm:$0xff] %vm463_vm0, %v3077_v9  ;;  %4174 = vst.msk [vmem:[%s4772_s22 + $0x22a] sm:$0xff] %vm463_vm0, %v3075_v10 }
 0x473   : > { %3485 = vrot.lane.b32.xlu1 %v3466_v7, %s4380_s20  ;;  %3483 = vrot.lane.b32.xlu0 %v3465_v8, %s4380_s20 }
 0x475   : > { %v3081_v13 = vpop.permute.xlu1 %3080  ;;  %v3079_v14 = vpop.permute.xlu0 %3078 }
 0x476   : > { %4177 = vst.msk [vmem:[%s4772_s22 + $0x33a] sm:$0xff] %vm463_vm0, %v3081_v13  ;;  %4176 = vst.msk [vmem:[%s4772_s22 + $0x332] sm:$0xff] %vm463_vm0, %v3079_v14 }
 0x477   : > { %3489 = vrot.lane.b32.xlu1 %v3468_v11, %s4380_s20  ;;  %3487 = vrot.lane.b32.xlu0 %v3467_v12, %s4380_s20 }
 0x479   : > { %v3085_v17 = vpop.permute.xlu1 %3084  ;;  %v3083_v18 = vpop.permute.xlu0 %3082 }
 0x47a   : > { %4179 = vst.msk [vmem:[%s4772_s22 + $0x352] sm:$0xff] %vm463_vm0, %v3085_v17  ;;  %4178 = vst.msk [vmem:[%s4772_s22 + $0x34a] sm:$0xff] %vm463_vm0, %v3083_v18 }
 0x47b   : > { %3493 = vrot.lane.b32.xlu1 %v3470_v15, %s4380_s20  ;;  %3491 = vrot.lane.b32.xlu0 %v3469_v16, %s4380_s20 }
 0x47d   : > { %v3089_v21 = vpop.permute.xlu1 %3088  ;;  %v3087_v22 = vpop.permute.xlu0 %3086 }
 0x47e   : > { %4181 = vst.msk [vmem:[%s4772_s22 + $0x45a] sm:$0xff] %vm463_vm0, %v3089_v21  ;;  %4180 = vst.msk [vmem:[%s4772_s22 + $0x452] sm:$0xff] %vm463_vm0, %v3087_v22 }
 0x47f   : > { %3529 = vrot.lane.b32.xlu1 %v3512_v19, %s4381_s23  ;;  %3527 = vrot.lane.b32.xlu0 %v3511_v20, %s4381_s23 }
 0x481   : > { %v3093_v25 = vpop.permute.xlu1 %3092  ;;  %v3091_v26 = vpop.permute.xlu0 %3090 }
 0x482   : > { %4183 = vst.msk [vmem:[%s4772_s22 + $0x472] sm:$0xff] %vm463_vm0, %v3093_v25  ;;  %4182 = vst.msk [vmem:[%s4772_s22 + $0x46a] sm:$0xff] %vm463_vm0, %v3091_v26 }
 0x483   : > { %3533 = vrot.lane.b32.xlu1 %v3514_v23, %s4381_s23  ;;  %3531 = vrot.lane.b32.xlu0 %v3513_v24, %s4381_s23 }
 0x485   : > { %v3162_v29 = vpop.permute.xlu1 %3161  ;;  %v3160_v30 = vpop.permute.xlu0 %3159 }
 0x486   : > { %4185 = vst.msk [vmem:[%s4772_s22 + $0xfa] sm:$0xff] %vm848_vm1, %v3162_v29  ;;  %4184 = vst.msk [vmem:[%s4772_s22 + $0xf2] sm:$0xff] %vm848_vm1, %v3160_v30 }
 0x487   : > { %3537 = vrot.lane.b32.xlu1 %v3516_v27, %s4381_s23  ;;  %3535 = vrot.lane.b32.xlu0 %v3515_v28, %s4381_s23 }
 0x489   : > { %v3166_v33 = vpop.permute.xlu1 %3165  ;;  %v3164_v34 = vpop.permute.xlu0 %3163 }
 0x48a   : > { %4187 = vst.msk [vmem:[%s4772_s22 + $0x112] sm:$0xff] %vm848_vm1, %v3166_v33  ;;  %4186 = vst.msk [vmem:[%s4772_s22 + $0x10a] sm:$0xff] %vm848_vm1, %v3164_v34 }
 0x48b   : > { %3397 = vrot.lane.b32.xlu1 %v3374_v31, %s4381_s23  ;;  %3395 = vrot.lane.b32.xlu0 %v3373_v32, %s4381_s23 }
 0x48d   : > { %v3170_v37 = vpop.permute.xlu1 %3169  ;;  %v3168_v38 = vpop.permute.xlu0 %3167 }
 0x48e   : > { %4189 = vst.msk [vmem:[%s4772_s22 + $0x21a] sm:$0xff] %vm848_vm1, %v3170_v37  ;;  %4188 = vst.msk [vmem:[%s4772_s22 + $0x212] sm:$0xff] %vm848_vm1, %v3168_v38 }
 0x48f   : > { %3541 = vrot.lane.b32.xlu1 %v3518_v35, %s4381_s23  ;;  %3539 = vrot.lane.b32.xlu0 %v3517_v36, %s4381_s23 }
 0x491   : > { %v3174_v41 = vpop.permute.xlu1 %3173  ;;  %v3172_v42 = vpop.permute.xlu0 %3171 }
 0x492   : > { %4191 = vst.msk [vmem:[%s4772_s22 + $0x232] sm:$0xff] %vm848_vm1, %v3174_v41  ;;  %4190 = vst.msk [vmem:[%s4772_s22 + $0x22a] sm:$0xff] %vm848_vm1, %v3172_v42 }
 0x493   : > { %3433 = vrot.lane.b32.xlu1 %v3416_v39, %s4382_s24  ;;  %3431 = vrot.lane.b32.xlu0 %v3415_v40, %s4382_s24 }
 0x495   : > { %v3178_v45 = vpop.permute.xlu1 %3177  ;;  %v3176_v46 = vpop.permute.xlu0 %3175 }
 0x496   : > { %4193 = vst.msk [vmem:[%s4772_s22 + $0x33a] sm:$0xff] %vm848_vm1, %v3178_v45  ;;  %4192 = vst.msk [vmem:[%s4772_s22 + $0x332] sm:$0xff] %vm848_vm1, %v3176_v46 }
 0x497   : > { %3577 = vrot.lane.b32.xlu1 %v3560_v43, %s4382_s24  ;;  %3575 = vrot.lane.b32.xlu0 %v3559_v44, %s4382_s24 }
 0x499   : > { %v3182_v49 = vpop.permute.xlu1 %3181  ;;  %v3180_v58 = vpop.permute.xlu0 %3179 }
 0x49a   : > { %4195 = vst.msk [vmem:[%s4772_s22 + $0x352] sm:$0xff] %vm848_vm1, %v3182_v49  ;;  %4194 = vst.msk [vmem:[%s4772_s22 + $0x34a] sm:$0xff] %vm848_vm1, %v3180_v58 }
 0x49b   : > { %3437 = vrot.lane.b32.xlu1 %v3418_v47, %s4382_s24  ;;  %3435 = vrot.lane.b32.xlu0 %v3417_v48, %s4382_s24 }
 0x49d   : > { %v3186_v51 = vpop.permute.xlu1 %3185  ;;  %v3184_v59 = vpop.permute.xlu0 %3183 }
 0x49e   : > { %4197 = vst.msk [vmem:[%s4772_s22 + $0x45a] sm:$0xff] %vm848_vm1, %v3186_v51  ;;  %4196 = vst.msk [vmem:[%s4772_s22 + $0x452] sm:$0xff] %vm848_vm1, %v3184_v59 }
 0x49f   : > { %3581 = vrot.lane.b32.xlu1 %v3562_v50, %s4382_s24  ;;  %3579 = vrot.lane.b32.xlu0 %v3561_v55, %s4382_s24 }
 0x4a1   : > { %v3190_v53 = vpop.permute.xlu1 %3189  ;;  %v3188_v57 = vpop.permute.xlu0 %3187 }
 0x4a2   : > { %4199 = vst.msk [vmem:[%s4772_s22 + $0x472] sm:$0xff] %vm848_vm1, %v3190_v53  ;;  %4198 = vst.msk [vmem:[%s4772_s22 + $0x46a] sm:$0xff] %vm848_vm1, %v3188_v57 }
 0x4a3   : > { %3441 = vrot.lane.b32.xlu1 %v3420_v56, %s4382_s24  ;;  %3439 = vrot.lane.b32.xlu0 %v3419_v52, %s4382_s24 }
 0x4a5   : > { %v3258_v63 = vpop.permute.xlu1 %3257  ;;  %v3256_v60 = vpop.permute.xlu0 %3255 }
 0x4a6   : > { %4201 = vst.msk [vmem:[%s4772_s22 + $0xfa] sm:$0xff] %vm1233_vm2, %v3258_v63  ;;  %4200 = vst.msk [vmem:[%s4772_s22 + $0xf2] sm:$0xff] %vm1233_vm2, %v3256_v60 }
 0x4a7   : > { %3585 = vrot.lane.b32.xlu1 %v3564_v54, %s4382_s24  ;;  %3583 = vrot.lane.b32.xlu0 %v3563_v62, %s4382_s24 }
 0x4a9   : > { %v3262_v1 = vpop.permute.xlu1 %3261  ;;  %v3260_v2 = vpop.permute.xlu0 %3259 }
 0x4aa   : > { %4203 = vst.msk [vmem:[%s4772_s22 + $0x112] sm:$0xff] %vm1233_vm2, %v3262_v1  ;;  %4202 = vst.msk [vmem:[%s4772_s22 + $0x10a] sm:$0xff] %vm1233_vm2, %v3260_v2 }
 0x4ab   : > { %3445 = vrot.lane.b32.xlu1 %v3422_v3, %s4382_s24  ;;  %3443 = vrot.lane.b32.xlu0 %v3421_v61, %s4382_s24 }
 0x4ad   : > { %v3266_v5 = vpop.permute.xlu1 %3265  ;;  %v3264_v6 = vpop.permute.xlu0 %3263 }
 0x4ae   : > { %4205 = vst.msk [vmem:[%s4772_s22 + $0x21a] sm:$0xff] %vm1233_vm2, %v3266_v5  ;;  %4204 = vst.msk [vmem:[%s4772_s22 + $0x212] sm:$0xff] %vm1233_vm2, %v3264_v6 }
 0x4af   : > { %3589 = vrot.lane.b32.xlu1 %v3566_v0, %s4382_s24  ;;  %3587 = vrot.lane.b32.xlu0 %v3565_v4, %s4382_s24 }
 0x4b1   : > { %v3270_v7 = vpop.permute.xlu1 %3269  ;;  %v3268_v8 = vpop.permute.xlu0 %3267 }
 0x4b2   : > { %4207 = vst.msk [vmem:[%s4772_s22 + $0x232] sm:$0xff] %vm1233_vm2, %v3270_v7  ;;  %4206 = vst.msk [vmem:[%s4772_s22 + $0x22a] sm:$0xff] %vm1233_vm2, %v3268_v8 }
 0x4b5   : > { %v3274_v9 = vpop.permute.xlu1 %3273  ;;  %v3272_v10 = vpop.permute.xlu0 %3271 }
 0x4b6   : > { %4209 = vst.msk [vmem:[%s4772_s22 + $0x33a] sm:$0xff] %vm1233_vm2, %v3274_v9  ;;  %4208 = vst.msk [vmem:[%s4772_s22 + $0x332] sm:$0xff] %vm1233_vm2, %v3272_v10 }
 0x4b9   : > { %v3278_v11 = vpop.permute.xlu1 %3277  ;;  %v3276_v12 = vpop.permute.xlu0 %3275 }
 0x4ba   : > { %4211 = vst.msk [vmem:[%s4772_s22 + $0x352] sm:$0xff] %vm1233_vm2, %v3278_v11  ;;  %4210 = vst.msk [vmem:[%s4772_s22 + $0x34a] sm:$0xff] %vm1233_vm2, %v3276_v12 }
 0x4bd   : > { %v3282_v13 = vpop.permute.xlu1 %3281  ;;  %v3280_v14 = vpop.permute.xlu0 %3279 }
 0x4be   : > { %4213 = vst.msk [vmem:[%s4772_s22 + $0x45a] sm:$0xff] %vm1233_vm2, %v3282_v13  ;;  %4212 = vst.msk [vmem:[%s4772_s22 + $0x452] sm:$0xff] %vm1233_vm2, %v3280_v14 }
 0x4c1   : > { %v3286_v15 = vpop.permute.xlu1 %3285  ;;  %v3284_v16 = vpop.permute.xlu0 %3283 }
 0x4c2   : > { %4215 = vst.msk [vmem:[%s4772_s22 + $0x472] sm:$0xff] %vm1233_vm2, %v3286_v15  ;;  %4214 = vst.msk [vmem:[%s4772_s22 + $0x46a] sm:$0xff] %vm1233_vm2, %v3284_v16 }
 0x4c5   : > { %v3338_v17 = vpop.permute.xlu1 %3337  ;;  %v3336_v18 = vpop.permute.xlu0 %3335 }
 0x4c6   : > { %4217 = vst.msk [vmem:[%s4772_s22 + $0x108] sm:$0x3] %vm1458_vm3, %v3338_v17  ;;  %4216 = vst.msk [vmem:[%s4772_s22 + $0xf0] sm:$0x3] %vm1458_vm3, %v3336_v18 }
 0x4c9   : > { %v3342_v19 = vpop.permute.xlu1 %3341  ;;  %v3340_v20 = vpop.permute.xlu0 %3339 }
 0x4ca   : > { %4219 = vst.msk [vmem:[%s4772_s22 + $0x228] sm:$0x3] %vm1458_vm3, %v3342_v19  ;;  %4218 = vst.msk [vmem:[%s4772_s22 + $0x210] sm:$0x3] %vm1458_vm3, %v3340_v20 }
 0x4cd   : > { %v3346_v21 = vpop.permute.xlu1 %3345  ;;  %v3344_v22 = vpop.permute.xlu0 %3343 }
 0x4ce   : > { %4221 = vst.msk [vmem:[%s4772_s22 + $0x348] sm:$0x3] %vm1458_vm3, %v3346_v21  ;;  %4220 = vst.msk [vmem:[%s4772_s22 + $0x330] sm:$0x3] %vm1458_vm3, %v3344_v22 }
 0x4d1   : > { %v3350_v23 = vpop.permute.xlu1 %3349  ;;  %v3348_v24 = vpop.permute.xlu0 %3347 }
 0x4d2   : > { %4223 = vst.msk [vmem:[%s4772_s22 + $0x468] sm:$0x3] %vm1458_vm3, %v3350_v23  ;;  %4222 = vst.msk [vmem:[%s4772_s22 + $0x450] sm:$0x3] %vm1458_vm3, %v3348_v24 }
 0x4d5   : > { %v3386_v25 = vpop.permute.xlu1 %3385  ;;  %v3384_v26 = vpop.permute.xlu0 %3383 }
 0x4d6   : > { %4225 = vst.msk [vmem:[%s4772_s22 + $0x108] sm:$0x3] %vm1651_vm4, %v3386_v25  ;;  %4224 = vst.msk [vmem:[%s4772_s22 + $0xf0] sm:$0x3] %vm1651_vm4, %v3384_v26 }
 0x4d9   : > { %v3390_v27 = vpop.permute.xlu1 %3389  ;;  %v3388_v28 = vpop.permute.xlu0 %3387 }
 0x4da   : > { %4227 = vst.msk [vmem:[%s4772_s22 + $0x228] sm:$0x3] %vm1651_vm4, %v3390_v27  ;;  %4226 = vst.msk [vmem:[%s4772_s22 + $0x210] sm:$0x3] %vm1651_vm4, %v3388_v28 }
 0x4dd   : > { %v3394_v29 = vpop.permute.xlu1 %3393  ;;  %v3392_v30 = vpop.permute.xlu0 %3391 }
 0x4de   : > { %4229 = vst.msk [vmem:[%s4772_s22 + $0x348] sm:$0x3] %vm1651_vm4, %v3394_v29  ;;  %4228 = vst.msk [vmem:[%s4772_s22 + $0x330] sm:$0x3] %vm1651_vm4, %v3392_v30 }
 0x4e1   : > { %v3482_v31 = vpop.permute.xlu1 %3481  ;;  %v3480_v32 = vpop.permute.xlu0 %3479 }
 0x4e2   : > { %4241 = vst.msk [vmem:[%s4772_s22 + $0x11a] sm:$0x3] %vm1458_vm3, %v3482_v31  ;;  %4240 = vst.msk [vmem:[%s4772_s22 + $0x102] sm:$0x3] %vm1458_vm3, %v3480_v32 }
 0x4e5   : > { %v3486_v33 = vpop.permute.xlu1 %3485  ;;  %v3484_v34 = vpop.permute.xlu0 %3483 }
 0x4e6   : > { %4243 = vst.msk [vmem:[%s4772_s22 + $0x23a] sm:$0x3] %vm1458_vm3, %v3486_v33  ;;  %4242 = vst.msk [vmem:[%s4772_s22 + $0x222] sm:$0x3] %vm1458_vm3, %v3484_v34 }
 0x4e9   : > { %v3490_v35 = vpop.permute.xlu1 %3489  ;;  %v3488_v36 = vpop.permute.xlu0 %3487 }
 0x4ea   : > { %4245 = vst.msk [vmem:[%s4772_s22 + $0x35a] sm:$0x3] %vm1458_vm3, %v3490_v35  ;;  %4244 = vst.msk [vmem:[%s4772_s22 + $0x342] sm:$0x3] %vm1458_vm3, %v3488_v36 }
 0x4ed   : > { %v3494_v37 = vpop.permute.xlu1 %3493  ;;  %v3492_v38 = vpop.permute.xlu0 %3491 }
 0x4ee   : > { %4247 = vst.msk [vmem:[%s4772_s22 + $0x47a] sm:$0x3] %vm1458_vm3, %v3494_v37  ;;  %4246 = vst.msk [vmem:[%s4772_s22 + $0x462] sm:$0x3] %vm1458_vm3, %v3492_v38 }
 0x4f1   : > { %v3530_v39 = vpop.permute.xlu1 %3529  ;;  %v3528_v40 = vpop.permute.xlu0 %3527 }
 0x4f2   : > { %4249 = vst.msk [vmem:[%s4772_s22 + $0x11a] sm:$0x3] %vm1651_vm4, %v3530_v39  ;;  %4248 = vst.msk [vmem:[%s4772_s22 + $0x102] sm:$0x3] %vm1651_vm4, %v3528_v40 }
 0x4f5   : > { %v3534_v41 = vpop.permute.xlu1 %3533  ;;  %v3532_v42 = vpop.permute.xlu0 %3531 }
 0x4f6   : > { %4251 = vst.msk [vmem:[%s4772_s22 + $0x23a] sm:$0x3] %vm1651_vm4, %v3534_v41  ;;  %4250 = vst.msk [vmem:[%s4772_s22 + $0x222] sm:$0x3] %vm1651_vm4, %v3532_v42 }
 0x4f9   : > { %v3538_v43 = vpop.permute.xlu1 %3537  ;;  %v3536_v44 = vpop.permute.xlu0 %3535 }
 0x4fa   : > { %4253 = vst.msk [vmem:[%s4772_s22 + $0x35a] sm:$0x3] %vm1651_vm4, %v3538_v43  ;;  %4252 = vst.msk [vmem:[%s4772_s22 + $0x342] sm:$0x3] %vm1651_vm4, %v3536_v44 }
 0x4fd   : > { %v3398_v45 = vpop.permute.xlu1 %3397  ;;  %v3396_v46 = vpop.permute.xlu0 %3395 }
 0x4fe   : > { %4231 = vst.msk [vmem:[%s4772_s22 + $0x468] sm:$0x3] %vm1651_vm4, %v3398_v45  ;;  %4230 = vst.msk [vmem:[%s4772_s22 + $0x450] sm:$0x3] %vm1651_vm4, %v3396_v46 }
 0x501   : > { %v3542_v47 = vpop.permute.xlu1 %3541  ;;  %v3540_v48 = vpop.permute.xlu0 %3539 }
 0x502   : > { %4255 = vst.msk [vmem:[%s4772_s22 + $0x47a] sm:$0x3] %vm1651_vm4, %v3542_v47  ;;  %4254 = vst.msk [vmem:[%s4772_s22 + $0x462] sm:$0x3] %vm1651_vm4, %v3540_v48 }
 0x505   : > { %v3434_v49 = vpop.permute.xlu1 %3433  ;;  %v3432_v58 = vpop.permute.xlu0 %3431 }
 0x506   : > { %4233 = vst.msk [vmem:[%s4772_s22 + $0x108] sm:$0x3] %vm1844_vm5, %v3434_v49  ;;  %4232 = vst.msk [vmem:[%s4772_s22 + $0xf0] sm:$0x3] %vm1844_vm5, %v3432_v58 }
 0x509   : > { %v3578_v50 = vpop.permute.xlu1 %3577  ;;  %v3576_v55 = vpop.permute.xlu0 %3575 }
 0x50a   : > { %4257 = vst.msk [vmem:[%s4772_s22 + $0x11a] sm:$0x3] %vm1844_vm5, %v3578_v50  ;;  %4256 = vst.msk [vmem:[%s4772_s22 + $0x102] sm:$0x3] %vm1844_vm5, %v3576_v55 }
 0x50d   : > { %v3438_v51 = vpop.permute.xlu1 %3437  ;;  %v3436_v59 = vpop.permute.xlu0 %3435 }
 0x50e   : > { %4235 = vst.msk [vmem:[%s4772_s22 + $0x228] sm:$0x3] %vm1844_vm5, %v3438_v51  ;;  %4234 = vst.msk [vmem:[%s4772_s22 + $0x210] sm:$0x3] %vm1844_vm5, %v3436_v59 }
 0x511   : > { %v3582_v56 = vpop.permute.xlu1 %3581  ;;  %v3580_v52 = vpop.permute.xlu0 %3579 }
 0x512   : > { %4259 = vst.msk [vmem:[%s4772_s22 + $0x23a] sm:$0x3] %vm1844_vm5, %v3582_v56  ;;  %4258 = vst.msk [vmem:[%s4772_s22 + $0x222] sm:$0x3] %vm1844_vm5, %v3580_v52 }
 0x515   : > { %v3442_v53 = vpop.permute.xlu1 %3441  ;;  %v3440_v57 = vpop.permute.xlu0 %3439 }
 0x516   : > { %4237 = vst.msk [vmem:[%s4772_s22 + $0x348] sm:$0x3] %vm1844_vm5, %v3442_v53  ;;  %4236 = vst.msk [vmem:[%s4772_s22 + $0x330] sm:$0x3] %vm1844_vm5, %v3440_v57 }
 0x519   : > { %v3586_v54 = vpop.permute.xlu1 %3585  ;;  %v3584_v62 = vpop.permute.xlu0 %3583 }
 0x51a   : > { %4261 = vst.msk [vmem:[%s4772_s22 + $0x35a] sm:$0x3] %vm1844_vm5, %v3586_v54  ;;  %4260 = vst.msk [vmem:[%s4772_s22 + $0x342] sm:$0x3] %vm1844_vm5, %v3584_v62 }
 0x51d   : > { %v3446_v63 = vpop.permute.xlu1 %3445  ;;  %v3444_v60 = vpop.permute.xlu0 %3443 }
 0x51e   : > { %4239 = vst.msk [vmem:[%s4772_s22 + $0x468] sm:$0x3] %vm1844_vm5, %v3446_v63  ;;  %4238 = vst.msk [vmem:[%s4772_s22 + $0x450] sm:$0x3] %vm1844_vm5, %v3444_v60 }
 0x521   : > { %v3590_v3 = vpop.permute.xlu1 %3589  ;;  %v3588_v61 = vpop.permute.xlu0 %3587 }
 0x522   : > { %4263 = vst.msk [vmem:[%s4772_s22 + $0x47a] sm:$0x3] %vm1844_vm5, %v3590_v3  ;;  %4262 = vst.msk [vmem:[%s4772_s22 + $0x462] sm:$0x3] %vm1844_vm5, %v3588_v61 }
 0x523 PF: > { %p11_p9 = scmp.ge.s32.totalorder %s4413_s11, 4   ;;  %s7108_s6 = smov %s4367_s7 }
 0x524   : > { %s7109_s7 = smov %s4371_s8  ;;  %s7110_s8 = smov %s4423_s14 }
 0x525   : > { %s7111_s9 = smov %s4413_s11  ;;  %13 = sbr.rel (!%p11_p9) target bundleno = 3 (0x3), region = 67 }
 0x52a   :  { %3631 = vsyncpa [#allocation3], 1 }
 0x52b   :  { %3633 = vsyncpa [#allocation3 + $0x1], 1 }

</bundles_post_ra>
